<compile_context>
chip_gen: v7x
topology: tpu7x:2x2x1
jax: 0.10.0
libtpu: 0.0.40
codegen_flags: <defaults>
</compile_context>

<pallas_src>
import jax
import jax.numpy as jnp
from jax.experimental import pallas as pl
from jax.experimental.pallas import tpu as pltpu


def _bottleneck_kernel(x_ref, xtop_ref, xbot_ref,
                       w1_ref, b1_ref, w2_ref, b2_ref, w3_ref, b3_ref,
                       o_ref, pad_ref, col_ref):
    """One (batch, row-tile) grid step.

    x_ref    : (TH, W, Cin)        bf16  rows of this tile
    xtop_ref : (W, Cin)            bf16  row just above the tile (clamped at image top)
    xbot_ref : (W, Cin)            bf16  row just below the tile (clamped at image bottom)
    w1_ref   : (Cin, Pp)           bf16  conv1 weight, BN1 scale folded, channel-padded
    b1_ref   : (1, Pp)             f32
    w2_ref   : (9*Pp, Pp)          bf16  conv2 weight, rows = (dy*3+dx)*Pp + cin
    b2_ref   : (1, Pp)             f32
    w3_ref   : (Pp, Cout)          bf16  conv3 weight, BN3 scale folded, row-padded
    b3_ref   : (1, Cout)           f32
    o_ref    : (TH, W, Cout)       bf16
    pad_ref  : (TH+2, W+2, Pp)     bf16  VMEM scratch: zero-padded h1 tile
    col_ref  : (TH, W, 9*Pp)       bf16  VMEM scratch: im2col staging buffer
    """
    TH, W, Cin = x_ref.shape
    Pp = w1_ref.shape[1]
    Cout = w3_ref.shape[1]
    t = pl.program_id(1)
    n_tiles = pl.num_programs(1)

    w1 = w1_ref[...]          # bf16
    b1 = b1_ref[...]          # (1, Pp) f32

    # ---- conv1x1 + bn1 + relu: main rows + recomputed 1-row halos ----------
    x_main = x_ref[...]                                            # (TH, W, Cin) bf16
    h1 = jnp.dot(x_main.reshape(TH * W, Cin), w1,
                 preferred_element_type=jnp.float32)
    h1 = jnp.maximum(h1 + b1, 0.0)                                 # (TH*W, Pp) f32

    ht = jnp.dot(xtop_ref[...], w1, preferred_element_type=jnp.float32)
    ht = jnp.maximum(ht + b1, 0.0)
    ht = jnp.where(t > 0, ht, 0.0)                                 # image top -> zero pad

    hb = jnp.dot(xbot_ref[...], w1, preferred_element_type=jnp.float32)
    hb = jnp.maximum(hb + b1, 0.0)
    hb = jnp.where(t < n_tiles - 1, hb, 0.0)                       # image bottom -> zero pad

    # ---- assemble zero-padded bf16 h1 tile in persistent VMEM scratch ------
    pad_ref[:, 0, :] = jnp.zeros((TH + 2, Pp), pad_ref.dtype)      # left pad column
    pad_ref[:, W + 1, :] = jnp.zeros((TH + 2, Pp), pad_ref.dtype)  # right pad column
    pad_ref[0, pl.ds(1, W), :] = ht.astype(pad_ref.dtype)
    pad_ref[TH + 1, pl.ds(1, W), :] = hb.astype(pad_ref.dtype)
    pad_ref[pl.ds(1, TH), pl.ds(1, W), :] = h1.reshape(TH, W, Pp).astype(pad_ref.dtype)

    # ---- conv3x3 (stride=1, pad=1) + bn2 + relu: im2col + ONE K=9*Pp matmul -
    for dy in range(3):                                            # unrolled at trace time
        for dx in range(3):
            k = dy * 3 + dx
            col_ref[:, :, pl.ds(k * Pp, Pp)] = pad_ref[pl.ds(dy, TH), pl.ds(dx, W), :]

    h2 = jnp.dot(col_ref[...].reshape(TH * W, 9 * Pp), w2_ref[...],
                 preferred_element_type=jnp.float32)
    h2 = jnp.maximum(h2 + b2_ref[...], 0.0)                        # (TH*W, Pp) f32

    # ---- conv1x1 + bn3 + residual add + relu -------------------------------
    h3 = jnp.dot(h2.astype(jnp.bfloat16), w3_ref[...],
                 preferred_element_type=jnp.float32) + b3_ref[...]
    res = x_main.reshape(TH * W, Cout).astype(jnp.float32)         # identity residual
    out = jnp.maximum(h3 + res, 0.0)
    o_ref[...] = out.reshape(TH, W, Cout).astype(o_ref.dtype)


def fold_bn(gamma, beta, mean, var, eps=1e-5):
    scale = gamma / jnp.sqrt(var + eps)
    bias = beta - mean * scale
    return scale.reshape(1, -1), bias.reshape(1, -1)


def prepare_folded_weights(params, matmul_dtype=jnp.bfloat16, lane=128):
    """Fold BN scales into conv weights, zero-pad the intermediate channel dim P to a
    multiple of `lane`, cast MXU operands to bf16, and pre-reshape w2 to (9*Pp, Pp)."""
    (w1, s1, b1, w2, s2, b2, w3, s3, b3) = params
    Cin, P = w1.shape
    Cout = w3.shape[1]
    Pp = ((P + lane - 1) // lane) * lane
    dP = Pp - P

    w1f = w1 * s1                                                  # (Cin, P)
    w2f = w2 * s2.reshape(1, 1, 1, P)                              # (3, 3, P, P)
    w3f = w3 * s3                                                  # (P, Cout)

    w1p = jnp.pad(w1f, ((0, 0), (0, dP))).astype(matmul_dtype)                    # (Cin, Pp)
    b1p = jnp.pad(b1, ((0, 0), (0, dP))).astype(jnp.float32)                      # (1, Pp)
    w2p = jnp.pad(w2f, ((0, 0), (0, 0), (0, dP), (0, dP))).astype(matmul_dtype)
    w2p = w2p.reshape(9 * Pp, Pp)                                                 # (9Pp, Pp)
    b2p = jnp.pad(b2, ((0, 0), (0, dP))).astype(jnp.float32)                      # (1, Pp)
    w3p = jnp.pad(w3f, ((0, dP), (0, 0))).astype(matmul_dtype)                    # (Pp, Cout)
    b3p = b3.astype(jnp.float32)                                                  # (1, Cout)
    return w1p, b1p, w2p, b2p, w3p, b3p


def bottleneck_forward(x_nchw, params, *, tile_h=16):
    """x_nchw: (N, C, H, W) float32, like the PyTorch module (stride=1, identity path)."""
    N, C, H, W = x_nchw.shape
    w1p, b1, w2p, b2, w3p, b3 = prepare_folded_weights(params)
    Cin, Pp = w1p.shape
    Cout = w3p.shape[1]
    assert Cin == C
    assert Cout == C, "identity residual requires inplanes == planes * expansion"
    TH = min(tile_h, H)
    assert H % TH == 0, "H must be divisible by tile_h"
    n_tiles = H // TH

    # bf16 activation HBM I/O (memory-bound block); matmuls accumulate in f32.
    x = jnp.transpose(x_nchw, (0, 2, 3, 1)).astype(jnp.bfloat16)   # NHWC bf16

    out = pl.pallas_call(
        _bottleneck_kernel,
        out_shape=jax.ShapeDtypeStruct((N, H, W, Cout), jnp.bfloat16),
        grid_spec=pltpu.PrefetchScalarGridSpec(
            num_scalar_prefetch=0,
            grid=(N, n_tiles),
            in_specs=[
                # main rows of this tile
                pl.BlockSpec((None, TH, W, Cin), lambda n, t: (n, t, 0, 0)),
                # one-row top halo (row index clamped at image boundary; masked in-kernel)
                pl.BlockSpec((None, None, W, Cin),
                             lambda n, t: (n, jnp.maximum(t * TH - 1, 0), 0, 0)),
                # one-row bottom halo
                pl.BlockSpec((None, None, W, Cin),
                             lambda n, t: (n, jnp.minimum((t + 1) * TH, H - 1), 0, 0)),
                # grid-invariant folded weights / biases
                pl.BlockSpec((Cin, Pp), lambda n, t: (0, 0)),
                pl.BlockSpec((1, Pp), lambda n, t: (0, 0)),
                pl.BlockSpec((9 * Pp, Pp), lambda n, t: (0, 0)),
                pl.BlockSpec((1, Pp), lambda n, t: (0, 0)),
                pl.BlockSpec((Pp, Cout), lambda n, t: (0, 0)),
                pl.BlockSpec((1, Cout), lambda n, t: (0, 0)),
            ],
            out_specs=pl.BlockSpec((None, TH, W, Cout), lambda n, t: (n, t, 0, 0)),
            scratch_shapes=[
                pltpu.VMEM((TH + 2, W + 2, Pp), jnp.bfloat16),     # zero-padded h1 tile
                pltpu.VMEM((TH, W, 9 * Pp), jnp.bfloat16),         # im2col staging buffer
            ],
        ),
        compiler_params=pltpu.CompilerParams(
            dimension_semantics=("parallel", "parallel"),
            # Above the 32 MiB scoped default (v6e benefits from larger pipeline blocks),
            # still comfortably under v7x's 64 MiB physical VMEM.
            vmem_limit_bytes=48 * 1024 * 1024,
        ),
    )(x, x, x, w1p, b1, w2p, b2, w3p, b3)

    # Return f32 NCHW for PyTorch-module parity (keep bf16 in a real network).
    return jnp.transpose(out, (0, 3, 1, 2)).astype(jnp.float32)


def make_params(key, inplanes, planes, expansion=4):
    ks = jax.random.split(key, 6)
    cout = planes * expansion
    w1 = jax.random.normal(ks[0], (inplanes, planes), jnp.float32) * 0.1
    w2 = jax.random.normal(ks[1], (3, 3, planes, planes), jnp.float32) * 0.1
    w3 = jax.random.normal(ks[2], (planes, cout), jnp.float32) * 0.1

    def bn(k, c):
        g = 1.0 + 0.1 * jax.random.normal(jax.random.fold_in(k, 0), (c,), jnp.float32)
        b = 0.1 * jax.random.normal(jax.random.fold_in(k, 1), (c,), jnp.float32)
        m = 0.05 * jax.random.normal(jax.random.fold_in(k, 2), (c,), jnp.float32)
        v = jnp.abs(1.0 + 0.1 * jax.random.normal(jax.random.fold_in(k, 3), (c,), jnp.float32))
        return fold_bn(g, b, m, v)

    s1, b1 = bn(ks[3], planes)
    s2, b2 = bn(ks[4], planes)
    s3, b3 = bn(ks[5], cout)
    return (w1, s1, b1, w2, s2, b2, w3, s3, b3)


def reference_forward(x_nchw, params, *, matmul_dtype=jnp.float32, io_dtype=jnp.float32):
    """Plain-JAX reference of the PyTorch forward (eval-mode BN folded).

    With matmul_dtype=io_dtype=bfloat16 the activations/weights are rounded exactly as in
    the Pallas kernel (f32 accumulation, bf16 HBM I/O), so the comparison is tight.
    """
    (w1, s1, b1, w2, s2, b2, w3, s3, b3) = params
    x = jnp.transpose(x_nchw, (0, 2, 3, 1)).astype(io_dtype).astype(jnp.float32)
    N, H, W, C = x.shape
    P = w1.shape[1]
    w1f = (w1 * s1).astype(matmul_dtype)
    w2f = (w2 * s2.reshape(1, 1, 1, P)).astype(matmul_dtype)
    w3f = (w3 * s3).astype(matmul_dtype)

    def mm(a, w):
        return jnp.einsum('nhwk,ko->nhwo', a.astype(matmul_dtype), w,
                          preferred_element_type=jnp.float32)

    h = jnp.maximum(mm(x, w1f) + b1[0], 0.0)
    hp = jnp.pad(h, ((0, 0), (1, 1), (1, 1), (0, 0)))
    acc = jnp.zeros((N, H, W, P), jnp.float32)
    for dy in range(3):
        for dx in range(3):
            acc = acc + mm(hp[:, dy:dy + H, dx:dx + W, :], w2f[dy, dx])
    h = jnp.maximum(acc + b2[0], 0.0)
    h = mm(h, w3f) + b3[0]
    out = jnp.maximum(h + x, 0.0).astype(io_dtype).astype(jnp.float32)
    return jnp.transpose(out, (0, 3, 1, 2))


if __name__ == "__main__":
    key = jax.random.PRNGKey(0)
    k_x, k_p = jax.random.split(key)

    N, planes, expansion = 2, 32, 4
    inplanes = planes * expansion            # 128 -> lane-dense residual/output channels
    H = W = 16

    x = jax.random.normal(k_x, (N, inplanes, H, W), jnp.float32)
    params = make_params(k_p, inplanes, planes, expansion)

    # Matched-precision reference (bf16 matmul operands + bf16 activation I/O,
    # f32 accumulation) -> tight check.
    ref = reference_forward(x, params, matmul_dtype=jnp.bfloat16, io_dtype=jnp.bfloat16)

    # Single-tile path (whole image in one row tile, M = TH*W = 256).
    out = jax.block_until_ready(bottleneck_forward(x, params, tile_h=16))
    assert out.shape == (N, inplanes, H, W)
    err = float(jnp.max(jnp.abs(out - ref)))
    assert jnp.allclose(out, ref, rtol=2e-2, atol=2e-2), f"max abs err (tile_h=16) = {err}"

    # Multi-tile path (exercises the halo rows / boundary masking).
    out8 = jax.block_until_ready(bottleneck_forward(x, params, tile_h=8))
    err8 = float(jnp.max(jnp.abs(out8 - ref)))
    assert jnp.allclose(out8, ref, rtol=2e-2, atol=2e-2), f"max abs err (tile_h=8) = {err8}"

    print("KERNEL_OK")
</pallas_src>

<mosaic_0001>
module attributes {stable_mosaic.version = 11 : i64} {
  func.func @_bottleneck_kernel(%arg0: i32, %arg1: i32, %arg2: memref<1x16x16x128xbf16, #tpu.memory_space<vmem>>, %arg3: memref<1x1x16x128xbf16, #tpu.memory_space<vmem>>, %arg4: memref<1x1x16x128xbf16, #tpu.memory_space<vmem>>, %arg5: memref<128x128xbf16, #tpu.memory_space<vmem>>, %arg6: memref<1x128xf32, #tpu.memory_space<vmem>>, %arg7: memref<1152x128xbf16, #tpu.memory_space<vmem>>, %arg8: memref<1x128xf32, #tpu.memory_space<vmem>>, %arg9: memref<128x128xbf16, #tpu.memory_space<vmem>>, %arg10: memref<1x128xf32, #tpu.memory_space<vmem>>, %arg11: memref<1x16x16x128xbf16, #tpu.memory_space<vmem>>, %arg12: memref<18x18x128xbf16, #tpu.memory_space<vmem>>, %arg13: memref<16x16x1152xbf16, #tpu.memory_space<vmem>>) attributes {dimension_semantics = [#tpu.dimension_semantics<parallel>, #tpu.dimension_semantics<parallel>], iteration_bounds = array<i64: 2, 1>, scalar_prefetch = 0 : i64, scratch_operands = 2 : i64, tpu.core_type = #tpu.core_type<tc>, window_params = [{transform_indices = @transform_0, window_bounds = array<i64: 1, 16, 16, 128>}, {transform_indices = @transform_1, window_bounds = array<i64: 1, 1, 16, 128>}, {transform_indices = @transform_2, window_bounds = array<i64: 1, 1, 16, 128>}, {pipeline_mode = #tpu.pipeline_mode<synchronous>, transform_indices = @transform_3, window_bounds = array<i64: 128, 128>}, {pipeline_mode = #tpu.pipeline_mode<synchronous>, transform_indices = @transform_4, window_bounds = array<i64: 1, 128>}, {pipeline_mode = #tpu.pipeline_mode<synchronous>, transform_indices = @transform_5, window_bounds = array<i64: 1152, 128>}, {pipeline_mode = #tpu.pipeline_mode<synchronous>, transform_indices = @transform_6, window_bounds = array<i64: 1, 128>}, {pipeline_mode = #tpu.pipeline_mode<synchronous>, transform_indices = @transform_7, window_bounds = array<i64: 128, 128>}, {pipeline_mode = #tpu.pipeline_mode<synchronous>, transform_indices = @transform_8, window_bounds = array<i64: 1, 128>}, {transform_indices = @transform_9, window_bounds = array<i64: 1, 16, 16, 128>}]} {
    %c0 = arith.constant 0 : index
    %c0_0 = arith.constant 0 : index
    %0 = vector.load %arg5[%c0, %c0_0] : memref<128x128xbf16, #tpu.memory_space<vmem>>, vector<128x128xbf16>
    %c0_1 = arith.constant 0 : index
    %c0_2 = arith.constant 0 : index
    %1 = vector.load %arg6[%c0_1, %c0_2] : memref<1x128xf32, #tpu.memory_space<vmem>>, vector<1x128xf32>
    %c0_3 = arith.constant 0 : index
    %c0_4 = arith.constant 0 : index
    %c0_5 = arith.constant 0 : index
    %c0_6 = arith.constant 0 : index
    %2 = vector.load %arg2[%c0_3, %c0_4, %c0_5, %c0_6] : memref<1x16x16x128xbf16, #tpu.memory_space<vmem>>, vector<1x16x16x128xbf16>
    %3 = vector.shape_cast %2 : vector<1x16x16x128xbf16> to vector<16x16x128xbf16>
    %4 = vector.shape_cast %3 : vector<16x16x128xbf16> to vector<256x128xbf16>
    %cst = arith.constant dense<0.000000e+00> : vector<256x128xf32>
    %5 = tpu.matmul %4, %0, %cst {dimension_numbers = #tpu.dot_dimension_numbers<[1], [0], [0], [1], [0, 0, 1, 1], [], []>} : vector<256x128xbf16>, vector<128x128xbf16>, vector<256x128xf32> -> vector<256x128xf32>
    %6 = vector.broadcast %1 : vector<1x128xf32> to vector<256x128xf32>
    %7 = arith.addf %5, %6 : vector<256x128xf32>
    %cst_7 = arith.constant 0.000000e+00 : f32
    %8 = vector.broadcast %cst_7 : f32 to vector<256x128xf32>
    %9 = arith.maximumf %7, %8 : vector<256x128xf32>
    %c0_8 = arith.constant 0 : index
    %c0_9 = arith.constant 0 : index
    %c0_10 = arith.constant 0 : index
    %c0_11 = arith.constant 0 : index
    %10 = vector.load %arg3[%c0_8, %c0_9, %c0_10, %c0_11] : memref<1x1x16x128xbf16, #tpu.memory_space<vmem>>, vector<1x1x16x128xbf16>
    %11 = vector.shape_cast %10 : vector<1x1x16x128xbf16> to vector<16x128xbf16>
    %cst_12 = arith.constant dense<0.000000e+00> : vector<16x128xf32>
    %12 = tpu.matmul %11, %0, %cst_12 {dimension_numbers = #tpu.dot_dimension_numbers<[1], [0], [0], [1], [0, 0, 1, 1], [], []>} : vector<16x128xbf16>, vector<128x128xbf16>, vector<16x128xf32> -> vector<16x128xf32>
    %13 = vector.broadcast %1 : vector<1x128xf32> to vector<16x128xf32>
    %14 = arith.addf %12, %13 : vector<16x128xf32>
    %cst_13 = arith.constant 0.000000e+00 : f32
    %15 = vector.broadcast %cst_13 : f32 to vector<16x128xf32>
    %16 = arith.maximumf %14, %15 : vector<16x128xf32>
    %c0_i32 = arith.constant 0 : i32
    %17 = arith.cmpi sgt, %arg1, %c0_i32 : i32
    %cst_14 = arith.constant 0.000000e+00 : f32
    %18 = vector.broadcast %cst_14 : f32 to vector<16x128xf32>
    %19 = arith.select %17, %16, %18 : vector<16x128xf32>
    %c0_15 = arith.constant 0 : index
    %c0_16 = arith.constant 0 : index
    %c0_17 = arith.constant 0 : index
    %c0_18 = arith.constant 0 : index
    %20 = vector.load %arg4[%c0_15, %c0_16, %c0_17, %c0_18] : memref<1x1x16x128xbf16, #tpu.memory_space<vmem>>, vector<1x1x16x128xbf16>
    %21 = vector.shape_cast %20 : vector<1x1x16x128xbf16> to vector<16x128xbf16>
    %cst_19 = arith.constant dense<0.000000e+00> : vector<16x128xf32>
    %22 = tpu.matmul %21, %0, %cst_19 {dimension_numbers = #tpu.dot_dimension_numbers<[1], [0], [0], [1], [0, 0, 1, 1], [], []>} : vector<16x128xbf16>, vector<128x128xbf16>, vector<16x128xf32> -> vector<16x128xf32>
    %23 = vector.broadcast %1 : vector<1x128xf32> to vector<16x128xf32>
    %24 = arith.addf %22, %23 : vector<16x128xf32>
    %cst_20 = arith.constant 0.000000e+00 : f32
    %25 = vector.broadcast %cst_20 : f32 to vector<16x128xf32>
    %26 = arith.maximumf %24, %25 : vector<16x128xf32>
    %c0_i32_21 = arith.constant 0 : i32
    %27 = arith.cmpi slt, %arg1, %c0_i32_21 : i32
    %cst_22 = arith.constant 0.000000e+00 : f32
    %28 = vector.broadcast %cst_22 : f32 to vector<16x128xf32>
    %29 = arith.select %27, %26, %28 : vector<16x128xf32>
    %cst_23 = arith.constant 0.000000e+00 : bf16
    %30 = vector.broadcast %cst_23 : bf16 to vector<18x128xbf16>
    %c0_24 = arith.constant 0 : index
    %c0_25 = arith.constant 0 : index
    %c0_26 = arith.constant 0 : index
    %31 = vector.load %arg12[%c0_24, %c0_25, %c0_26] : memref<18x18x128xbf16, #tpu.memory_space<vmem>>, vector<18x1x128xbf16>
    %32 = vector.shape_cast %31 : vector<18x1x128xbf16> to vector<18x128xbf16>
    %33 = vector.shape_cast %30 : vector<18x128xbf16> to vector<18x1x128xbf16>
    tpu.vector_store %arg12[%c0_24, %c0_25, %c0_26], %33 {strides = array<i32>} : memref<18x18x128xbf16, #tpu.memory_space<vmem>>, vector<18x1x128xbf16>,
    %cst_27 = arith.constant 0.000000e+00 : bf16
    %34 = vector.broadcast %cst_27 : bf16 to vector<18x128xbf16>
    %c0_28 = arith.constant 0 : index
    %c17 = arith.constant 17 : index
    %c0_29 = arith.constant 0 : index
    %35 = vector.load %arg12[%c0_28, %c17, %c0_29] : memref<18x18x128xbf16, #tpu.memory_space<vmem>>, vector<18x1x128xbf16>
    %36 = vector.shape_cast %35 : vector<18x1x128xbf16> to vector<18x128xbf16>
    %37 = vector.shape_cast %34 : vector<18x128xbf16> to vector<18x1x128xbf16>
    tpu.vector_store %arg12[%c0_28, %c17, %c0_29], %37 {strides = array<i32>} : memref<18x18x128xbf16, #tpu.memory_space<vmem>>, vector<18x1x128xbf16>,
    %38 = arith.truncf %19 : vector<16x128xf32> to vector<16x128xbf16>
    %c0_30 = arith.constant 0 : index
    %c1 = arith.constant 1 : index
    %c0_31 = arith.constant 0 : index
    %39 = vector.load %arg12[%c0_30, %c1, %c0_31] : memref<18x18x128xbf16, #tpu.memory_space<vmem>>, vector<1x16x128xbf16>
    %40 = vector.shape_cast %39 : vector<1x16x128xbf16> to vector<16x128xbf16>
    %41 = vector.shape_cast %38 : vector<16x128xbf16> to vector<1x16x128xbf16>
    tpu.vector_store %arg12[%c0_30, %c1, %c0_31], %41 {strides = array<i32>} : memref<18x18x128xbf16, #tpu.memory_space<vmem>>, vector<1x16x128xbf16>,
    %42 = arith.truncf %29 : vector<16x128xf32> to vector<16x128xbf16>
    %c17_32 = arith.constant 17 : index
    %c1_33 = arith.constant 1 : index
    %c0_34 = arith.constant 0 : index
    %43 = vector.load %arg12[%c17_32, %c1_33, %c0_34] : memref<18x18x128xbf16, #tpu.memory_space<vmem>>, vector<1x16x128xbf16>
    %44 = vector.shape_cast %43 : vector<1x16x128xbf16> to vector<16x128xbf16>
    %45 = vector.shape_cast %42 : vector<16x128xbf16> to vector<1x16x128xbf16>
    tpu.vector_store %arg12[%c17_32, %c1_33, %c0_34], %45 {strides = array<i32>} : memref<18x18x128xbf16, #tpu.memory_space<vmem>>, vector<1x16x128xbf16>,
    %46 = vector.shape_cast %9 : vector<256x128xf32> to vector<16x16x128xf32>
    %47 = arith.truncf %46 : vector<16x16x128xf32> to vector<16x16x128xbf16>
    %c1_35 = arith.constant 1 : index
    %c1_36 = arith.constant 1 : index
    %c0_37 = arith.constant 0 : index
    %48 = vector.load %arg12[%c1_35, %c1_36, %c0_37] : memref<18x18x128xbf16, #tpu.memory_space<vmem>>, vector<16x16x128xbf16>
    tpu.vector_store %arg12[%c1_35, %c1_36, %c0_37], %47 {strides = array<i32>} : memref<18x18x128xbf16, #tpu.memory_space<vmem>>, vector<16x16x128xbf16>,
    %c0_38 = arith.constant 0 : index
    %c0_39 = arith.constant 0 : index
    %c0_40 = arith.constant 0 : index
    %49 = vector.load %arg12[%c0_38, %c0_39, %c0_40] : memref<18x18x128xbf16, #tpu.memory_space<vmem>>, vector<16x16x128xbf16>
    %c0_41 = arith.constant 0 : index
    %c0_42 = arith.constant 0 : index
    %c0_43 = arith.constant 0 : index
    %50 = vector.load %arg13[%c0_41, %c0_42, %c0_43] : memref<16x16x1152xbf16, #tpu.memory_space<vmem>>, vector<16x16x128xbf16>
    tpu.vector_store %arg13[%c0_41, %c0_42, %c0_43], %49 {strides = array<i32>} : memref<16x16x1152xbf16, #tpu.memory_space<vmem>>, vector<16x16x128xbf16>,
    %c0_44 = arith.constant 0 : index
    %c1_45 = arith.constant 1 : index
    %c0_46 = arith.constant 0 : index
    %51 = vector.load %arg12[%c0_44, %c1_45, %c0_46] : memref<18x18x128xbf16, #tpu.memory_space<vmem>>, vector<16x16x128xbf16>
    %c0_47 = arith.constant 0 : index
    %c0_48 = arith.constant 0 : index
    %c128 = arith.constant 128 : index
    %52 = vector.load %arg13[%c0_47, %c0_48, %c128] : memref<16x16x1152xbf16, #tpu.memory_space<vmem>>, vector<16x16x128xbf16>
    tpu.vector_store %arg13[%c0_47, %c0_48, %c128], %51 {strides = array<i32>} : memref<16x16x1152xbf16, #tpu.memory_space<vmem>>, vector<16x16x128xbf16>,
    %c0_49 = arith.constant 0 : index
    %c2 = arith.constant 2 : index
    %c0_50 = arith.constant 0 : index
    %53 = vector.load %arg12[%c0_49, %c2, %c0_50] : memref<18x18x128xbf16, #tpu.memory_space<vmem>>, vector<16x16x128xbf16>
    %c0_51 = arith.constant 0 : index
    %c0_52 = arith.constant 0 : index
    %c256 = arith.constant 256 : index
    %54 = vector.load %arg13[%c0_51, %c0_52, %c256] : memref<16x16x1152xbf16, #tpu.memory_space<vmem>>, vector<16x16x128xbf16>
    tpu.vector_store %arg13[%c0_51, %c0_52, %c256], %53 {strides = array<i32>} : memref<16x16x1152xbf16, #tpu.memory_space<vmem>>, vector<16x16x128xbf16>,
    %c1_53 = arith.constant 1 : index
    %c0_54 = arith.constant 0 : index
    %c0_55 = arith.constant 0 : index
    %55 = vector.load %arg12[%c1_53, %c0_54, %c0_55] : memref<18x18x128xbf16, #tpu.memory_space<vmem>>, vector<16x16x128xbf16>
    %c0_56 = arith.constant 0 : index
    %c0_57 = arith.constant 0 : index
    %c384 = arith.constant 384 : index
    %56 = vector.load %arg13[%c0_56, %c0_57, %c384] : memref<16x16x1152xbf16, #tpu.memory_space<vmem>>, vector<16x16x128xbf16>
    tpu.vector_store %arg13[%c0_56, %c0_57, %c384], %55 {strides = array<i32>} : memref<16x16x1152xbf16, #tpu.memory_space<vmem>>, vector<16x16x128xbf16>,
    %c1_58 = arith.constant 1 : index
    %c1_59 = arith.constant 1 : index
    %c0_60 = arith.constant 0 : index
    %57 = vector.load %arg12[%c1_58, %c1_59, %c0_60] : memref<18x18x128xbf16, #tpu.memory_space<vmem>>, vector<16x16x128xbf16>
    %c0_61 = arith.constant 0 : index
    %c0_62 = arith.constant 0 : index
    %c512 = arith.constant 512 : index
    %58 = vector.load %arg13[%c0_61, %c0_62, %c512] : memref<16x16x1152xbf16, #tpu.memory_space<vmem>>, vector<16x16x128xbf16>
    tpu.vector_store %arg13[%c0_61, %c0_62, %c512], %57 {strides = array<i32>} : memref<16x16x1152xbf16, #tpu.memory_space<vmem>>, vector<16x16x128xbf16>,
    %c1_63 = arith.constant 1 : index
    %c2_64 = arith.constant 2 : index
    %c0_65 = arith.constant 0 : index
    %59 = vector.load %arg12[%c1_63, %c2_64, %c0_65] : memref<18x18x128xbf16, #tpu.memory_space<vmem>>, vector<16x16x128xbf16>
    %c0_66 = arith.constant 0 : index
    %c0_67 = arith.constant 0 : index
    %c640 = arith.constant 640 : index
    %60 = vector.load %arg13[%c0_66, %c0_67, %c640] : memref<16x16x1152xbf16, #tpu.memory_space<vmem>>, vector<16x16x128xbf16>
    tpu.vector_store %arg13[%c0_66, %c0_67, %c640], %59 {strides = array<i32>} : memref<16x16x1152xbf16, #tpu.memory_space<vmem>>, vector<16x16x128xbf16>,
    %c2_68 = arith.constant 2 : index
    %c0_69 = arith.constant 0 : index
    %c0_70 = arith.constant 0 : index
    %61 = vector.load %arg12[%c2_68, %c0_69, %c0_70] : memref<18x18x128xbf16, #tpu.memory_space<vmem>>, vector<16x16x128xbf16>
    %c0_71 = arith.constant 0 : index
    %c0_72 = arith.constant 0 : index
    %c768 = arith.constant 768 : index
    %62 = vector.load %arg13[%c0_71, %c0_72, %c768] : memref<16x16x1152xbf16, #tpu.memory_space<vmem>>, vector<16x16x128xbf16>
    tpu.vector_store %arg13[%c0_71, %c0_72, %c768], %61 {strides = array<i32>} : memref<16x16x1152xbf16, #tpu.memory_space<vmem>>, vector<16x16x128xbf16>,
    %c2_73 = arith.constant 2 : index
    %c1_74 = arith.constant 1 : index
    %c0_75 = arith.constant 0 : index
    %63 = vector.load %arg12[%c2_73, %c1_74, %c0_75] : memref<18x18x128xbf16, #tpu.memory_space<vmem>>, vector<16x16x128xbf16>
    %c0_76 = arith.constant 0 : index
    %c0_77 = arith.constant 0 : index
    %c896 = arith.constant 896 : index
    %64 = vector.load %arg13[%c0_76, %c0_77, %c896] : memref<16x16x1152xbf16, #tpu.memory_space<vmem>>, vector<16x16x128xbf16>
    tpu.vector_store %arg13[%c0_76, %c0_77, %c896], %63 {strides = array<i32>} : memref<16x16x1152xbf16, #tpu.memory_space<vmem>>, vector<16x16x128xbf16>,
    %c2_78 = arith.constant 2 : index
    %c2_79 = arith.constant 2 : index
    %c0_80 = arith.constant 0 : index
    %65 = vector.load %arg12[%c2_78, %c2_79, %c0_80] : memref<18x18x128xbf16, #tpu.memory_space<vmem>>, vector<16x16x128xbf16>
    %c0_81 = arith.constant 0 : index
    %c0_82 = arith.constant 0 : index
    %c1024 = arith.constant 1024 : index
    %66 = vector.load %arg13[%c0_81, %c0_82, %c1024] : memref<16x16x1152xbf16, #tpu.memory_space<vmem>>, vector<16x16x128xbf16>
    tpu.vector_store %arg13[%c0_81, %c0_82, %c1024], %65 {strides = array<i32>} : memref<16x16x1152xbf16, #tpu.memory_space<vmem>>, vector<16x16x128xbf16>,
    %c0_83 = arith.constant 0 : index
    %c0_84 = arith.constant 0 : index
    %c0_85 = arith.constant 0 : index
    %67 = vector.load %arg13[%c0_83, %c0_84, %c0_85] : memref<16x16x1152xbf16, #tpu.memory_space<vmem>>, vector<16x16x1152xbf16>
    %68 = vector.shape_cast %67 : vector<16x16x1152xbf16> to vector<256x1152xbf16>
    %c0_86 = arith.constant 0 : index
    %c0_87 = arith.constant 0 : index
    %69 = vector.load %arg7[%c0_86, %c0_87] : memref<1152x128xbf16, #tpu.memory_space<vmem>>, vector<1152x128xbf16>
    %cst_88 = arith.constant dense<0.000000e+00> : vector<256x128xf32>
    %70 = tpu.matmul %68, %69, %cst_88 {dimension_numbers = #tpu.dot_dimension_numbers<[1], [0], [0], [1], [0, 0, 1, 1], [], []>} : vector<256x1152xbf16>, vector<1152x128xbf16>, vector<256x128xf32> -> vector<256x128xf32>
    %c0_89 = arith.constant 0 : index
    %c0_90 = arith.constant 0 : index
    %71 = vector.load %arg8[%c0_89, %c0_90] : memref<1x128xf32, #tpu.memory_space<vmem>>, vector<1x128xf32>
    %72 = vector.broadcast %71 : vector<1x128xf32> to vector<256x128xf32>
    %73 = arith.addf %70, %72 : vector<256x128xf32>
    %cst_91 = arith.constant 0.000000e+00 : f32
    %74 = vector.broadcast %cst_91 : f32 to vector<256x128xf32>
    %75 = arith.maximumf %73, %74 : vector<256x128xf32>
    %76 = arith.truncf %75 : vector<256x128xf32> to vector<256x128xbf16>
    %c0_92 = arith.constant 0 : index
    %c0_93 = arith.constant 0 : index
    %77 = vector.load %arg9[%c0_92, %c0_93] : memref<128x128xbf16, #tpu.memory_space<vmem>>, vector<128x128xbf16>
    %cst_94 = arith.constant dense<0.000000e+00> : vector<256x128xf32>
    %78 = tpu.matmul %76, %77, %cst_94 {dimension_numbers = #tpu.dot_dimension_numbers<[1], [0], [0], [1], [0, 0, 1, 1], [], []>} : vector<256x128xbf16>, vector<128x128xbf16>, vector<256x128xf32> -> vector<256x128xf32>
    %c0_95 = arith.constant 0 : index
    %c0_96 = arith.constant 0 : index
    %79 = vector.load %arg10[%c0_95, %c0_96] : memref<1x128xf32, #tpu.memory_space<vmem>>, vector<1x128xf32>
    %80 = vector.broadcast %79 : vector<1x128xf32> to vector<256x128xf32>
    %81 = arith.addf %78, %80 : vector<256x128xf32>
    %82 = vector.shape_cast %3 : vector<16x16x128xbf16> to vector<256x128xbf16>
    %83 = arith.extf %82 : vector<256x128xbf16> to vector<256x128xf32>
    %84 = arith.addf %81, %83 : vector<256x128xf32>
    %cst_97 = arith.constant 0.000000e+00 : f32
    %85 = vector.broadcast %cst_97 : f32 to vector<256x128xf32>
    %86 = arith.maximumf %84, %85 : vector<256x128xf32>
    %87 = vector.shape_cast %86 : vector<256x128xf32> to vector<16x16x128xf32>
    %88 = arith.truncf %87 : vector<16x16x128xf32> to vector<16x16x128xbf16>
    %c0_98 = arith.constant 0 : index
    %c0_99 = arith.constant 0 : index
    %c0_100 = arith.constant 0 : index
    %c0_101 = arith.constant 0 : index
    %89 = vector.load %arg11[%c0_98, %c0_99, %c0_100, %c0_101] : memref<1x16x16x128xbf16, #tpu.memory_space<vmem>>, vector<1x16x16x128xbf16>
    %90 = vector.shape_cast %89 : vector<1x16x16x128xbf16> to vector<16x16x128xbf16>
    %91 = vector.shape_cast %88 : vector<16x16x128xbf16> to vector<1x16x16x128xbf16>
    tpu.vector_store %arg11[%c0_98, %c0_99, %c0_100, %c0_101], %91 {strides = array<i32>} : memref<1x16x16x128xbf16, #tpu.memory_space<vmem>>, vector<1x16x16x128xbf16>,
    return
  }
  func.func @transform_0(%arg0: i32, %arg1: i32) -> (i32, i32, i32, i32) {
    %c0_i32 = arith.constant 0 : i32
    %c0_i32_0 = arith.constant 0 : i32
    %c0_i32_1 = arith.constant 0 : i32
    return %arg0, %arg1, %c0_i32, %c0_i32_0 : i32, i32, i32, i32
  }
  func.func @transform_1(%arg0: i32, %arg1: i32) -> (i32, i32, i32, i32) {
    %c16_i32 = arith.constant 16 : i32
    %0 = arith.muli %arg1, %c16_i32 : i32
    %c1_i32 = arith.constant 1 : i32
    %1 = arith.subi %0, %c1_i32 : i32
    %c0_i32 = arith.constant 0 : i32
    %2 = arith.maxsi %1, %c0_i32 : i32
    %c0_i32_0 = arith.constant 0 : i32
    %c0_i32_1 = arith.constant 0 : i32
    %c0_i32_2 = arith.constant 0 : i32
    return %arg0, %2, %c0_i32_0, %c0_i32_1 : i32, i32, i32, i32
  }
  func.func @transform_2(%arg0: i32, %arg1: i32) -> (i32, i32, i32, i32) {
    %c1_i32 = arith.constant 1 : i32
    %0 = arith.addi %arg1, %c1_i32 : i32
    %c16_i32 = arith.constant 16 : i32
    %1 = arith.muli %0, %c16_i32 : i32
    %c15_i32 = arith.constant 15 : i32
    %2 = arith.minsi %1, %c15_i32 : i32
    %c0_i32 = arith.constant 0 : i32
    %c0_i32_0 = arith.constant 0 : i32
    %c0_i32_1 = arith.constant 0 : i32
    return %arg0, %2, %c0_i32, %c0_i32_0 : i32, i32, i32, i32
  }
  func.func @transform_3(%arg0: i32, %arg1: i32) -> (i32, i32) {
    %c0_i32 = arith.constant 0 : i32
    %c0_i32_0 = arith.constant 0 : i32
    %c0_i32_1 = arith.constant 0 : i32
    return %c0_i32, %c0_i32_0 : i32, i32
  }
  func.func @transform_4(%arg0: i32, %arg1: i32) -> (i32, i32) {
    %c0_i32 = arith.constant 0 : i32
    %c0_i32_0 = arith.constant 0 : i32
    %c0_i32_1 = arith.constant 0 : i32
    return %c0_i32, %c0_i32_0 : i32, i32
  }
  func.func @transform_5(%arg0: i32, %arg1: i32) -> (i32, i32) {
    %c0_i32 = arith.constant 0 : i32
    %c0_i32_0 = arith.constant 0 : i32
    %c0_i32_1 = arith.constant 0 : i32
    return %c0_i32, %c0_i32_0 : i32, i32
  }
  func.func @transform_6(%arg0: i32, %arg1: i32) -> (i32, i32) {
    %c0_i32 = arith.constant 0 : i32
    %c0_i32_0 = arith.constant 0 : i32
    %c0_i32_1 = arith.constant 0 : i32
    return %c0_i32, %c0_i32_0 : i32, i32
  }
  func.func @transform_7(%arg0: i32, %arg1: i32) -> (i32, i32) {
    %c0_i32 = arith.constant 0 : i32
    %c0_i32_0 = arith.constant 0 : i32
    %c0_i32_1 = arith.constant 0 : i32
    return %c0_i32, %c0_i32_0 : i32, i32
  }
  func.func @transform_8(%arg0: i32, %arg1: i32) -> (i32, i32) {
    %c0_i32 = arith.constant 0 : i32
    %c0_i32_0 = arith.constant 0 : i32
    %c0_i32_1 = arith.constant 0 : i32
    return %c0_i32, %c0_i32_0 : i32, i32
  }
  func.func @transform_9(%arg0: i32, %arg1: i32) -> (i32, i32, i32, i32) {
    %c0_i32 = arith.constant 0 : i32
    %c0_i32_0 = arith.constant 0 : i32
    %c0_i32_1 = arith.constant 0 : i32
    return %arg0, %arg1, %c0_i32, %c0_i32_0 : i32, i32, i32, i32
  }
}

</mosaic_0001>

<bundles_post_ra>
// kernel: tpu_custom_call.1
= control target key start
LH: loop header
LB: loop body
LE: loop exit
PB: predicated region body
PF: predicated region fallthrough
CT: control target
= control target key end

     0   :  { %s9711_s0 = inlined_call_operand.hbm [shape: bf16[2,16,16,128], index: 0, kind: input, shape index: {}]   ;;  %s9712_s1 = inlined_call_operand.hbm [shape: bf16[2,16,16,128], index: 1, kind: input, shape index: {}]   ;;  %s9713_s2 = inlined_call_operand.hbm [shape: bf16[2,16,16,128], index: 2, kind: input, shape index: {}]   ;;  %s9714_s3 = inlined_call_operand.hbm [shape: bf16[128,128], index: 3, kind: input, shape index: {}]   ;;  %s9715_s4 = inlined_call_operand.vmem [shape: f32[1,128], index: 4, kind: input, shape index: {}]   ;;  %s9716_s5 = inlined_call_operand.hbm [shape: bf16[1152,128], index: 5, kind: input, shape index: {}]   ;;  %s9717_s6 = inlined_call_operand.vmem [shape: f32[1,128], index: 6, kind: input, shape index: {}]   ;;  %s9718_s7 = inlined_call_operand.hbm [shape: bf16[128,128], index: 7, kind: input, shape index: {}]   ;;  %s9719_s8 = inlined_call_operand.vmem [shape: f32[1,128], index: 8, kind: input, shape index: {}]   ;;  %s9720_s9 = inlined_call_operand.hbm [shape: bf16[2,16,16,128], index: 9, kind: output, shape index: {}]  }
   0x1   :  { %9748 = sst [smem:[#allocation30_spill]] %s9712_s1 }
   0x2   :  { %9749 = sst [smem:[#allocation31_spill]] %s9714_s3 }
   0x3   :  { %9750 = sst [smem:[#allocation32_spill]] %s9717_s6 }
   0x4   :  { %9751 = sst [smem:[#allocation33_spill]] %s9719_s8 }
   0x5   :  { %9752 = sst [smem:[#allocation34_spill]] %s9720_s9 }
   0x6   :  { %14 = vsyncpa [#allocation5], 0 }
   0x7   :  { %16 = vsyncpa [#allocation5 + $0x1], 0 }
   0x8   :  { %17 = vsyncpa [#allocation8], 0 }
   0x9   :  { %19 = vsyncpa [#allocation8 + $0x1], 0 }
   0xa   :  { %20 = vsyncpa [#allocation11], 0 }
   0xb   :  { %21 = vsyncpa [#allocation14], 0 }
   0xc   :  { %22 = vsyncpa [#allocation6], 0 }
   0xd   :  { %24 = vsyncpa [#allocation6 + $0x1], 0  ;;  %s8563_s30 = smov 0   ;;  %s8565_s10 = smov 0  }
   0xe   :  { %s8567_s11 = smov 0   ;;  %s8569_s12 = smov 0  }
   0xf   :  { %s8571_s13 = smov 0   ;;  %s8573_s14 = smov 0  }
  0x10 LB: > { %9753 = sst [smem:[#allocation21_spill]] %s8477_s30  ;;  %s8594_s15 = sadd.s32 4294967295, %s8497_s14   ;;  %s8497_s14 = sphi %s8573_s14, %s30_s14   ;;  %s8493_s13 = sphi %s8571_s13, %s9813_s13   ;;  %s8489_s12 = sphi %s8569_s12, %s9809_s12   ;;  %s8485_s11 = sphi %s8567_s11, %s9808_s11   ;;  %s8481_s10 = sphi %s8565_s10, %s9812_s10   ;;  %s8477_s30 = sphi %s8563_s30, %s9811_s30  }
  0x11   : > { %9754 = sst [smem:[#allocation22_spill]] %s8485_s11  ;;  %s6407_s16 = sadd.s32 4294967294, %s8497_s14  }
  0x12   : > { %9755 = sst [smem:[#allocation23_spill]] %s8489_s12  ;;  %p58_p0 = scmp.ne.s32.totalorder %s8485_s11, %s8481_s10 }
  0x13   : > { %9756 = sst [smem:[#allocation24_spill]] %s8493_s13  ;;  %p59_p1 = scmp.eq.s32.totalorder %s8497_s14, 0 }
  0x14   : > { %9757 = sst [smem:[#allocation25_spill]] %s8497_s14  ;;  %p64_p2 = scmp.ne.s32.totalorder %s8481_s10, %s8477_s30 }
  0x15   : > { %p9724_p3 = scmp.eq.s32.totalorder %s8594_s15, 0  ;;  %p8603_p4 = por %p59_p1, %p58_p0 }
  0x16   : > { %p288_p5 = scmp.eq.s32.totalorder %s8594_s15, 1  ;;  %p294_p7 = scmp.eq.s32.totalorder %s6407_s16, 1 }
  0x17   : > { %p8610_p6 = por %p9724_p3, %p64_p2  ;;  %p6408_p9 = scmp.ge.s32.totalorder %s8497_s14, 1 }
  0x18   : > { %p8614_p8 = por %p288_p5, %p58_p0  ;;  %p8619_p10 = por %p294_p7, %p64_p2 }
  0x19   : > { %s9759_s18 = scalar_select %p8610_p6, 1, 0 }
  0x1a   : > { %s9760_s19 = scalar_select %p8614_p8, 1, 0 }
  0x1b   : > { %s9762_s20 = scalar_select %p8619_p10, 1, 0 }
  0x1c   : > { %9761 = sst [smem:[#allocation26_spill]] %s9760_s19  ;;  %p301_p11 = scmp.lt.s32.totalorder %s8497_s14, 3 }
  0x1d   : > { %9763 = sst [smem:[#allocation27_spill]] %s9762_s20  ;;  %s8499_s22 = smov [#allocation10]  }
  0x1e   : > { %p8624_p12 = pnand %p6408_p9, %p301_p11  ;;  %s313_s23 = sshll.u32 %s8499_s22, 4  ;;  %s8628_s23 = int_to_ptr.vmem [resolvable:$true] %s313_s23 }
  0x1f   : > { %s42_s25 = sadd.s32 1, %s8493_s13  ;;  %s9767_s3 = sld [smem:[#allocation31_spill]] }
  0x20   : > { %s9764_s21 = scalar_select %p8624_p12, 1, 0 }
  0x21   : > { %p7759_p13 = pneg %p8624_p12  ;;  %p8641_p2 = scmp.ge.s32.totalorder %s42_s25, 2 }
  0x23   : > { %p8635_p1 = pnand %p7759_p13, %p9724_p3 }
  0x25   : > { %s9765_s24 = scalar_select %p8635_p1, 1, 0 }
  0x26   : > { %s8229_s16 = scalar_lea.hbm %s9767_s3, 1024  ;;  %p8653_p7 = pneg %p8635_p1 }
  0x27   : > { %p8230_p5 = scmp.ne.s32.totalorder %s9767_s3, %s8229_s16  ;;  %p8236_p13 = scmp.lt.u32.totalorder %s8229_s16, %s9767_s3 }
  0x28   : > { %s9768_s30 = scalar_select %p8653_p7, 1, 0 }
  0x29   : > { %p8232_p9 = pnand %p8653_p7, %p8230_p5 }
  0x2b   : > { %p8233_p11 = pneg %p8232_p9 }
  0x2d   : > { %p8238_p0 = pnand %p8236_p13, %p8233_p11 }
  0x2f   : > { %8241 = shalt.err (!%p8238_p0)
}
  0x30   : > { %s8242_s20 = scalar_lea.vmem %s8628_s23, 1024  ;;  %p8250_p6 = scmp.lt.s32.totalorder %s8628_s23, %s8628_s23 }
  0x31   : > { %p8243_p3 = scmp.ne.s32.totalorder %s8628_s23, %s8242_s20  ;;  %p8251_p12 = scmp.lt.s32.totalorder %s8242_s20, %s8242_s20 }
  0x33   : > { %p8245_p10 = pnand %p8243_p3, %p8653_p7  ;;  %p8252_p5 = por %p8251_p12, %p8250_p6 }
  0x35   : > { %p8246_p8 = pneg %p8245_p10 }
  0x37   : > { %p8253_p9 = pnand %p8252_p5, %p8246_p8 }
  0x39   : > { %8256 = shalt.err (!%p8253_p9)
}
  0x3a   : > { %s9730_s28 = smov 64   ;;  %s9732_s9 = smov 4  }
  0x3b   : > { %7762 = dma.hbm_to_vmem [thread:$0]  (!%p8635_p1), %s9767_s3, 1024, %s8628_s23, [#allocation11], %s9730_s28, %s9730_s28, %s9732_s9  }
  0x3c   : > { %s9815_s25 = smov (%p8641_p2, %s42_s25), 0  ;;  %p7786_p3 = scmp.lt.s32.totalorder %s8497_s14, 2 }
  0x3d   : > { %9769 = sst [smem:[#allocation28_spill]] %s9815_s25  ;;  %s8683_s16 = sand.u32 1, %s8485_s11  }
  0x3e   : > { %s46_s22 = ssub.s32 %s8493_s13, %s9815_s25  ;;  %s8688_s20 = sshll.u32 %s8493_s13, 11 }
  0x3f   : > { %p49_p6 = scmp.eq.s32.totalorder %s46_s22, 0  ;;  %p8692_p8 = pnand %p7786_p3, %p8603_p4 }
  0x40   : > { %s386_s23 = sand.u32 1, %s8497_s14   ;;  %s6416_s27 = sshll.u32 %s8683_s16, 3 }
  0x41   : > { %s9770_s19 = scalar_select %p8692_p8, 1, 0 }
  0x42   : > { %s9771_s26 = sadd.s32 1, %s8485_s11  ;;  %s9773_s1 = sld [smem:[#allocation30_spill]] }
  0x43   : > { %s8701_s29 = scalar_select %p49_p6, %s8485_s11, %s9771_s26  }
  0x44   : > { %s390_s17 = scalar_lea.vmem [#allocation7], %s6416_s27  ;;  %s8711_s25 = scalar_lea.vmem [#allocation9], %s6416_s27 }
  0x45   : > { %9772 = sst [smem:[#allocation29_spill]] %s8701_s29  ;;  %s403_s22 = sshll.u32 %s390_s17, 4  ;;  %s8709_s22 = int_to_ptr.vmem [resolvable:$true] %s403_s22 }
  0x46   : > { %s430_s13 = sshll.u32 %s8711_s25, 4  ;;  %s8714_s14 = scalar_lea.sflag [#allocation8], %s386_s23  ;;  %s8749_s13 = int_to_ptr.vmem [resolvable:$true] %s430_s13 }
  0x47   : > { %p8720_p10 = pneg %p8692_p8 }
  0x48   : > { %s8707_s3 = scalar_lea.hbm %s9773_s1, %s8688_s20  ;;  %s8262_s27 = scalar_lea.hbm %s9773_s1, 4096 }
  0x49   : > { %s8257_s26 = scalar_lea.hbm %s8707_s3, 128  ;;  %p8263_p2 = scmp.lt.u32.totalorder %s8707_s3, %s9773_s1 }
  0x4a   : > { %p8258_p4 = scmp.ne.s32.totalorder %s8707_s3, %s8257_s26  ;;  %p8264_p11 = scmp.lt.u32.totalorder %s8262_s27, %s8257_s26 }
  0x4b   : > { %s9774_s28 = scalar_select %p8720_p10, 1, 0 }
  0x4c   : > { %p8260_p12 = pnand %p8720_p10, %p8258_p4  ;;  %p8265_p13 = por %p8264_p11, %p8263_p2 }
  0x4d   : > { %p8266_p5 = scmp.lt.u32.totalorder %s8257_s26, %s8707_s3 }
  0x4e   : > { %p8261_p0 = pneg %p8260_p12 }
  0x4f   : > { %p8267_p9 = por %p8266_p5, %p8265_p13 }
  0x51   : > { %p8268_p3 = pnand %p8267_p9, %p8261_p0 }
  0x53   : > { %8271 = shalt.err (!%p8268_p3)
}
  0x54   : > { %s8272_s23 = scalar_lea.vmem %s8709_s22, 128  ;;  %s8502_s9 = smov [#allocation7]  }
  0x55   : > { %p8273_p6 = scmp.ne.s32.totalorder %s8709_s22, %s8272_s23  ;;  %s8277_s17 = sshll.u32 %s8502_s9, 4  ;;  %s8278_s17 = int_to_ptr.vmem [resolvable:$false] %s8277_s17 }
  0x56   : > { %s8279_s11 = scalar_lea.vmem %s8278_s17, 256  ;;  %p8280_p1 = scmp.lt.s32.totalorder %s8709_s22, %s8278_s17 }
  0x57   : > { %p8275_p4 = pnand %p8273_p6, %p8720_p10  ;;  %p8281_p7 = scmp.lt.s32.totalorder %s8279_s11, %s8272_s23 }
  0x59   : > { %p8276_p12 = pneg %p8275_p4  ;;  %p8282_p2 = por %p8281_p7, %p8280_p1 }
  0x5b   : > { %p8283_p11 = pnand %p8282_p2, %p8276_p12 }
  0x5d   : > { %8286 = shalt.err (!%p8283_p11)
}
  0x5e   : > { %s9775_s29 = smov 4   ;;  %s9776_s26 = smov 64  }
  0x5f   : > { %7775 = dma.hbm_to_vmem [thread:$0]  (!%p8692_p8), %s8707_s3, 128, %s8709_s22, %s8714_s14, %s9776_s26, %s9776_s26, %s9775_s29  }
  0x60   : > { %s8503_s27 = smov [#allocation12]   ;;  %s8504_s23 = smov [#allocation13]  }
  0x61   : > { %s329_s9 = sshll.u32 %s8503_s27, 4  ;;  %s345_s17 = sshll.u32 %s8504_s23, 4  ;;  %s330_s9 = int_to_ptr.vmem [resolvable:$true] %s329_s9  ;;  %s346_s17 = int_to_ptr.vmem [resolvable:$true] %s345_s17 }
  0x62   : > { %s8287_s12 = scalar_lea.hbm %s9716_s5, 9216  ;;  %p9777_p7 = scmp.ne.s32.totalorder %s9768_s30, 0 }
  0x63   : > { %p8288_p1 = scmp.ne.s32.totalorder %s9716_s5, %s8287_s12  ;;  %p8294_p5 = scmp.lt.u32.totalorder %s8287_s12, %s9716_s5 }
  0x65   : > { %p8290_p0 = pnand %p8288_p1, %p9777_p7 }
  0x67   : > { %p8291_p13 = pneg %p8290_p0 }
  0x69   : > { %p8296_p9 = pnand %p8294_p5, %p8291_p13 }
  0x6b   : > { %8299 = shalt.err (!%p8296_p9)
}
  0x6c   : > { %s8300_s22 = scalar_lea.vmem %s330_s9, 9216  ;;  %p8308_p12 = scmp.lt.s32.totalorder %s330_s9, %s330_s9 }
  0x6d   : > { %p8301_p3 = scmp.ne.s32.totalorder %s330_s9, %s8300_s22  ;;  %p8309_p2 = scmp.lt.s32.totalorder %s8300_s22, %s8300_s22 }
  0x6f   : > { %p8303_p6 = pnand %p8301_p3, %p9777_p7  ;;  %p8310_p11 = por %p8309_p2, %p8308_p12 }
  0x71   : > { %p8304_p4 = pneg %p8303_p6 }
  0x73   : > { %p8311_p8 = pnand %p8310_p11, %p8304_p4 }
  0x75   : > { %8314 = shalt.err (!%p8311_p8)
}
  0x76   : > { %p9778_p1 = scmp.ne.s32.totalorder %s9765_s24, 0  ;;  %s8315_s27 = scalar_lea.hbm %s9718_s7, 1024 }
  0x77   : > { %p8316_p0 = scmp.ne.s32.totalorder %s9718_s7, %s8315_s27  ;;  %p8322_p5 = scmp.lt.u32.totalorder %s8315_s27, %s9718_s7 }
  0x78   : > { %7765 = dma.hbm_to_vmem [thread:$0]  (!%p9778_p1), %s9716_s5, 9216, %s330_s9, [#allocation11], %s9776_s26, %s9776_s26, %s9775_s29  }
  0x79   : > { %p8318_p8 = pnand %p8316_p0, %p9777_p7 }
  0x7b   : > { %p8319_p13 = pneg %p8318_p8 }
  0x7d   : > { %p8324_p9 = pnand %p8322_p5, %p8319_p13 }
  0x7f   : > { %8327 = shalt.err (!%p8324_p9)
}
  0x80   : > { %s8328_s22 = scalar_lea.vmem %s346_s17, 1024  ;;  %p8336_p12 = scmp.lt.s32.totalorder %s346_s17, %s346_s17 }
  0x81   : > { %p8329_p3 = scmp.ne.s32.totalorder %s346_s17, %s8328_s22  ;;  %p8337_p2 = scmp.lt.s32.totalorder %s8328_s22, %s8328_s22 }
  0x83   : > { %p8331_p6 = pnand %p8329_p3, %p9777_p7  ;;  %p8338_p11 = por %p8337_p2, %p8336_p12 }
  0x85   : > { %p8332_p4 = pneg %p8331_p6 }
  0x87   : > { %p8339_p10 = pnand %p8338_p11, %p8332_p4 }
  0x89   : > { %8342 = shalt.err (!%p8339_p10)
}
  0x8a   : > { %7768 = dma.hbm_to_vmem [thread:$0]  (!%p9778_p1), %s9718_s7, 1024, %s346_s17, [#allocation14], %s9776_s26, %s9776_s26, %s9775_s29  }
  0x8b   : > { %s6413_s30 = sshll.u32 %s8683_s16, 7  ;;  %s8798_s12 = scalar_lea.hbm %s9711_s0, %s8688_s20 }
  0x8c   : > { %s6855_s24 = sadd.s32 1920, %s8688_s20  ;;  %s366_s27 = scalar_lea.vmem [#allocation4], %s6413_s30 }
  0x8d   : > { %s376_s23 = sshll.u32 %s366_s27, 4  ;;  %s8804_s25 = scalar_lea.hbm %s9713_s2, %s6855_s24  ;;  %s8806_s23 = int_to_ptr.vmem [resolvable:$true] %s376_s23 }
  0x8e   : > { %s363_s17 = scalar_lea.sflag [#allocation5], %s8683_s16  ;;  %s8343_s22 = scalar_lea.hbm %s8798_s12, 2048 }
  0x8f   : > { %p8344_p10 = scmp.ne.s32.totalorder %s8798_s12, %s8343_s22  ;;  %p9779_p7 = scmp.ne.s32.totalorder %s9774_s28, 0 }
  0x90   : > { %s8348_s6 = scalar_lea.hbm %s9711_s0, 4096  ;;  %p8349_p8 = scmp.lt.u32.totalorder %s8798_s12, %s9711_s0 }
  0x91   : > { %p8346_p1 = pnand %p8344_p10, %p9779_p7  ;;  %p8350_p13 = scmp.lt.u32.totalorder %s8348_s6, %s8343_s22 }
  0x92   : > { %p8352_p9 = scmp.lt.u32.totalorder %s8343_s22, %s8798_s12 }
  0x93   : > { %p8347_p0 = pneg %p8346_p1  ;;  %p8351_p5 = por %p8350_p13, %p8349_p8 }
  0x95   : > { %p8353_p3 = por %p8352_p9, %p8351_p5 }
  0x97   : > { %p8354_p6 = pnand %p8353_p3, %p8347_p0 }
  0x99   : > { %8357 = shalt.err (!%p8354_p6)
}
  0x9a   : > { %s8358_s8 = scalar_lea.vmem %s8806_s23, 2048  ;;  %s8505_s24 = smov [#allocation4]  }
  0x9b   : > { %p8359_p4 = scmp.ne.s32.totalorder %s8806_s23, %s8358_s8  ;;  %s8363_s27 = sshll.u32 %s8505_s24, 4  ;;  %s8364_s27 = int_to_ptr.vmem [resolvable:$false] %s8363_s27 }
  0x9c   : > { %s8365_s11 = scalar_lea.vmem %s8364_s27, 4096  ;;  %p8366_p11 = scmp.lt.s32.totalorder %s8806_s23, %s8364_s27 }
  0x9d   : > { %p8361_p12 = pnand %p8359_p4, %p9779_p7  ;;  %p8367_p10 = scmp.lt.s32.totalorder %s8365_s11, %s8358_s8 }
  0x9f   : > { %p8362_p2 = pneg %p8361_p12  ;;  %p8368_p1 = por %p8367_p10, %p8366_p11 }
  0xa1   : > { %p8369_p8 = pnand %p8368_p1, %p8362_p2 }
  0xa3   : > { %8372 = shalt.err (!%p8369_p8)
}
  0xa4   : > { %p9780_p0 = scmp.ne.s32.totalorder %s9770_s19, 0  ;;  %s8373_s3 = scalar_lea.hbm %s8804_s25, 128 }
  0xa5   : > { %p8374_p13 = scmp.ne.s32.totalorder %s8804_s25, %s8373_s3  ;;  %s8378_s1 = scalar_lea.hbm %s9713_s2, 4096 }
  0xa6   : > { %7772 = dma.hbm_to_vmem [thread:$0]  (!%p9780_p0), %s8798_s12, 2048, %s8806_s23, %s363_s17, %s9776_s26, %s9776_s26, %s9775_s29  }
  0xa7   : > { %p8376_p5 = pnand %p8374_p13, %p9779_p7  ;;  %p8379_p3 = scmp.lt.u32.totalorder %s8804_s25, %s9713_s2 }
  0xa8   : > { %p8380_p6 = scmp.lt.u32.totalorder %s8378_s1, %s8373_s3  ;;  %p8382_p12 = scmp.lt.u32.totalorder %s8373_s3, %s8804_s25 }
  0xa9   : > { %p8377_p9 = pneg %p8376_p5 }
  0xaa   : > { %p8381_p4 = por %p8380_p6, %p8379_p3 }
  0xac   : > { %p8383_p2 = por %p8382_p12, %p8381_p4 }
  0xae   : > { %p8384_p11 = pnand %p8383_p2, %p8377_p9 }
  0xb0   : > { %8387 = shalt.err (!%p8384_p11)
}
  0xb1   : > { %s8388_s16 = scalar_lea.vmem %s8749_s13, 128  ;;  %s8506_s12 = smov [#allocation9]  }
  0xb2   : > { %p8389_p10 = scmp.ne.s32.totalorder %s8749_s13, %s8388_s16  ;;  %s8393_s23 = sshll.u32 %s8506_s12, 4  ;;  %s8394_s23 = int_to_ptr.vmem [resolvable:$false] %s8393_s23 }
  0xb3   : > { %s8395_s17 = scalar_lea.vmem %s8394_s23, 256  ;;  %p8396_p13 = scmp.lt.s32.totalorder %s8749_s13, %s8394_s23 }
  0xb4   : > { %p8391_p1 = pnand %p8389_p10, %p9779_p7  ;;  %p8397_p5 = scmp.lt.s32.totalorder %s8395_s17, %s8388_s16 }
  0xb6   : > { %p8392_p8 = pneg %p8391_p1  ;;  %p8398_p3 = por %p8397_p5, %p8396_p13 }
  0xb8   : > { %p8399_p6 = pnand %p8398_p3, %p8392_p8 }
  0xba   : > { %8402 = shalt.err (!%p8399_p6)
}
  0xbb   : > { %7778 = dma.hbm_to_vmem [thread:$0]  (!%p9780_p0), %s8804_s25, 128, %s8749_s13, %s8714_s14, %s9776_s26, %s9776_s26, %s9775_s29  }
  0xbc   : > { %p9781_p7 = scmp.ne.s32.totalorder %s9764_s21, 0 }
  0xbd   : > { %s8863_s28 = sand.u32 (!%p9781_p7), 1, %s8481_s10   ;;  %p9782_p9 = scmp.ne.s32.totalorder (!%p9781_p7), %s9759_s18, 0 }
  0xbe   : > { %442 = sbr.rel (%p9781_p7) target bundleno = 1255 (0x4e7), region = 56  ;;  %s6423_s30 = sshll.u32 (!%p9781_p7), %s8863_s28, 7 }
  0xbf   : > { %s445_s8 = scalar_lea.sflag (!%p9781_p7), [#allocation5], %s8863_s28  ;;  %s8869_s19 = scalar_lea.vmem (!%p9781_p7), [#allocation4], %s6423_s30 }
  0xc5   : > { %8456 = dma.done.wait (%p9782_p9), %s445_s8, 2048  }
  0xc6   : > { %8458 = vsyncadd (%p9782_p9), %s445_s8, 4294965248  ;;  %s453_s13 = sand.u32 1, %s8594_s15   ;;  %s6424_s14 = sshll.u32 %s8863_s28, 3 }
  0xc7   : > { %s454_s21 = scalar_lea.sflag [#allocation8], %s453_s13  ;;  %s8877_s29 = scalar_lea.vmem [#allocation7], %s6424_s14 }
  0xc8   : > { %8460 = dma.done.wait (%p9782_p9), %s454_s21, 256  }
  0xc9   : > { %8462 = vsyncadd (%p9782_p9), %s454_s21, 4294967040  ;;  %s8883_s26 = scalar_lea.vmem [#allocation9], %s6424_s14  ;;  %p9783_p0 = scmp.eq.s32.totalorder %s8594_s15, 0 }
  0xcb   : > { %8464 = dma.done.wait (%p9783_p0), [#allocation11], 10240   ;;  %p9784_p4 = pmov %p9783_p0 }
  0xcc   : > { %p9785_p12 = pmov %p9783_p0 }
  0xcd   : > { %8466 = vsyncadd (%p9784_p4), [#allocation11], 4294957056 }
  0xce   : > { %8468 = dma.done.wait (%p9785_p12), [#allocation14], 1024   ;;  %p9786_p2 = pmov %p9783_p0 }
  0xcf   : > { %v8507_v0 = vmov 0.0   ;;  %vm8508_vm0 = vmmov 0   ;;  %v7849_v1 = vld [vmem:[#allocation10] sm:$0xff]   ;;  %v7850_v2 = vld [vmem:[#allocation10 + $0x8] sm:$0xff]   ;;  %v7851_v3 = vld [vmem:[#allocation10 + $0x10] sm:$0xff]   ;;  %vm1040_vm1 = vcmask 1040384  }
  0xd0   : > { %8470 = vsyncadd (%p9786_p2), [#allocation14], 4294966272  ;;  %7603 = vmatprep.subr.bf16.mxu1 %v8507_v0  ;;  %7619 = vmatprep.mubr.msk.bf16.mxu1 %vm8508_vm0, %v8507_v0  ;;  %v8898_v4 = vld [vmem:[#allocation10 + $0x18] sm:$0xff]   ;;  %v551_v5 = vld [vmem:[%s8869_s19] sm:$0xff]   ;;  %vm1041_vm2 = vsmask.f32 256 }
  0xd1   : > { %7555 = vmatprep.subr.bf16.mxu0 %v7849_v1  ;;  %7604 = vmatpush3.bf16.msra.mxu1 %v7849_v1  ;;  %v8902_v6 = vld [vmem:[#allocation10 + $0x20] sm:$0xff]   ;;  %v8909_v7 = vld [vmem:[#allocation10 + $0x28] sm:$0xff]   ;;  %v8915_v8 = vld [vmem:[#allocation10 + $0x30] sm:$0xff]   ;;  %vm1097_vm3 = vsmask.f32 7938  ;;  %v8509_v47 = vmov 0.0|0.0  }
  0xd2   : > { %7556 = vmatpush3.bf16.msra.mxu0 %v7849_v1  ;;  %7605 = vmatprep.subr.bf16.mxu1 %v8507_v0  ;;  %v8921_v9 = vld [vmem:[#allocation10 + $0x38] sm:$0xff]   ;;  %v553_v10 = vld [vmem:[%s8869_s19 + $0x8] sm:$0xff]   ;;  %v555_v11 = vld [vmem:[%s8869_s19 + $0x10] sm:$0xff]   ;;  %v6457_v48 = vcombine.low %v8509_v47, %v8509_v47  ;;  %v6458_v49 = vcombine.high %v8509_v47, %v8509_v47  ;;  %vm1181_vm6 = vcmask 1043456   ;;  %vm1159_vm7 = vsmask.f32 4368 }
  0xd3   : > { %7557 = vmatprep.subr.bf16.mxu0 %v7850_v2  ;;  %7571 = vmatprep.mubr.bf16.mxu0 %v551_v5  ;;  %v7873_v12 = vld [vmem:[#allocation12 + $0x40] sm:$0xff]   ;;  %v7876_v15 = vld [vmem:[#allocation12 + $0x48] sm:$0xff]   ;;  %v557_v16 = vld [vmem:[%s8869_s19 + $0x18] sm:$0xff]   ;;  %vm2073_vm10 = vsmask.f32 7424  ;;  %vm2474_vm11 = vcmask 1046528  }
  0xd4   : > { %v7875_v13 = vld [vmem:[%s8877_s29] sm:$0xff]   ;;  %v7878_v19 = vld [vmem:[#allocation12 + $0x50] sm:$0xff]   ;;  %v7880_v21 = vld [vmem:[#allocation12 + $0x58] sm:$0xff]   ;;  %v1162_v53 = vshrl.u32 %v6457_v48, 16  ;;  %v1170_v56 = vshrl.u32 %v6458_v49, 16  ;;  %v1165_v61 = vshll.u32 %v6457_v48, 16 }
  0xd5   : > { %7606 = vmatpush3.bf16.msra.mxu1 %v7850_v2  ;;  %v7874_v14 = vld [vmem:[#allocation12] sm:$0xff]   ;;  %v7877_v17 = vld [vmem:[#allocation12 + $0x8] sm:$0xff]   ;;  %v7879_v20 = vld [vmem:[#allocation12 + $0x10] sm:$0xff]   ;;  %s9795_s3 = sld [smem:[#allocation32_spill]]  ;;  %s9796_s20 = sld [smem:[#allocation33_spill]] }
  0xd6   : > { %7558 = vmatpush3.bf16.msra.mxu0 %v7850_v2  ;;  %7607 = vmatprep.subr.bf16.mxu1 %v8507_v0  ;;  %v559_v18 = vld [vmem:[%s8869_s19 + $0x20] sm:$0xff]   ;;  %v561_v22 = vld [vmem:[%s8869_s19 + $0x28] sm:$0xff]   ;;  %v563_v23 = vld [vmem:[%s8869_s19 + $0x30] sm:$0xff]   ;;  %v1164_v60 = vrot.slane %v1162_v53, 7  ;;  %s9599_s16 = scalar_lea.vmem [#allocation15], %s6423_s30  ;;  %s9797_s12 = sld [smem:[#allocation23_spill]] }
  0xd7   : > { %7559 = vmatprep.subr.bf16.mxu0 %v7851_v3  ;;  %v7881_v24 = vld [vmem:[#allocation12 + $0x18] sm:$0xff]   ;;  %v7882_v25 = vld [vmem:[#allocation12 + $0x60] sm:$0xff]   ;;  %v569_v29 = vld [vmem:[%s8869_s19 + $0x48] sm:$0xff]   ;;  %s9798_s23 = sld [smem:[#allocation26_spill]]  ;;  %s6241_s30 = sshll.u32 %s9599_s16, 4  ;;  %s9660_s30 = int_to_ptr.vmem [resolvable:$true] %s6241_s30 }
  0xd8   : > { %v7883_v26 = vld [vmem:[#allocation12 + $0x20] sm:$0xff]   ;;  %v565_v27 = vld [vmem:[%s8869_s19 + $0x38] sm:$0xff]   ;;  %v571_v31 = vld [vmem:[%s8869_s19 + $0x50] sm:$0xff]   ;;  %s9799_s13 = sld [smem:[#allocation34_spill]]  ;;  %s6225_s29 = scalar_lea.sflag [#allocation6], %s8863_s28 }
  0xd9   : > { %7608 = vmatpush3.bf16.msra.mxu1 %v7851_v3  ;;  %v567_v28 = vld [vmem:[%s8869_s19 + $0x40] sm:$0xff]   ;;  %v7885_v32 = vld [vmem:[%s8883_s26] sm:$0xff]   ;;  %v577_v36 = vld [vmem:[%s8869_s19 + $0x68] sm:$0xff]   ;;  %s8403_s26 = scalar_lea.vmem %s9660_s30, 2048  ;;  %s8510_s15 = smov [#allocation15]  }
  0xda   : > { %7560 = vmatpush3.bf16.msra.mxu0 %v7851_v3  ;;  %7609 = vmatprep.subr.bf16.mxu1 %v8507_v0  ;;  %v7884_v30 = vld [vmem:[#allocation12 + $0xc0] sm:$0xff]   ;;  %v573_v34 = vld [vmem:[%s8869_s19 + $0x58] sm:$0xff]   ;;  %v579_v37 = vld [vmem:[%s8869_s19 + $0x70] sm:$0xff]   ;;  %p8404_p11 = scmp.ne.s32.totalorder %s9660_s30, %s8403_s26  ;;  %s8407_s18 = sshll.u32 %s8510_s15, 4  ;;  %s8408_s18 = int_to_ptr.vmem [resolvable:$false] %s8407_s18 }
  0xdb   : > { %7561 = vmatprep.subr.bf16.mxu0 %v8898_v4  ;;  %v7886_v33 = vld [vmem:[#allocation12 + $0x80] sm:$0xff]   ;;  %v581_v38 = vld [vmem:[%s8869_s19 + $0x78] sm:$0xff]   ;;  %vm8962_vm4 = vmand %vm1040_vm1, %vm1041_vm2  ;;  %s8409_s25 = scalar_lea.vmem %s8408_s18, 4096  ;;  %p8410_p13 = scmp.lt.s32.totalorder %s9660_s30, %s8408_s18 }
  0xdc   : > { %v575_v35 = vld [vmem:[%s8869_s19 + $0x60] sm:$0xff]   ;;  %v7887_v40 = vld [vmem:[#allocation12 + $0xc8] sm:$0xff]   ;;  %vm8967_vm5 = vmand %vm1040_vm1, %vm1097_vm3  ;;  %s6920_s17 = sshll.u32 %s9797_s12, 11  ;;  %p8411_p5 = scmp.lt.s32.totalorder %s8409_s25, %s8403_s26 }
  0xdd   : > { %7610 = vmatpush3.bf16.msra.mxu1 %v8898_v4  ;;  %v7888_v41 = vld [vmem:[#allocation12 + $0x88] sm:$0xff]   ;;  %v7891_v45 = vld [vmem:[#allocation12 + $0xd0] sm:$0xff]   ;;  %v1049_v52 = vld [vmem:[#allocation2 + $0x18] sm:$0x1]  ;;  %p9801_p10 = scmp.ne.s32.totalorder %s9798_s23, 0 }
  0xde   : > { %7562 = vmatpush3.bf16.msra.mxu0 %v8898_v4  ;;  %7611 = vmatprep.subr.bf16.mxu1 %v8507_v0  ;;  %v1043_v43 = vld [vmem:[#allocation2] sm:$0x1]  ;;  %v1099_v46 = vld [vmem:[#allocation2 + $0x8] sm:$0x1]  ;;  %v1050_v54 = vsel %vm8962_vm4, 0, %v1049_v52  ;;  %v7893_v59 = vld [vmem:[#allocation12 + $0xd8] sm:$0xff]   ;;  %s9800_s21 = smov %s9799_s13  ;;  %s9658_s14 = scalar_lea.hbm %s9799_s13, %s6920_s17 }
  0xdf   : > { %7563 = vmatprep.subr.bf16.mxu0 %v8902_v6  ;;  %v1044_v44 = vsel %vm8962_vm4, 0, %v1043_v43  ;;  %v7892_v50 = vld [vmem:[#allocation12 + $0x90] sm:$0xff]   ;;  %v1100_v51 = vsel %vm8967_vm5, 0, %v1099_v46  ;;  %1051 = vst [vmem:[#allocation2 + $0x18] sm:$0x1] %v1050_v54  ;;  %vm8981_vm8 = vmand %vm1181_vm6, %vm1097_vm3  ;;  %v7910_v52 = vld [vmem:[#allocation12 + $0x140] sm:$0xff]   ;;  %p8405_p1 = pnand %p8404_p11, %p9801_p10  ;;  %p8412_p3 = por %p8411_p5, %p8410_p13 }
  0xe0   : > { %1045 = vst [vmem:[#allocation2] sm:$0x1] %v1044_v44  ;;  %1101 = vst [vmem:[#allocation2 + $0x8] sm:$0x1] %v1100_v51  ;;  %v1046_v55 = vld [vmem:[#allocation2 + $0xc] sm:$0x1] }
  0xe1   : > { %7612 = vmatpush3.bf16.msra.mxu1 %v8902_v6  ;;  %v1047_v57 = vsel %vm8962_vm4, 0, %v1046_v55  ;;  %v1105_v58 = vld [vmem:[#allocation2 + $0x20] sm:$0x1]  ;;  %vm8991_vm9 = vmor %vm1041_vm2, %vm1159_vm7  ;;  %v7908_v44 = vld [vmem:[#allocation12 + $0xf8] sm:$0xff]   ;;  %p8406_p8 = pneg %p8405_p1 }
  0xe2   : > { %7564 = vmatpush3.bf16.msra.mxu0 %v8902_v6  ;;  %7613 = vmatprep.subr.bf16.mxu1 %v8507_v0  ;;  %1048 = vst [vmem:[#allocation2 + $0xc] sm:$0x1] %v1047_v57  ;;  %v1106_v63 = vsel %vm8967_vm5, 0, %v1105_v58  ;;  %v1058_v51 = vld [vmem:[#allocation2 + $0x3c] sm:$0x1] }
  0xe3   : > { %7565 = vmatprep.subr.bf16.mxu0 %v8909_v7  ;;  %1107 = vst [vmem:[#allocation2 + $0x20] sm:$0x1] %v1106_v63  ;;  %v1117_v53 = vld [vmem:[#allocation2 + $0x50] sm:$0x1]  ;;  %v1059_v54 = vsel %vm8962_vm4, 0, %v1058_v51  ;;  %v7912_v58 = vld [vmem:[#allocation12 + $0x100] sm:$0xff]   ;;  %p8413_p6 = pnand %p8412_p3, %p8406_p8 }
  0xe4   : > { %v1118_v55 = vsel %vm8967_vm5, 0, %v1117_v53  ;;  %1060 = vst [vmem:[#allocation2 + $0x3c] sm:$0x1] %v1059_v54  ;;  %v1144_v51 = vld [vmem:[#allocation2 + $0xbc] sm:$0x1]  ;;  %v8000_v54 = vld [vmem:[#allocation12 + $0x170] sm:$0xff]  }
  0xe5   : > { %7614 = vmatpush3.bf16.msra.mxu1 %v8909_v7  ;;  %1119 = vst [vmem:[#allocation2 + $0x50] sm:$0x1] %v1118_v55  ;;  %v9070_v53 = vld [vmem:[%s9715_s4] ss:$0 sm:$0xff] }
  0xe6   : > { %7566 = vmatpush3.bf16.msra.mxu0 %v8909_v7  ;;  %7615 = vmatprep.subr.bf16.mxu1 %v8507_v0 }
  0xe7   : > { %7567 = vmatprep.subr.bf16.mxu0 %v8915_v8 }
  0xe9   : > { %7616 = vmatpush3.bf16.msra.mxu1 %v8915_v8 }
  0xea   : > { %7568 = vmatpush3.bf16.msra.mxu0 %v8915_v8  ;;  %7617 = vmatprep.subr.bf16.mxu1 %v8507_v0 }
  0xeb   : > { %7569 = vmatprep.subr.bf16.mxu0 %v8921_v9 }
  0xed   : > { %7618 = vmatpush3.bf16.msra.mxu1 %v8921_v9 }
  0xee   : > { %7570 = vmatpush3.bf16.msra.mxu0 %v8921_v9  ;;  %7623 = vmatprep.subr.bf16.mxu1 %v8507_v0 }
  0xef   : > { %7059 = vmatprep.subr.bf16.mxu0 %v7873_v12 }
  0xf0   : > { %7620 = vmatmul.mubr.bf16.vlgmr.msra.gmra.mrb[0].mxu1 %v7875_v13  ;;  %v7890_v13 = vld [vmem:[#allocation12 + $0x28] sm:$0xff]  }
  0xf1   : > { %7572 = vmatmul.mubr.bf16.vlgmr.msra.gmra.mrb[0].mxu0 %v553_v10  ;;  %7624 = vmatpush3.bf16.msra.mxu1 %v7849_v1  ;;  %v7894_v1 = vld [vmem:[#allocation12 + $0x98] sm:$0xff]   ;;  %v7889_v10 = vld [vmem:[#allocation12 + $0x68] sm:$0xff]  }
  0xf2   : > { %7575 = vmatprep.mubr.bf16.mxu0 %v555_v11  ;;  %7060 = vmatpush3.bf16.msra.mxu0 %v7874_v14 }
  0xf3   : > { %7625 = vmatprep.subr.bf16.mxu1 %v8507_v0  ;;  %7061 = vmatprep.subr.bf16.mxu0 %v7876_v15  ;;  %v1187_v15 = vld [vmem:[#allocation2 + $0x8] sm:$0x1] }
  0xf4   : > { %7639 = vmatprep.mubr.msk.bf16.mxu1 %vm8508_vm0, %v8507_v0 }
  0xf5   : > { %7626 = vmatpush3.bf16.msra.mxu1 %v7850_v2  ;;  %v8987_v2 = vrot.slane %v1170_v56, 7  ;;  %v1114_v56 = vld [vmem:[#allocation2 + $0x44] sm:$0x1] }
  0xf6   : > { %7062 = vmatpush3.bf16.msra.mxu0 %v7877_v17  ;;  %7627 = vmatprep.subr.bf16.mxu1 %v8507_v0  ;;  %v7895_v17 = vld [vmem:[#allocation12 + $0x70] sm:$0xff]   ;;  %v1115_v57 = vsel %vm8967_vm5, 0, %v1114_v56 }
  0xf7   : > { %7063 = vmatprep.subr.bf16.mxu0 %v7878_v19  ;;  %v1177_v11 = vrot.slane %v8987_v2, 4  ;;  %v7898_v19 = vld [vmem:[#allocation12 + $0xa0] sm:$0xff]   ;;  %1116 = vst [vmem:[#allocation2 + $0x44] sm:$0x1] %v1115_v57  ;;  %v8002_v57 = vld [vmem:[#allocation12 + $0x130] sm:$0xff]  }
  0xf9   : > { %7576 = vmatmul.mubr.bf16.gmra.mrb[4].mxu0 %v557_v16  ;;  %7628 = vmatpush3.bf16.msra.mxu1 %v7851_v3  ;;  %v1173_v3 = vshll.u32 %v6458_v49, 16  ;;  %v1188_v16 = vsel %vm8962_vm4, %v1177_v11, %v1187_v15  ;;  %v1061_v49 = vld [vmem:[#allocation2 + $0x48] sm:$0x1]  ;;  %v1129_v15 = vld [vmem:[#allocation2 + $0x80] sm:$0x1] }
  0xfa   : > { %7579 = vmatprep.mubr.bf16.mxu0 %v559_v18  ;;  %7629 = vmatprep.subr.bf16.mxu1 %v8507_v0  ;;  %1189 = vst [vmem:[#allocation2 + $0x8] sm:$0x1] %v1188_v16  ;;  %v7897_v18 = vld [vmem:[#allocation12 + $0xe0] sm:$0xff]   ;;  %v1130_v16 = vsel %vm8967_vm5, 0, %v1129_v15 }
  0xfb   : > { %7064 = vmatpush3.bf16.msra.mxu0 %v7879_v20  ;;  %v1055_v20 = vld [vmem:[#allocation2 + $0x30] sm:$0x1]  ;;  %1131 = vst [vmem:[#allocation2 + $0x80] sm:$0x1] %v1130_v16 }
  0xfc   : > { %7065 = vmatprep.subr.bf16.mxu0 %v7880_v21  ;;  %v1052_v21 = vld [vmem:[#allocation2 + $0x24] sm:$0x1] }
  0xfd   : > { %7630 = vmatpush3.bf16.msra.mxu1 %v8898_v4 }
  0xfe   : > { %7631 = vmatprep.subr.bf16.mxu1 %v8507_v0 }
  0xff   : > { %7066 = vmatpush3.bf16.msra.mxu0 %v7881_v24  ;;  %v7899_v24 = vld [vmem:[#allocation12 + $0xe8] sm:$0xff]  }
 0x100   : > { %7067 = vmatprep.subr.bf16.mxu0 %v7882_v25  ;;  %v7896_v25 = vld [vmem:[#allocation12 + $0x30] sm:$0xff]  }
 0x101   : > { %7580 = vmatmul.mubr.bf16.gmra.mrb[8].mxu0 %v561_v22  ;;  %7632 = vmatpush3.bf16.msra.mxu1 %v8902_v6  ;;  %v8997_v6 = vor.u32 %v1165_v61, %v1164_v60  ;;  %v1056_v22 = vsel %vm8962_vm4, 0, %v1055_v20  ;;  %v1064_v61 = vld [vmem:[#allocation2 + $0x54] sm:$0x1]  ;;  %v1079_v20 = vld [vmem:[#allocation2 + $0x90] sm:$0x1] }
 0x102   : > { %7583 = vmatprep.mubr.bf16.mxu0 %v563_v23  ;;  %7633 = vmatprep.subr.bf16.mxu1 %v8507_v0  ;;  %v1053_v23 = vsel %vm8962_vm4, 0, %v1052_v21  ;;  %1057 = vst [vmem:[#allocation2 + $0x30] sm:$0x1] %v1056_v22  ;;  %v1065_v63 = vsel %vm8962_vm4, 0, %v1064_v61  ;;  %v1080_v21 = vsel %vm8962_vm4, 0, %v1079_v20 }
 0x103   : > { %7068 = vmatpush3.bf16.msra.mxu0 %v7883_v26  ;;  %1054 = vst [vmem:[#allocation2 + $0x24] sm:$0x1] %v1053_v23  ;;  %v7900_v26 = vld [vmem:[#allocation12 + $0xa8] sm:$0xff]   ;;  %1066 = vst [vmem:[#allocation2 + $0x54] sm:$0x1] %v1065_v63 }
 0x104   : > { %7069 = vmatprep.subr.bf16.mxu0 %v7889_v10  ;;  %1081 = vst [vmem:[#allocation2 + $0x90] sm:$0x1] %v1080_v21  ;;  %v1076_v22 = vld [vmem:[#allocation2 + $0x84] sm:$0x1] }
 0x105   : > { %7634 = vmatpush3.bf16.msra.mxu1 %v8909_v7  ;;  %v1168_v7 = vrot.slane %v1164_v60, 4  ;;  %v1077_v23 = vsel %vm8962_vm4, 0, %v1076_v22 }
 0x106   : > { %7635 = vmatprep.subr.bf16.mxu1 %v8507_v0  ;;  %1078 = vst [vmem:[#allocation2 + $0x84] sm:$0x1] %v1077_v23 }
 0x107   : > { %7070 = vmatpush3.bf16.msra.mxu0 %v7890_v13 }
 0x108   : > { %7071 = vmatprep.subr.bf16.mxu0 %v7895_v17  ;;  %v7940_v17 = vld [vmem:[#allocation12 + $0x110] sm:$0xff]  }
 0x109   : > { %7584 = vmatmul.mubr.bf16.gmra.mrb[12].mxu0 %v565_v27  ;;  %7636 = vmatpush3.bf16.msra.mxu1 %v8915_v8  ;;  %v1175_v8 = vor.u32 %v1173_v3, %v8987_v2 }
 0x10a   : > { %7587 = vmatprep.mubr.bf16.mxu0 %v567_v28  ;;  %7637 = vmatprep.subr.bf16.mxu1 %v8507_v0  ;;  %v1102_v0 = vld [vmem:[#allocation2 + $0x14] sm:$0x1]  ;;  %v7906_v28 = vld [vmem:[#allocation2 + $0x8] ss:$0 sps:$4 sm:$0x11]  }
 0x10b   : > { %v1103_v5 = vsel %vm8967_vm5, 0, %v1102_v0  ;;  %v1176_v14 = vsel %vm8991_vm9, %v1168_v7, %v1175_v8  ;;  %7072 = vmatpush3.bf16.msra.mxu0 %v7896_v25  ;;  %v7924_v0 = vld [vmem:[#allocation12 + $0x148] sm:$0xff]   ;;  %v1120_v7 = vld [vmem:[#allocation2 + $0x5c] sm:$0x1]  ;;  %v1135_v25 = vld [vmem:[#allocation2 + $0x98] sm:$0x1] }
 0x10c   : > { %1104 = vst [vmem:[#allocation2 + $0x14] sm:$0x1] %v1103_v5  ;;  %1186 = vst [vmem:[#allocation2 + $0x4] sm:$0xf] %v1176_v14  ;;  %v7926_v5 = vld [vmem:[#allocation12 + $0x108] sm:$0xff]   ;;  %v1121_v8 = vsel %vm8967_vm5, 0, %v1120_v7 }
 0x10d   : > { %7638 = vmatpush3.bf16.msra.mxu1 %v8921_v9  ;;  %v1183_v9 = vld [vmem:[#allocation2] sm:$0xf]  ;;  %1220 = vst [vmem:[#allocation2 + $0xd0] sm:$0xf] %v1176_v14  ;;  %1122 = vst [vmem:[#allocation2 + $0x5c] sm:$0x1] %v1121_v8 }
 0x10e   : > { %7171 = vmatprep.subr.bf16.mxu1 %v7884_v30  ;;  %v1184_v12 = vsel %vm8981_vm8, %v8997_v6, %v1183_v9  ;;  %v1108_v30 = vld [vmem:[#allocation2 + $0x2c] sm:$0x1]  ;;  %v1073_v9 = vld [vmem:[#allocation2 + $0x78] sm:$0x1] }
 0x10f   : > { %1185 = vst [vmem:[#allocation2] sm:$0xf] %v1184_v12  ;;  %v1074_v10 = vsel %vm8962_vm4, 0, %v1073_v9  ;;  %v1070_v12 = vld [vmem:[#allocation2 + $0x6c] sm:$0x1] }
 0x110   : > { %7640 = vmatmul.mubr.bf16.vlgmr.msra.gmra.mrb[4].mxu1 %v7885_v32  ;;  %1075 = vst [vmem:[#allocation2 + $0x78] sm:$0x1] %v1074_v10  ;;  %v1071_v13 = vsel %vm8962_vm4, 0, %v1070_v12  ;;  %v7938_v14 = vld [vmem:[#allocation12 + $0x150] sm:$0xff]  }
 0x111   : > { %7588 = vmatmul.mubr.bf16.gmra.mrb[16].mxu0 %v569_v29  ;;  %7172 = vmatpush3.bf16.msra.mxu1 %v7886_v33  ;;  %v1111_v29 = vld [vmem:[#allocation2 + $0x38] sm:$0x1]  ;;  %v1109_v33 = vsel %vm8967_vm5, 0, %v1108_v30  ;;  %1072 = vst [vmem:[#allocation2 + $0x6c] sm:$0x1] %v1071_v13 }
 0x112   : > { %7591 = vmatprep.mubr.bf16.mxu0 %v571_v31  ;;  %7173 = vmatprep.subr.bf16.mxu1 %v7887_v40  ;;  %v7901_v31 = vld [vmem:[#allocation12 + $0x78] sm:$0xff]   ;;  %v1112_v32 = vsel %vm8967_vm5, 0, %v1111_v29  ;;  %1110 = vst [vmem:[#allocation2 + $0x2c] sm:$0x1] %v1109_v33  ;;  %v2082_v40 = vshll.u32 %v7906_v28, 16  ;;  %v7966_v30 = vld [vmem:[#allocation12 + $0x1c0] sm:$0xff]  }
 0x113   : > { %1113 = vst [vmem:[#allocation2 + $0x38] sm:$0x1] %v1112_v32  ;;  %7073 = vmatprep.subr.bf16.mxu0 %v7901_v31  ;;  %v1132_v28 = vld [vmem:[#allocation2 + $0x8c] sm:$0x1]  ;;  %v1085_v31 = vld [vmem:[#allocation2 + $0xa8] sm:$0x1] }
 0x114   : > { %v2084_v43 = vrot.slane %v2082_v40, 1  ;;  %v1133_v29 = vsel %vm8967_vm5, 0, %v1132_v28  ;;  %v1086_v32 = vsel %vm8962_vm4, 0, %v1085_v31  ;;  %v1082_v33 = vld [vmem:[#allocation2 + $0x9c] sm:$0x1] }
 0x115   : > { %7174 = vmatpush3.bf16.msra.mxu1 %v7888_v41  ;;  %1134 = vst [vmem:[#allocation2 + $0x8c] sm:$0x1] %v1133_v29  ;;  %1087 = vst [vmem:[#allocation2 + $0xa8] sm:$0x1] %v1086_v32  ;;  %v1138_v40 = vld [vmem:[#allocation2 + $0xa4] sm:$0x1] }
 0x116   : > { %7175 = vmatprep.subr.bf16.mxu1 %v7891_v45  ;;  %v7905_v27 = vld [vmem:[#allocation2] sm:$0xff]   ;;  %v7909_v45 = vld [vmem:[#allocation12 + $0xb8] sm:$0xff]   ;;  %v9077_v9 = vld [vmem:[#allocation2 + $0x8] ss:$0 sps:$4 sm:$0x11]  }
 0x117   : > { %v7907_v47 = vld [vmem:[#allocation2] sm:$0xff]   ;;  %v2476_v20 = vrot.slane %v9077_v9, 1  ;;  %v1648_v31 = vld [vmem:[#allocation2 + $0x18] sm:$0xf] }
 0x119   : > { %7592 = vmatmul.mubr.bf16.gmra.mrb[20].mxu0 %v573_v34  ;;  %7176 = vmatpush3.bf16.msra.mxu1 %v7892_v50  ;;  %v7902_v34 = vld [vmem:[#allocation12 + $0x38] sm:$0xff]   ;;  %v1062_v50 = vsel %vm8962_vm4, 0, %v1061_v49 }
 0x11a   : > { %7595 = vmatprep.mubr.bf16.mxu0 %v575_v35  ;;  %7177 = vmatprep.subr.bf16.mxu1 %v7893_v59  ;;  %v7903_v35 = vld [vmem:[#allocation12 + $0xf0] sm:$0xff]   ;;  %1063 = vst [vmem:[#allocation2 + $0x48] sm:$0x1] %v1062_v50  ;;  %v1067_v59 = vld [vmem:[#allocation2 + $0x60] sm:$0x1] }
 0x11b   : > { %7074 = vmatpush3.bf16.msra.mxu0 %v7902_v34  ;;  %v1068_v60 = vsel %vm8962_vm4, 0, %v1067_v59  ;;  %v1083_v34 = vsel %vm8962_vm4, 0, %v1082_v33  ;;  %v7986_v50 = vld [vmem:[#allocation12 + $0x128] sm:$0xff]  }
 0x11c   : > { %7283 = vmatprep.subr.bf16.mxu0 %v7910_v52  ;;  %1069 = vst [vmem:[#allocation2 + $0x60] sm:$0x1] %v1068_v60  ;;  %1084 = vst [vmem:[#allocation2 + $0x9c] sm:$0x1] %v1083_v34  ;;  %v1145_v52 = vsel %vm8967_vm5, 0, %v1144_v51 }
 0x11d   : > { %7178 = vmatpush3.bf16.msra.mxu1 %v7894_v1  ;;  %v1123_v1 = vld [vmem:[#allocation2 + $0x68] sm:$0x1]  ;;  %1146 = vst [vmem:[#allocation2 + $0xbc] sm:$0x1] %v1145_v52 }
 0x11e   : > { %7179 = vmatprep.subr.bf16.mxu1 %v7897_v18  ;;  %v1124_v3 = vsel %vm8967_vm5, 0, %v1123_v1  ;;  %v1126_v18 = vld [vmem:[#allocation2 + $0x74] sm:$0x1]  ;;  %v9074_v1 = vld [vmem:[#allocation2] sm:$0xfe]  }
 0x11f   : > { %1125 = vst [vmem:[#allocation2 + $0x68] sm:$0x1] %v1124_v3 }
 0x121   : > { %7596 = vmatmul.mubr.bf16.gmra.mrb[24].mxu0 %v577_v36  ;;  %7180 = vmatpush3.bf16.msra.mxu1 %v7898_v19  ;;  %v7904_v36 = vld [vmem:[#allocation12 + $0xb0] sm:$0xff]   ;;  %v1127_v19 = vsel %vm8967_vm5, 0, %v1126_v18 }
 0x122   : > { %7599 = vmatprep.mubr.bf16.mxu0 %v579_v37  ;;  %7181 = vmatprep.subr.bf16.mxu1 %v7899_v24  ;;  %v2077_v37 = vshll.u32 %v7905_v27, 16  ;;  %1128 = vst [vmem:[#allocation2 + $0x74] sm:$0x1] %v1127_v19  ;;  %v7952_v24 = vld [vmem:[#allocation12 + $0x158] sm:$0xff]  }
 0x124   : > { %v2079_v41 = vrot.slane %v2077_v37, 1  ;;  %v7970_v37 = vld [vmem:[#allocation12 + $0x120] sm:$0xff]  }
 0x125   : > { %7182 = vmatpush3.bf16.msra.mxu1 %v7900_v26  ;;  %v1136_v26 = vsel %vm8967_vm5, 0, %v1135_v25 }
 0x126   : > { %7183 = vmatprep.subr.bf16.mxu1 %v7903_v35  ;;  %1137 = vst [vmem:[#allocation2 + $0x98] sm:$0x1] %v1136_v26  ;;  %v7968_v35 = vld [vmem:[#allocation12 + $0x160] sm:$0xff]  }
 0x129   : > { %7600 = vmatmul.mubr.bf16.gmra.mrb[28].mxu0 %v581_v38  ;;  %v2075_v38 = vshrl.u32 %v7905_v27, 16  ;;  %7184 = vmatpush3.bf16.msra.mxu1 %v7904_v36  ;;  %v7954_v27 = vld [vmem:[#allocation12 + $0x118] sm:$0xff]  }
 0x12a   : > { %7185 = vmatprep.subr.bf16.mxu1 %v7908_v44  ;;  %v1141_v36 = vld [vmem:[#allocation2 + $0xb0] sm:$0x1] }
 0x12b   : > { %v2080_v46 = vor.u32 %v2079_v41, %v2075_v38  ;;  %v1142_v38 = vsel %vm8967_vm5, 0, %v1141_v36  ;;  %v1139_v41 = vsel %vm8967_vm5, 0, %v1138_v40  ;;  %v1641_v40 = vld [vmem:[#allocation2 + $0xc] sm:$0xf] }
 0x12c   : > { %1143 = vst [vmem:[#allocation2 + $0xb0] sm:$0x1] %v1142_v38  ;;  %1140 = vst [vmem:[#allocation2 + $0xa4] sm:$0x1] %v1139_v41 }
 0x12d   : > { %v2085_v48 = vsel %vm2073_vm10, %v2080_v46, %v2084_v43  ;;  %7186 = vmatpush3.bf16.msra.mxu1 %v7909_v45  ;;  %v1091_v43 = vld [vmem:[#allocation2 + $0xc0] sm:$0x1]  ;;  %v1088_v45 = vld [vmem:[#allocation2 + $0xb4] sm:$0x1] }
 0x12e   : > { %4915 = vmatprep.mubr.bf16.mxu0 %v2085_v48  ;;  %7395 = vmatprep.subr.bf16.mxu1 %v7966_v30  ;;  %v1092_v44 = vsel %vm8962_vm4, 0, %v1091_v43  ;;  %v1089_v46 = vsel %vm8962_vm4, 0, %v1088_v45  ;;  %v1147_v48 = vld [vmem:[#allocation2 + $0xc8] sm:$0x1] }
 0x12f   : > { %1093 = vst [vmem:[#allocation2 + $0xc0] sm:$0x1] %v1092_v44  ;;  %1090 = vst [vmem:[#allocation2 + $0xb4] sm:$0x1] %v1089_v46  ;;  %v1148_v49 = vsel %vm8967_vm5, 0, %v1147_v48 }
 0x130   : > { %1149 = vst [vmem:[#allocation2 + $0xc8] sm:$0x1] %v1148_v49 }
 0x131   : > { %4916 = vmatmul.mubr.bf16.vlgmr.msra.gmra.mrb[32].mxu0 %v7907_v47  ;;  %v7984_v47 = vld [vmem:[#allocation12 + $0x168] sm:$0xff]  }
 0x132   : > { %7284 = vmatpush3.bf16.msra.mxu0 %v7912_v58 }
 0x133   : > { %7285 = vmatprep.subr.bf16.mxu0 %v7924_v0 }
 0x136   : > { %7286 = vmatpush3.bf16.msra.mxu0 %v7926_v5 }
 0x137   : > { %7287 = vmatprep.subr.bf16.mxu0 %v7938_v14 }
 0x13a   : > { %7288 = vmatpush3.bf16.msra.mxu0 %v7940_v17  ;;  %v2475_v17 = vrot.slane %v9074_v1, 1 }
 0x13b   : > { %7289 = vmatprep.subr.bf16.mxu0 %v7952_v24 }
 0x13e   : > { %7290 = vmatpush3.bf16.msra.mxu0 %v7954_v27 }
 0x13f   : > { %7291 = vmatprep.subr.bf16.mxu0 %v7968_v35 }
 0x142   : > { %7292 = vmatpush3.bf16.msra.mxu0 %v7970_v37 }
 0x143   : > { %7293 = vmatprep.subr.bf16.mxu0 %v7984_v47  ;;  %v1652_v47 = vld [vmem:[#allocation2 + $0x20] sm:$0x1] }
 0x146   : > { %7294 = vmatpush3.bf16.msra.mxu0 %v7986_v50 }
 0x147   : > { %7295 = vmatprep.subr.bf16.mxu0 %v8000_v54  ;;  %v1645_v54 = vld [vmem:[#allocation2 + $0x14] sm:$0x1] }
 0x14a   : > { %7296 = vmatpush3.bf16.msra.mxu0 %v8002_v57 }
 0x1c3   : > { %v968_v55 = vpop.f32.mrb[0].mxu1 }
 0x1c4   : > { %v7573_v56 = vpop.f32.mrb[0].mxu0  ;;  %v7621_v58 = vpop.f32.mrb[1].mxu1 }
 0x1c5   : > { %v776_v59 = vadd.f32 %v7573_v56, %v9070_v53  ;;  %v767_v60 = vpop.f32.mrb[1].mxu0  ;;  %v971_v61 = vpop.f32.mrb[2].mxu1 }
 0x1c6   : > { %v768_v63 = vadd.f32 %v9070_v53, %v767_v60  ;;  %v7574_v0 = vpop.f32.mrb[2].mxu0  ;;  %v7622_v3 = vpop.f32.mrb[3].mxu1 }
 0x1c7   : > { %v896_v5 = vmax.f32 %v776_v59, 0.0  ;;  %v779_v7 = vadd.f32 %v7574_v0, %v9070_v53  ;;  %v770_v8 = vpop.f32.mrb[3].mxu0  ;;  %v8016_v3 = vld [vmem:[#allocation12 + $0x178] sm:$0xff]  }
 0x1c8   : > { %v894_v10 = vmax.f32 %v768_v63, 0.0  ;;  %v771_v12 = vadd.f32 %v9070_v53, %v770_v8  ;;  %7297 = vmatprep.subr.bf16.mxu0 %v8016_v3 }
 0x1c9   : > { %v6858_v13 = vpack.c.bf16 %v896_v5, %v896_v5  ;;  %v897_v14 = vmax.f32 %v779_v7, 0.0 }
 0x1ca   : > { %v6856_v15 = vpack.c.bf16 %v894_v10, %v894_v10  ;;  %v895_v16 = vmax.f32 %v771_v12, 0.0 }
 0x1cb   : > { %v1338_v18 = vshrl.u32 %v6858_v13, 16  ;;  %v6859_v19 = vpack.c.bf16 %v897_v14, %v897_v14  ;;  %v1341_v21 = vshll.u32 %v6858_v13, 16  ;;  %v8018_v13 = vld [vmem:[#allocation12 + $0x138] sm:$0xff]  }
 0x1cc   : > { %v1321_v22 = vshrl.u32 %v6856_v15, 16  ;;  %v1324_v23 = vshll.u32 %v6856_v15, 16  ;;  %v6857_v24 = vpack.c.bf16 %v895_v16, %v895_v16  ;;  %v7577_v25 = vpop.f32.mrb[4].mxu0  ;;  %7298 = vmatpush3.bf16.msra.mxu0 %v8018_v13 }
 0x1cd   : > { %v1340_v26 = vrot.slane %v1338_v18, 7  ;;  %v1346_v27 = vshrl.u32 %v6859_v19, 16  ;;  %v1349_v28 = vshll.u32 %v6859_v19, 16  ;;  %v792_v29 = vadd.f32 %v7577_v25, %v9070_v53  ;;  %v783_v30 = vpop.f32.mrb[5].mxu0 }
 0x1ce   : > { %v1323_v32 = vrot.slane %v1321_v22, 7  ;;  %v1329_v33 = vshrl.u32 %v6857_v24, 16  ;;  %v1332_v34 = vshll.u32 %v6857_v24, 16  ;;  %v784_v35 = vadd.f32 %v9070_v53, %v783_v30  ;;  %v7578_v36 = vpop.f32.mrb[6].mxu0 }
 0x1cf   : > { %v1343_v37 = vor.u32 %v1341_v21, %v1340_v26  ;;  %v1344_v38 = vrot.slane %v1340_v26, 4  ;;  %v1348_v41 = vrot.slane %v1346_v27, 7  ;;  %v900_v43 = vmax.f32 %v792_v29, 0.0  ;;  %v786_v44 = vpop.f32.mrb[7].mxu0  ;;  %v1662_v21 = vld [vmem:[#allocation2 + $0x30] sm:$0xf] }
 0x1d0   : > { %v1326_v45 = vor.u32 %v1324_v23, %v1323_v32  ;;  %v1327_v46 = vrot.slane %v1323_v32, 4  ;;  %v1331_v48 = vrot.slane %v1329_v33, 7  ;;  %v898_v49 = vmax.f32 %v784_v35, 0.0 }
 0x1d1   : > { %v1649_v50 = vsel %vm8981_vm8, %v1343_v37, %v1648_v31  ;;  %v1351_v51 = vor.u32 %v1349_v28, %v1348_v41  ;;  %v1353_v52 = vrot.slane %v1348_v41, 4  ;;  %v6862_v55 = vpack.c.bf16 %v900_v43, %v900_v43  ;;  %v1655_v28 = vld [vmem:[#allocation2 + $0x24] sm:$0xf] }
 0x1d2   : > { %1650 = vst [vmem:[#allocation2 + $0x18] sm:$0xf] %v1649_v50  ;;  %v1642_v56 = vsel %vm8981_vm8, %v1326_v45, %v1641_v40  ;;  %v1334_v57 = vor.u32 %v1332_v34, %v1331_v48  ;;  %v1336_v58 = vrot.slane %v1331_v48, 4  ;;  %v6860_v59 = vpack.c.bf16 %v898_v49, %v898_v49 }
 0x1d3   : > { %1643 = vst [vmem:[#allocation2 + $0xc] sm:$0xf] %v1642_v56  ;;  %v1352_v60 = vsel %vm8991_vm9, %v1344_v38, %v1351_v51  ;;  %v1653_v61 = vsel %vm8962_vm4, %v1353_v52, %v1652_v47  ;;  %v1372_v63 = vshrl.u32 %v6862_v55, 16  ;;  %v1375_v0 = vshll.u32 %v6862_v55, 16  ;;  %v1659_v47 = vld [vmem:[#allocation2 + $0x2c] sm:$0x1] }
 0x1d4   : > { %1651 = vst [vmem:[#allocation2 + $0x1c] sm:$0xf] %v1352_v60  ;;  %1654 = vst [vmem:[#allocation2 + $0x20] sm:$0x1] %v1653_v61  ;;  %v1335_v5 = vsel %vm8991_vm9, %v1327_v46, %v1334_v57  ;;  %v1646_v7 = vsel %vm8962_vm4, %v1336_v58, %v1645_v54  ;;  %v1355_v8 = vshrl.u32 %v6860_v59, 16  ;;  %v1358_v10 = vshll.u32 %v6860_v59, 16 }
 0x1d5   : > { %v7581_v12 = vpop.f32.mrb[8].mxu0  ;;  %1644 = vst [vmem:[#allocation2 + $0x10] sm:$0xf] %v1335_v5  ;;  %1647 = vst [vmem:[#allocation2 + $0x14] sm:$0x1] %v1646_v7  ;;  %v9096_v14 = vrot.slane %v1372_v63, 7  ;;  %v795_v15 = vadd.f32 %v7578_v36, %v9070_v53  ;;  %v787_v16 = vadd.f32 %v9070_v53, %v786_v44  ;;  %v2477_v25 = vsel %vm2474_vm11, %v2475_v17, %v2476_v20 }
 0x1d6   : > { %v808_v18 = vadd.f32 %v7581_v12, %v9070_v53  ;;  %v799_v19 = vpop.f32.mrb[9].mxu0  ;;  %v9101_v22 = vrot.slane %v1355_v8, 7  ;;  %v1666_v46 = vld [vmem:[#allocation2 + $0x38] sm:$0x1]  ;;  %v1676_v56 = vld [vmem:[#allocation2 + $0x48] sm:$0xf] }
 0x1d7   : > { %v800_v23 = vadd.f32 %v9070_v53, %v799_v19  ;;  %v7582_v24 = vpop.f32.mrb[10].mxu0  ;;  %v1377_v26 = vor.u32 %v1375_v0, %v9096_v14  ;;  %v1378_v27 = vrot.slane %v9096_v14, 4  ;;  %v901_v29 = vmax.f32 %v795_v15, 0.0  ;;  %v7967_v52 = vld [vmem:[#allocation12 + $0x180] sm:$0xff]   ;;  %v7982_v63 = vld [vmem:[#allocation12 + $0x1c8] sm:$0xff]  }
 0x1d8   : > { %v899_v30 = vmax.f32 %v787_v16, 0.0  ;;  %v802_v31 = vpop.f32.mrb[11].mxu0  ;;  %v1360_v32 = vor.u32 %v1358_v10, %v9101_v22  ;;  %v1361_v33 = vrot.slane %v9101_v22, 4  ;;  %v904_v34 = vmax.f32 %v808_v18, 0.0  ;;  %v1669_v57 = vld [vmem:[#allocation2 + $0x3c] sm:$0xf] }
 0x1d9   : > { %v902_v35 = vmax.f32 %v800_v23, 0.0  ;;  %v1663_v1 = vsel %vm8981_vm8, %v1377_v26, %v1662_v21  ;;  %v6863_v9 = vpack.c.bf16 %v901_v29, %v901_v29  ;;  %v811_v20 = vadd.f32 %v7582_v24, %v9070_v53  ;;  %v7983_v19 = vld [vmem:[#allocation12 + $0x188] sm:$0xff]   ;;  %v7998_v26 = vld [vmem:[#allocation12 + $0x1d0] sm:$0xff]  }
 0x1da   : > { %v6861_v17 = vpack.c.bf16 %v899_v30, %v899_v30  ;;  %1664 = vst [vmem:[#allocation2 + $0x30] sm:$0xf] %v1663_v1  ;;  %v1656_v36 = vsel %vm8981_vm8, %v1360_v32, %v1655_v28  ;;  %v6866_v37 = vpack.c.bf16 %v904_v34, %v904_v34  ;;  %v803_v40 = vadd.f32 %v9070_v53, %v802_v31 }
 0x1db   : > { %v6864_v38 = vpack.c.bf16 %v902_v35, %v902_v35  ;;  %1657 = vst [vmem:[#allocation2 + $0x24] sm:$0xf] %v1656_v36  ;;  %v1380_v41 = vshrl.u32 %v6863_v9, 16  ;;  %v1383_v43 = vshll.u32 %v6863_v9, 16  ;;  %v905_v58 = vmax.f32 %v811_v20, 0.0  ;;  %v7915_v61 = vld [vmem:[#allocation2 + $0x18] sm:$0xff]  }
 0x1dc   : > { %v1363_v44 = vshrl.u32 %v6861_v17, 16  ;;  %v1366_v45 = vshll.u32 %v6861_v17, 16  ;;  %v1406_v48 = vshrl.u32 %v6866_v37, 16  ;;  %v1409_v49 = vshll.u32 %v6866_v37, 16  ;;  %v7911_v59 = vld [vmem:[#allocation2 + $0xc] sm:$0xff]   ;;  %v7919_v18 = vld [vmem:[#allocation2 + $0x18] sm:$0xff]  }
 0x1dd   : > { %v1389_v50 = vshrl.u32 %v6864_v38, 16  ;;  %v1392_v51 = vshll.u32 %v6864_v38, 16  ;;  %v1382_v54 = vrot.slane %v1380_v41, 7  ;;  %v903_v60 = vmax.f32 %v803_v40, 0.0  ;;  %5076 = vmatprep.mubr.bf16.mxu1 %v7911_v59  ;;  %v7916_v12 = vld [vmem:[#allocation2 + $0xc] sm:$0xff]   ;;  %v7585_v31 = vpop.f32.mrb[12].mxu0 }
 0x1de   : > { %v1365_v55 = vrot.slane %v1363_v44, 7  ;;  %v9119_v0 = vrot.slane %v1406_v48, 7  ;;  %v7917_v13 = vld [vmem:[#allocation2 + $0x14] ss:$0 sps:$4 sm:$0x11]   ;;  %5077 = vmatmul.mubr.bf16.vlgmr.msra.gmra.mrb[8].mxu1 %v2477_v25  ;;  %v6867_v28 = vpack.c.bf16 %v905_v58, %v905_v58  ;;  %v2089_v34 = vshll.u32 %v7916_v12, 16 }
 0x1df   : > { %v9121_v3 = vrot.slane %v1389_v50, 7  ;;  %v1385_v5 = vor.u32 %v1383_v43, %v1382_v54  ;;  %v1387_v7 = vrot.slane %v1382_v54, 4  ;;  %5084 = vmatprep.mubr.bf16.mxu1 %v7915_v61  ;;  %v6865_v29 = vpack.c.bf16 %v903_v60, %v903_v60  ;;  %v7920_v30 = vld [vmem:[#allocation2 + $0x20] ss:$0 sps:$4 sm:$0x11]   ;;  %7396 = vmatpush3.bf16.msra.mxu1 %v7967_v52  ;;  %v7918_v61 = vld [vmem:[#allocation2 + $0xc] sm:$0xff]  }
 0x1e0   : > { %v1368_v8 = vor.u32 %v1366_v45, %v1365_v55  ;;  %v1370_v10 = vrot.slane %v1365_v55, 4  ;;  %v1411_v14 = vor.u32 %v1409_v49, %v9119_v0  ;;  %v1412_v15 = vrot.slane %v9119_v0, 4  ;;  %7397 = vmatprep.subr.bf16.mxu1 %v7982_v63  ;;  %v7921_v36 = vld [vmem:[#allocation2 + $0xc] sm:$0xfe]   ;;  %v1673_v38 = vld [vmem:[#allocation2 + $0x44] sm:$0x1] }
 0x1e1   : > { %v1394_v16 = vor.u32 %v1392_v51, %v9121_v3  ;;  %v1386_v21 = vsel %vm8991_vm9, %v1378_v27, %v1385_v5  ;;  %v1667_v22 = vsel %vm8962_vm4, %v1387_v7, %v1666_v46  ;;  %v1395_v32 = vrot.slane %v9121_v3, 4  ;;  %v1680_v37 = vld [vmem:[#allocation2 + $0x50] sm:$0x1]  ;;  %v7922_v48 = vld [vmem:[#allocation2 + $0x14] ss:$0 sps:$4 sm:$0x11]  }
 0x1e2   : > { %v1369_v23 = vsel %vm8991_vm9, %v1361_v33, %v1368_v8  ;;  %v1660_v24 = vsel %vm8962_vm4, %v1370_v10, %v1659_v47  ;;  %1665 = vst [vmem:[#allocation2 + $0x34] sm:$0xf] %v1386_v21  ;;  %1668 = vst [vmem:[#allocation2 + $0x38] sm:$0x1] %v1667_v22  ;;  %v1677_v25 = vsel %vm8981_vm8, %v1411_v14, %v1676_v56  ;;  %v2087_v33 = vshrl.u32 %v7916_v12, 16  ;;  %v815_v55 = vpop.f32.mrb[13].mxu0 }
 0x1e3   : > { %1658 = vst [vmem:[#allocation2 + $0x28] sm:$0xf] %v1369_v23  ;;  %1661 = vst [vmem:[#allocation2 + $0x2c] sm:$0x1] %v1660_v24  ;;  %v1670_v27 = vsel %vm8981_vm8, %v1394_v16, %v1669_v57  ;;  %v2094_v35 = vshll.u32 %v7917_v13, 16  ;;  %v1414_v1 = vshrl.u32 %v6867_v28, 16  ;;  %v824_v49 = vadd.f32 %v7585_v31, %v9070_v53  ;;  %7398 = vmatpush3.bf16.msra.mxu1 %v7983_v19 }
 0x1e4   : > { %1678 = vst [vmem:[#allocation2 + $0x48] sm:$0xf] %v1677_v25  ;;  %1671 = vst [vmem:[#allocation2 + $0x3c] sm:$0xf] %v1670_v27  ;;  %v1417_v9 = vshll.u32 %v6867_v28, 16  ;;  %v1397_v17 = vshrl.u32 %v6865_v29, 16  ;;  %7399 = vmatprep.subr.bf16.mxu1 %v7998_v26  ;;  %v816_v24 = vadd.f32 %v9070_v53, %v815_v55 }
 0x1e5   : > { %v1400_v20 = vshll.u32 %v6865_v29, 16  ;;  %v2091_v40 = vrot.slane %v2089_v34, 1  ;;  %v2099_v41 = vshrl.u32 %v7919_v18, 16  ;;  %v2101_v43 = vshll.u32 %v7919_v18, 16  ;;  %v7999_v56 = vld [vmem:[#allocation12 + $0x190] sm:$0xff]   ;;  %v7586_v63 = vpop.f32.mrb[14].mxu0 }
 0x1e6   : > { %v2106_v44 = vshll.u32 %v7920_v30, 16  ;;  %v1416_v45 = vrot.slane %v1414_v1, 7  ;;  %v1399_v46 = vrot.slane %v1397_v17, 7  ;;  %v2096_v47 = vrot.slane %v2094_v35, 1  ;;  %v8014_v3 = vld [vmem:[#allocation12 + $0x1d8] sm:$0xff]   ;;  %v818_v13 = vpop.f32.mrb[15].mxu0 }
 0x1e7   : > { %v2092_v50 = vor.u32 %v2091_v40, %v2087_v33  ;;  %v2103_v51 = vrot.slane %v2101_v43, 1  ;;  %v2478_v54 = vrot.slane %v7921_v36, 1  ;;  %v2479_v8 = vrot.slane %v7922_v48, 1  ;;  %v7589_v22 = vpop.f32.mrb[16].mxu0  ;;  %v8015_v25 = vld [vmem:[#allocation12 + $0x198] sm:$0xff]   ;;  %v8023_v31 = vld [vmem:[#allocation12 + $0x1e0] sm:$0xff]   ;;  %7400 = vmatpush3.bf16.msra.mxu1 %v7999_v56 }
 0x1e8   : > { %v2108_v52 = vrot.slane %v2106_v44, 1  ;;  %v1419_v57 = vor.u32 %v1417_v9, %v1416_v45  ;;  %v1421_v58 = vrot.slane %v1416_v45, 4  ;;  %v1402_v59 = vor.u32 %v1400_v20, %v1399_v46  ;;  %v7929_v1 = vld [vmem:[#allocation2 + $0x18] sm:$0xfe]   ;;  %v1690_v9 = vld [vmem:[#allocation2 + $0x60] sm:$0xf]  ;;  %7401 = vmatprep.subr.bf16.mxu1 %v8014_v3 }
 0x1e9   : > { %v1404_v60 = vrot.slane %v1399_v46, 4  ;;  %v2097_v5 = vsel %vm2073_vm10, %v2092_v50, %v2096_v47  ;;  %v2104_v7 = vor.u32 %v2103_v51, %v2099_v41  ;;  %v908_v12 = vmax.f32 %v824_v49, 0.0  ;;  %v7925_v43 = vld [vmem:[#allocation2 + $0x18] sm:$0xff]   ;;  %v7933_v50 = vld [vmem:[#allocation2 + $0x30] sm:$0xff]   ;;  %v831_v56 = vpop.f32.mrb[17].mxu0 }
 0x1ea   : > { %v7923_v10 = vld [vmem:[#allocation2 + $0x24] sm:$0xff]   ;;  %v1420_v14 = vsel %vm8991_vm9, %v1412_v15, %v1419_v57  ;;  %v1681_v16 = vsel %vm8962_vm4, %v1421_v58, %v1680_v37  ;;  %v1403_v18 = vsel %vm8991_vm9, %v1395_v32, %v1402_v59  ;;  %4923 = vmatprep.mubr.bf16.mxu0 %v2097_v5  ;;  %v2480_v15 = vsel %vm2474_vm11, %v2478_v54, %v2479_v8  ;;  %v7928_v26 = vld [vmem:[#allocation2 + $0x2c] ss:$0 sps:$4 sm:$0x11]   ;;  %v1683_v57 = vld [vmem:[#allocation2 + $0x54] sm:$0xf] }
 0x1eb   : > { %v1674_v19 = vsel %vm8962_vm4, %v1404_v60, %v1673_v38  ;;  %v7927_v21 = vld [vmem:[#allocation2 + $0x24] sm:$0xff]   ;;  %1679 = vst [vmem:[#allocation2 + $0x4c] sm:$0xf] %v1420_v14  ;;  %1682 = vst [vmem:[#allocation2 + $0x50] sm:$0x1] %v1681_v16  ;;  %4924 = vmatmul.mubr.bf16.gmra.mrb[36].mxu0 %v7918_v61  ;;  %v2109_v0 = vsel %vm2073_vm10, %v2104_v7, %v2108_v52  ;;  %v6870_v23 = vpack.c.bf16 %v908_v12, %v908_v12  ;;  %v7931_v12 = vld [vmem:[#allocation2 + $0x30] sm:$0xff]  }
 0x1ec   : > { %1672 = vst [vmem:[#allocation2 + $0x40] sm:$0xf] %v1403_v18  ;;  %1675 = vst [vmem:[#allocation2 + $0x44] sm:$0x1] %v1674_v19  ;;  %4931 = vmatprep.mubr.bf16.mxu0 %v2109_v0  ;;  %5085 = vmatmul.mubr.bf16.gmra.mrb[12].mxu1 %v2480_v15  ;;  %v827_v27 = vadd.f32 %v7586_v63, %v9070_v53  ;;  %v819_v28 = vadd.f32 %v9070_v53, %v818_v13  ;;  %v2111_v29 = vshrl.u32 %v7927_v21, 16 }
 0x1ed   : > { %v2113_v30 = vshll.u32 %v7927_v21, 16  ;;  %5092 = vmatprep.mubr.bf16.mxu1 %v7923_v10  ;;  %v1440_v32 = vshrl.u32 %v6870_v23, 16  ;;  %v1443_v33 = vshll.u32 %v6870_v23, 16  ;;  %v906_v34 = vmax.f32 %v816_v24, 0.0  ;;  %7402 = vmatpush3.bf16.msra.mxu1 %v8015_v25  ;;  %v1694_v5 = vld [vmem:[#allocation2 + $0x68] sm:$0x1] }
 0x1ee   : > { %v2118_v35 = vshll.u32 %v7928_v26, 16  ;;  %v909_v17 = vmax.f32 %v827_v27, 0.0  ;;  %v907_v20 = vmax.f32 %v819_v28, 0.0  ;;  %v7930_v37 = vld [vmem:[#allocation2 + $0x20] ss:$0 sps:$4 sm:$0x11]   ;;  %v9157_v38 = vadd.f32 %v7589_v22, %v9070_v53  ;;  %7403 = vmatprep.subr.bf16.mxu1 %v8023_v31 }
 0x1ef   : > { %v2115_v36 = vrot.slane %v2113_v30, 1  ;;  %v1442_v40 = vrot.slane %v1440_v32, 7  ;;  %v6868_v41 = vpack.c.bf16 %v906_v34, %v906_v34  ;;  %v2481_v45 = vrot.slane %v7929_v1, 1  ;;  %v1687_v7 = vld [vmem:[#allocation2 + $0x5c] sm:$0x1]  ;;  %v7932_v28 = vld [vmem:[#allocation2 + $0x24] sm:$0xff]  }
 0x1f0   : > { %v2120_v44 = vrot.slane %v2118_v35, 1  ;;  %v6871_v46 = vpack.c.bf16 %v909_v17, %v909_v17  ;;  %v6869_v47 = vpack.c.bf16 %v907_v20, %v907_v20  ;;  %v2482_v49 = vrot.slane %v7930_v37, 1  ;;  %v7934_v16 = vld [vmem:[#allocation2 + $0x38] ss:$0 sps:$4 sm:$0x11]   ;;  %v7590_v17 = vpop.f32.mrb[18].mxu0 }
 0x1f1   : > { %v2116_v48 = vor.u32 %v2115_v36, %v2111_v29  ;;  %v1445_v51 = vor.u32 %v1443_v33, %v1442_v40  ;;  %v1446_v52 = vrot.slane %v1442_v40, 4  ;;  %v1423_v54 = vshrl.u32 %v6868_v41, 16  ;;  %v7935_v25 = vld [vmem:[#allocation2 + $0x24] sm:$0xfe]   ;;  %v834_v40 = vpop.f32.mrb[19].mxu0 }
 0x1f2   : > { %v1426_v55 = vshll.u32 %v6868_v41, 16  ;;  %v1448_v58 = vshrl.u32 %v6871_v46, 16  ;;  %v1451_v59 = vshll.u32 %v6871_v46, 16  ;;  %v1431_v60 = vshrl.u32 %v6869_v47, 16 }
 0x1f3   : > { %v1434_v61 = vshll.u32 %v6869_v47, 16  ;;  %v1691_v63 = vsel %vm8981_vm8, %v1445_v51, %v1690_v9  ;;  %v1425_v3 = vrot.slane %v1423_v54, 7  ;;  %4932 = vmatmul.mubr.bf16.gmra.mrb[40].mxu0 %v7925_v43  ;;  %v2121_v8 = vsel %vm2073_vm10, %v2116_v48, %v2120_v44  ;;  %v7936_v31 = vld [vmem:[#allocation2 + $0x2c] ss:$0 sps:$4 sm:$0x11]   ;;  %v7937_v9 = vld [vmem:[#allocation2 + $0x3c] sm:$0xff]  }
 0x1f4   : > { %v2483_v10 = vsel %vm2474_vm11, %v2481_v45, %v2482_v49  ;;  %1692 = vst [vmem:[#allocation2 + $0x60] sm:$0xf] %v1691_v63  ;;  %v1450_v13 = vrot.slane %v1448_v58, 7  ;;  %v1433_v14 = vrot.slane %v1431_v60, 7  ;;  %4939 = vmatprep.mubr.bf16.mxu0 %v2121_v8  ;;  %v2123_v18 = vshrl.u32 %v7933_v50, 16  ;;  %v7941_v46 = vld [vmem:[#allocation2 + $0x3c] sm:$0xff]  }
 0x1f5   : > { %5093 = vmatmul.mubr.bf16.gmra.mrb[16].mxu1 %v2483_v10  ;;  %v1428_v19 = vor.u32 %v1426_v55, %v1425_v3  ;;  %v1429_v21 = vrot.slane %v1425_v3, 4  ;;  %v2125_v22 = vshll.u32 %v7933_v50, 16  ;;  %v832_v0 = vadd.f32 %v9070_v53, %v831_v56  ;;  %v7942_v54 = vld [vmem:[#allocation2 + $0x44] ss:$0 sps:$4 sm:$0x11]  }
 0x1f6   : > { %5100 = vmatprep.mubr.bf16.mxu1 %v7931_v12  ;;  %v1453_v15 = vor.u32 %v1451_v59, %v1450_v13  ;;  %v1455_v23 = vrot.slane %v1450_v13, 4  ;;  %v1436_v24 = vor.u32 %v1434_v61, %v1433_v14  ;;  %v1438_v26 = vrot.slane %v1433_v14, 4  ;;  %v1704_v55 = vld [vmem:[#allocation2 + $0x78] sm:$0xf]  ;;  %v1697_v3 = vld [vmem:[#allocation2 + $0x6c] sm:$0xf] }
 0x1f7   : > { %v1684_v27 = vsel %vm8981_vm8, %v1428_v19, %v1683_v57  ;;  %v2127_v29 = vrot.slane %v2125_v22, 1  ;;  %v2130_v30 = vshll.u32 %v7934_v16, 16  ;;  %v912_v32 = vmax.f32 %v9157_v38, 0.0  ;;  %v7943_v12 = vld [vmem:[#allocation2 + $0x30] sm:$0xfe]  }
 0x1f8   : > { %1685 = vst [vmem:[#allocation2 + $0x54] sm:$0xf] %v1684_v27  ;;  %v1454_v33 = vsel %vm8991_vm9, %v1446_v52, %v1453_v15  ;;  %v1695_v34 = vsel %vm8962_vm4, %v1455_v23, %v1694_v5  ;;  %v1437_v35 = vsel %vm8991_vm9, %v1429_v21, %v1436_v24  ;;  %v1688_v1 = vsel %vm8962_vm4, %v1438_v26, %v1687_v7  ;;  %v7939_v5 = vld [vmem:[#allocation2 + $0x30] sm:$0xff]   ;;  %v7944_v19 = vld [vmem:[#allocation2 + $0x38] ss:$0 sps:$4 sm:$0x11]  }
 0x1f9   : > { %1693 = vst [vmem:[#allocation2 + $0x64] sm:$0xf] %v1454_v33  ;;  %1696 = vst [vmem:[#allocation2 + $0x68] sm:$0x1] %v1695_v34  ;;  %v2128_v20 = vor.u32 %v2127_v29, %v2123_v18  ;;  %v2132_v36 = vrot.slane %v2130_v30, 1  ;;  %v2484_v37 = vrot.slane %v7935_v25, 1  ;;  %v6874_v41 = vpack.c.bf16 %v912_v32, %v912_v32 }
 0x1fa   : > { %1686 = vst [vmem:[#allocation2 + $0x58] sm:$0xf] %v1437_v35  ;;  %1689 = vst [vmem:[#allocation2 + $0x5c] sm:$0x1] %v1688_v1  ;;  %v2485_v38 = vrot.slane %v7936_v31, 1  ;;  %v910_v43 = vmax.f32 %v832_v0, 0.0  ;;  %v843_v44 = vadd.f32 %v7590_v17, %v9070_v53  ;;  %v835_v45 = vadd.f32 %v9070_v53, %v834_v40 }
 0x1fb   : > { %4940 = vmatmul.mubr.bf16.gmra.mrb[44].mxu0 %v7932_v28  ;;  %v2133_v47 = vsel %vm2073_vm10, %v2128_v20, %v2132_v36  ;;  %v1474_v49 = vshrl.u32 %v6874_v41, 16  ;;  %v1477_v50 = vshll.u32 %v6874_v41, 16  ;;  %v2135_v57 = vshrl.u32 %v7941_v46, 16  ;;  %v1708_v22 = vld [vmem:[#allocation2 + $0x80] sm:$0x1]  ;;  %v7947_v24 = vld [vmem:[#allocation2 + $0x48] sm:$0xff]  }
 0x1fc   : > { %v2486_v48 = vsel %vm2474_vm11, %v2484_v37, %v2485_v38  ;;  %4947 = vmatprep.mubr.bf16.mxu0 %v2133_v47  ;;  %v6872_v51 = vpack.c.bf16 %v910_v43, %v910_v43  ;;  %v913_v52 = vmax.f32 %v843_v44, 0.0  ;;  %v911_v56 = vmax.f32 %v835_v45, 0.0  ;;  %v1701_v29 = vld [vmem:[#allocation2 + $0x74] sm:$0x1]  ;;  %v7946_v47 = vld [vmem:[#allocation2 + $0x3c] sm:$0xff]  }
 0x1fd   : > { %5101 = vmatmul.mubr.bf16.gmra.mrb[20].mxu1 %v2486_v48  ;;  %v2137_v58 = vshll.u32 %v7941_v46, 16  ;;  %v1476_v59 = vrot.slane %v1474_v49, 7  ;;  %v2142_v10 = vshll.u32 %v7942_v54, 16  ;;  %v2487_v32 = vrot.slane %v7943_v12, 1  ;;  %v7949_v49 = vld [vmem:[#allocation2 + $0x3c] sm:$0xfe]  }
 0x1fe   : > { %5108 = vmatprep.mubr.bf16.mxu1 %v7937_v9  ;;  %v1457_v60 = vshrl.u32 %v6872_v51, 16  ;;  %v1460_v61 = vshll.u32 %v6872_v51, 16  ;;  %v6875_v63 = vpack.c.bf16 %v913_v52, %v913_v52  ;;  %v6873_v7 = vpack.c.bf16 %v911_v56, %v911_v56  ;;  %v7945_v9 = vld [vmem:[#allocation2 + $0x48] sm:$0xff]   ;;  %v7948_v38 = vld [vmem:[#allocation2 + $0x50] ss:$0 sps:$4 sm:$0x11]  }
 0x1ff   : > { %v2139_v8 = vrot.slane %v2137_v58, 1  ;;  %v1479_v13 = vor.u32 %v1477_v50, %v1476_v59  ;;  %v1480_v14 = vrot.slane %v1476_v59, 4  ;;  %v2144_v31 = vrot.slane %v2142_v10, 1  ;;  %v7950_v50 = vld [vmem:[#allocation2 + $0x44] ss:$0 sps:$4 sm:$0x11]  }
 0x200   : > { %v1459_v16 = vrot.slane %v1457_v60, 7  ;;  %v1482_v18 = vshrl.u32 %v6875_v63, 16  ;;  %v1485_v21 = vshll.u32 %v6875_v63, 16  ;;  %v1465_v0 = vshrl.u32 %v6873_v7, 16  ;;  %v7593_v52 = vpop.f32.mrb[20].mxu0 }
 0x201   : > { %v1468_v15 = vshll.u32 %v6873_v7, 16  ;;  %v2140_v23 = vor.u32 %v2139_v8, %v2135_v57  ;;  %v1705_v26 = vsel %vm8981_vm8, %v1479_v13, %v1704_v55  ;;  %v2488_v33 = vrot.slane %v7944_v19, 1  ;;  %v847_v58 = vpop.f32.mrb[21].mxu0  ;;  %v7951_v60 = vld [vmem:[#allocation2 + $0x54] sm:$0xff]  }
 0x202   : > { %v1462_v25 = vor.u32 %v1460_v61, %v1459_v16  ;;  %v1463_v27 = vrot.slane %v1459_v16, 4  ;;  %v1484_v28 = vrot.slane %v1482_v18, 7  ;;  %1706 = vst [vmem:[#allocation2 + $0x78] sm:$0xf] %v1705_v26  ;;  %v1467_v30 = vrot.slane %v1465_v0, 7  ;;  %v7594_v63 = vpop.f32.mrb[22].mxu0 }
 0x203   : > { %4948 = vmatmul.mubr.bf16.gmra.mrb[48].mxu0 %v7939_v5  ;;  %v2145_v36 = vsel %vm2073_vm10, %v2140_v23, %v2144_v31  ;;  %v2489_v37 = vsel %vm2474_vm11, %v2487_v32, %v2488_v33  ;;  %v2147_v43 = vshrl.u32 %v7947_v24, 16  ;;  %v2149_v44 = vshll.u32 %v7947_v24, 16  ;;  %v850_v7 = vpop.f32.mrb[23].mxu0  ;;  %v7955_v13 = vld [vmem:[#allocation2 + $0x54] sm:$0xff]  }
 0x204   : > { %v1698_v34 = vsel %vm8981_vm8, %v1462_v25, %v1697_v3  ;;  %v1487_v35 = vor.u32 %v1485_v21, %v1484_v28  ;;  %v1489_v1 = vrot.slane %v1484_v28, 4  ;;  %v1470_v17 = vor.u32 %v1468_v15, %v1467_v30  ;;  %4955 = vmatprep.mubr.bf16.mxu0 %v2145_v36  ;;  %v7953_v25 = vld [vmem:[#allocation2 + $0x48] sm:$0xff]   ;;  %v7958_v33 = vld [vmem:[#allocation2 + $0x50] ss:$0 sps:$4 sm:$0x11]  }
 0x205   : > { %1699 = vst [vmem:[#allocation2 + $0x6c] sm:$0xf] %v1698_v34  ;;  %v1472_v20 = vrot.slane %v1467_v30, 4  ;;  %5109 = vmatmul.mubr.bf16.gmra.mrb[24].mxu1 %v2489_v37  ;;  %v2154_v48 = vshll.u32 %v7948_v38, 16  ;;  %v2151_v51 = vrot.slane %v2149_v44, 1  ;;  %v2490_v55 = vrot.slane %v7949_v49, 1 }
 0x206   : > { %v1488_v40 = vsel %vm8991_vm9, %v1480_v14, %v1487_v35  ;;  %v1709_v41 = vsel %vm8962_vm4, %v1489_v1, %v1708_v22  ;;  %v1471_v45 = vsel %vm8991_vm9, %v1463_v27, %v1470_v17  ;;  %5116 = vmatprep.mubr.bf16.mxu1 %v7945_v9  ;;  %v2491_v56 = vrot.slane %v7950_v50, 1  ;;  %v7956_v14 = vld [vmem:[#allocation2 + $0x5c] ss:$0 sps:$4 sm:$0x11]   ;;  %v7957_v28 = vld [vmem:[#allocation2 + $0x48] sm:$0xfe]  }
 0x207   : > { %1707 = vst [vmem:[#allocation2 + $0x7c] sm:$0xf] %v1488_v40  ;;  %1710 = vst [vmem:[#allocation2 + $0x80] sm:$0x1] %v1709_v41  ;;  %v1702_v46 = vsel %vm8962_vm4, %v1472_v20, %v1701_v29  ;;  %v2156_v54 = vrot.slane %v2154_v48, 1  ;;  %v856_v57 = vadd.f32 %v7593_v52, %v9070_v53  ;;  %v2152_v59 = vor.u32 %v2151_v51, %v2147_v43  ;;  %v7961_v20 = vld [vmem:[#allocation2 + $0x60] sm:$0xff]  }
 0x208   : > { %1700 = vst [vmem:[#allocation2 + $0x70] sm:$0xf] %v1471_v45  ;;  %1703 = vst [vmem:[#allocation2 + $0x74] sm:$0x1] %v1702_v46  ;;  %v848_v61 = vadd.f32 %v9070_v53, %v847_v58  ;;  %v859_v5 = vadd.f32 %v7594_v63, %v9070_v53  ;;  %v851_v12 = vadd.f32 %v9070_v53, %v850_v7  ;;  %v2159_v0 = vshrl.u32 %v7955_v13, 16  ;;  %v7597_v43 = vpop.f32.mrb[24].mxu0 }
 0x209   : > { %v916_v3 = vmax.f32 %v856_v57, 0.0  ;;  %v2157_v8 = vsel %vm2073_vm10, %v2152_v59, %v2156_v54  ;;  %v2492_v16 = vsel %vm2474_vm11, %v2490_v55, %v2491_v56  ;;  %v2161_v15 = vshll.u32 %v7955_v13, 16  ;;  %v1718_v53 = vld [vmem:[#allocation2 + $0x90] sm:$0xf]  ;;  %v1711_v35 = vld [vmem:[#allocation2 + $0x84] sm:$0xf] }
 0x20a   : > { %v914_v10 = vmax.f32 %v848_v61, 0.0  ;;  %v917_v19 = vmax.f32 %v859_v5, 0.0  ;;  %v915_v22 = vmax.f32 %v851_v12, 0.0  ;;  %v2166_v27 = vshll.u32 %v7956_v14, 16  ;;  %v1722_v37 = vld [vmem:[#allocation2 + $0x98] sm:$0x1] }
 0x20b   : > { %4956 = vmatmul.mubr.bf16.gmra.mrb[52].mxu0 %v7946_v47  ;;  %v6878_v18 = vpack.c.bf16 %v916_v3, %v916_v3  ;;  %v2163_v32 = vrot.slane %v2161_v15, 1  ;;  %v1715_v47 = vld [vmem:[#allocation2 + $0x8c] sm:$0x1]  ;;  %v2493_v48 = vrot.slane %v7957_v28, 1  ;;  %v863_v49 = vpop.f32.mrb[25].mxu0  ;;  %v2494_v58 = vrot.slane %v7958_v33, 1 }
 0x20c   : > { %4963 = vmatprep.mubr.bf16.mxu0 %v2157_v8  ;;  %v6876_v21 = vpack.c.bf16 %v914_v10, %v914_v10  ;;  %v6879_v26 = vpack.c.bf16 %v917_v19, %v917_v19  ;;  %v6877_v31 = vpack.c.bf16 %v915_v22, %v915_v22  ;;  %v2168_v17 = vrot.slane %v2166_v27, 1  ;;  %v7959_v59 = vld [vmem:[#allocation2 + $0x60] sm:$0xff]   ;;  %v7962_v3 = vld [vmem:[#allocation2 + $0x68] ss:$0 sps:$4 sm:$0x11]   ;;  %v7598_v7 = vpop.f32.mrb[26].mxu0 }
 0x20d   : > { %5117 = vmatmul.mubr.bf16.gmra.mrb[28].mxu1 %v2492_v16  ;;  %v1508_v23 = vshrl.u32 %v6878_v18, 16  ;;  %v1511_v24 = vshll.u32 %v6878_v18, 16  ;;  %v2164_v41 = vor.u32 %v2163_v32, %v2159_v0  ;;  %v2171_v5 = vshrl.u32 %v7961_v20, 16  ;;  %v7960_v13 = vld [vmem:[#allocation2 + $0x54] sm:$0xff]   ;;  %v9216_v22 = vld [vmem:[%s9715_s4] ss:$0 sm:$0xff] }
 0x20e   : > { %5124 = vmatprep.mubr.bf16.mxu1 %v7951_v60  ;;  %v1491_v29 = vshrl.u32 %v6876_v21, 16  ;;  %v1494_v30 = vshll.u32 %v6876_v21, 16  ;;  %v1516_v1 = vshrl.u32 %v6879_v26, 16  ;;  %v1519_v9 = vshll.u32 %v6879_v26, 16  ;;  %v7963_v21 = vld [vmem:[#allocation2 + $0x54] sm:$0xfe]  }
 0x20f   : > { %v1510_v34 = vrot.slane %v1508_v23, 7  ;;  %v1499_v38 = vshrl.u32 %v6877_v31, 16  ;;  %v1502_v40 = vshll.u32 %v6877_v31, 16  ;;  %v2169_v54 = vsel %vm2073_vm10, %v2164_v41, %v2168_v17  ;;  %v866_v15 = vpop.f32.mrb[27].mxu0  ;;  %v7965_v33 = vld [vmem:[#allocation2 + $0x6c] sm:$0xff]  }
 0x210   : > { %v1493_v36 = vrot.slane %v1491_v29, 7  ;;  %v1518_v46 = vrot.slane %v1516_v1, 7  ;;  %v2495_v12 = vsel %vm2474_vm11, %v2493_v48, %v2494_v58  ;;  %v2173_v14 = vshll.u32 %v7961_v20, 16 }
 0x211   : > { %v1513_v44 = vor.u32 %v1511_v24, %v1510_v34  ;;  %v1514_v45 = vrot.slane %v1510_v34, 4  ;;  %v1501_v52 = vrot.slane %v1499_v38, 7  ;;  %v2178_v19 = vshll.u32 %v7962_v3, 16  ;;  %v7964_v24 = vld [vmem:[#allocation2 + $0x5c] ss:$0 sps:$4 sm:$0x11]  }
 0x212   : > { %v1496_v50 = vor.u32 %v1494_v30, %v1493_v36  ;;  %v1497_v51 = vrot.slane %v1493_v36, 4  ;;  %v1521_v56 = vor.u32 %v1519_v9, %v1518_v46  ;;  %v1523_v57 = vrot.slane %v1518_v46, 4  ;;  %v7971_v30 = vld [vmem:[#allocation2 + $0x6c] sm:$0xff]   ;;  %v1732_v46 = vld [vmem:[#allocation2 + $0xa8] sm:$0xf] }
 0x213   : > { %4964 = vmatmul.mubr.bf16.gmra.mrb[56].mxu0 %v7953_v25  ;;  %v1719_v55 = vsel %vm8981_vm8, %v1513_v44, %v1718_v53  ;;  %v1504_v61 = vor.u32 %v1502_v40, %v1501_v52  ;;  %v1506_v63 = vrot.slane %v1501_v52, 4  ;;  %v872_v0 = vadd.f32 %v9216_v22, %v7597_v43  ;;  %v7972_v44 = vld [vmem:[#allocation2 + $0x74] ss:$0 sps:$4 sm:$0x11]   ;;  %v1725_v52 = vld [vmem:[#allocation2 + $0x9c] sm:$0xf] }
 0x214   : > { %4971 = vmatprep.mubr.bf16.mxu0 %v2169_v54  ;;  %1720 = vst [vmem:[#allocation2 + $0x90] sm:$0xf] %v1719_v55  ;;  %v1712_v60 = vsel %vm8981_vm8, %v1496_v50, %v1711_v35  ;;  %v1522_v8 = vsel %vm8991_vm9, %v1514_v45, %v1521_v56  ;;  %v1723_v10 = vsel %vm8962_vm4, %v1523_v57, %v1722_v37  ;;  %v2175_v23 = vrot.slane %v2173_v14, 1  ;;  %v1736_v54 = vld [vmem:[#allocation2 + $0xb0] sm:$0x1] }
 0x215   : > { %1713 = vst [vmem:[#allocation2 + $0x84] sm:$0xf] %v1712_v60  ;;  %1721 = vst [vmem:[#allocation2 + $0x94] sm:$0xf] %v1522_v8  ;;  %v1505_v16 = vsel %vm8991_vm9, %v1497_v51, %v1504_v61  ;;  %v1716_v18 = vsel %vm8962_vm4, %v1506_v63, %v1715_v47  ;;  %5125 = vmatmul.mubr.bf16.gmra.mrb[32].mxu1 %v2495_v12  ;;  %v864_v26 = vadd.f32 %v9216_v22, %v863_v49  ;;  %v7969_v60 = vld [vmem:[#allocation2 + $0x60] sm:$0xff]  }
 0x216   : > { %1724 = vst [vmem:[#allocation2 + $0x98] sm:$0x1] %v1723_v10  ;;  %1714 = vst [vmem:[#allocation2 + $0x88] sm:$0xf] %v1505_v16  ;;  %5132 = vmatprep.mubr.bf16.mxu1 %v7959_v59  ;;  %v875_v25 = vadd.f32 %v9216_v22, %v7598_v7  ;;  %v867_v27 = vadd.f32 %v9216_v22, %v866_v15  ;;  %v2180_v28 = vrot.slane %v2178_v19, 1  ;;  %v2496_v53 = vrot.slane %v7963_v21, 1 }
 0x217   : > { %1717 = vst [vmem:[#allocation2 + $0x8c] sm:$0x1] %v1716_v18  ;;  %v920_v29 = vmax.f32 %v872_v0, 0.0  ;;  %v2176_v31 = vor.u32 %v2175_v23, %v2171_v5  ;;  %v2497_v32 = vrot.slane %v7964_v24, 1  ;;  %v918_v34 = vmax.f32 %v864_v26, 0.0 }
 0x218   : > { %v921_v35 = vmax.f32 %v875_v25, 0.0  ;;  %v919_v9 = vmax.f32 %v867_v27, 0.0  ;;  %v2183_v17 = vshrl.u32 %v7971_v30, 16  ;;  %v2185_v45 = vshll.u32 %v7971_v30, 16  ;;  %v1729_v61 = vld [vmem:[#allocation2 + $0xa4] sm:$0x1] }
 0x219   : > { %v6882_v1 = vpack.c.bf16 %v920_v29, %v920_v29  ;;  %v2181_v20 = vsel %vm2073_vm10, %v2176_v31, %v2180_v28  ;;  %v2498_v36 = vsel %vm2474_vm11, %v2496_v53, %v2497_v32  ;;  %v6880_v37 = vpack.c.bf16 %v918_v34, %v918_v34  ;;  %v7973_v3 = vld [vmem:[#allocation2 + $0x60] sm:$0xfe]   ;;  %v7974_v12 = vld [vmem:[#allocation2 + $0x68] ss:$0 sps:$4 sm:$0x11]   ;;  %v7975_v31 = vld [vmem:[#allocation2 + $0x78] sm:$0xff]  }
 0x21a   : > { %v6883_v38 = vpack.c.bf16 %v921_v35, %v921_v35  ;;  %v6881_v43 = vpack.c.bf16 %v919_v9, %v919_v9  ;;  %v2187_v57 = vrot.slane %v2185_v45, 1  ;;  %v2190_v63 = vshll.u32 %v7972_v44, 16  ;;  %v7978_v32 = vld [vmem:[#allocation2 + $0x80] ss:$0 sps:$4 sm:$0x11]  }
 0x21b   : > { %4972 = vmatmul.mubr.bf16.gmra.mrb[60].mxu0 %v7960_v13  ;;  %v1542_v40 = vshrl.u32 %v6882_v1, 16  ;;  %v1545_v41 = vshll.u32 %v6882_v1, 16  ;;  %v1525_v47 = vshrl.u32 %v6880_v37, 16  ;;  %v1528_v48 = vshll.u32 %v6880_v37, 16  ;;  %v7977_v13 = vld [vmem:[#allocation2 + $0x78] sm:$0xff]  }
 0x21c   : > { %4979 = vmatprep.mubr.bf16.mxu0 %v2181_v20  ;;  %v1550_v49 = vshrl.u32 %v6883_v38, 16  ;;  %v1553_v50 = vshll.u32 %v6883_v38, 16  ;;  %v1533_v55 = vshrl.u32 %v6881_v43, 16  ;;  %v1536_v56 = vshll.u32 %v6881_v43, 16  ;;  %v7601_v20 = vpop.f32.mrb[28].mxu0 }
 0x21d   : > { %5133 = vmatmul.mubr.bf16.gmra.mrb[36].mxu1 %v2498_v36  ;;  %v1544_v51 = vrot.slane %v1542_v40, 7  ;;  %v1527_v58 = vrot.slane %v1525_v47, 7  ;;  %v2188_v10 = vor.u32 %v2187_v57, %v2183_v17  ;;  %v2192_v23 = vrot.slane %v2190_v63, 1  ;;  %v7979_v17 = vld [vmem:[#allocation2 + $0x6c] sm:$0xfe]   ;;  %v879_v43 = vpop.f32.mrb[29].mxu0 }
 0x21e   : > { %5140 = vmatprep.mubr.bf16.mxu1 %v7965_v33  ;;  %v1552_v59 = vrot.slane %v1550_v49, 7  ;;  %v1535_v8 = vrot.slane %v1533_v55, 7  ;;  %v2499_v27 = vrot.slane %v7973_v3, 1  ;;  %v2500_v30 = vrot.slane %v7974_v12, 1  ;;  %v7976_v33 = vld [vmem:[#allocation2 + $0x6c] sm:$0xff]   ;;  %v7987_v49 = vld [vmem:[#allocation2 + $0x84] sm:$0xff]  }
 0x21f   : > { %v1547_v5 = vor.u32 %v1545_v41, %v1544_v51  ;;  %v1548_v7 = vrot.slane %v1544_v51, 4  ;;  %v1530_v14 = vor.u32 %v1528_v48, %v1527_v58  ;;  %v1531_v16 = vrot.slane %v1527_v58, 4  ;;  %v7980_v37 = vld [vmem:[#allocation2 + $0x74] ss:$0 sps:$4 sm:$0x11]   ;;  %v7602_v48 = vpop.f32.mrb[30].mxu0 }
 0x220   : > { %v1555_v18 = vor.u32 %v1553_v50, %v1552_v59  ;;  %v1557_v19 = vrot.slane %v1552_v59, 4  ;;  %v1538_v0 = vor.u32 %v1536_v56, %v1535_v8  ;;  %v1540_v15 = vrot.slane %v1535_v8, 4  ;;  %v882_v51 = vpop.f32.mrb[31].mxu0  ;;  %v7988_v59 = vld [vmem:[#allocation2 + $0x8c] ss:$0 sps:$4 sm:$0x11]  }
 0x221   : > { %v1733_v21 = vsel %vm8981_vm8, %v1547_v5, %v1732_v46  ;;  %v1726_v24 = vsel %vm8981_vm8, %v1530_v14, %v1725_v52  ;;  %v2193_v29 = vsel %vm2073_vm10, %v2188_v10, %v2192_v23  ;;  %v2195_v34 = vshrl.u32 %v7977_v13, 16  ;;  %v1746_v8 = vld [vmem:[#allocation2 + $0xc0] sm:$0xf] }
 0x222   : > { %1734 = vst [vmem:[#allocation2 + $0xa8] sm:$0xf] %v1733_v21  ;;  %v1556_v26 = vsel %vm8991_vm9, %v1548_v7, %v1555_v18  ;;  %v1737_v25 = vsel %vm8962_vm4, %v1557_v19, %v1736_v54  ;;  %1727 = vst [vmem:[#allocation2 + $0x9c] sm:$0xf] %v1726_v24  ;;  %v1539_v28 = vsel %vm8991_vm9, %v1531_v16, %v1538_v0  ;;  %v2197_v35 = vshll.u32 %v7977_v13, 16  ;;  %v7981_v54 = vld [vmem:[#allocation2 + $0x84] sm:$0xff]  }
 0x223   : > { %4980 = vmatmul.mubr.bf16.gmra.mrb[64].mxu0 %v7969_v60  ;;  %1735 = vst [vmem:[#allocation2 + $0xac] sm:$0xf] %v1556_v26  ;;  %1738 = vst [vmem:[#allocation2 + $0xb0] sm:$0x1] %v1737_v25  ;;  %v1730_v53 = vsel %vm8962_vm4, %v1540_v15, %v1729_v61  ;;  %v2501_v1 = vsel %vm2474_vm11, %v2499_v27, %v2500_v30  ;;  %v2202_v9 = vshll.u32 %v7978_v32, 16  ;;  %v2502_v41 = vrot.slane %v7979_v17, 1 }
 0x224   : > { %1728 = vst [vmem:[#allocation2 + $0xa0] sm:$0xf] %v1539_v28  ;;  %1731 = vst [vmem:[#allocation2 + $0xa4] sm:$0x1] %v1730_v53  ;;  %4987 = vmatprep.mubr.bf16.mxu0 %v2193_v29  ;;  %v2199_v36 = vrot.slane %v2197_v35, 1  ;;  %v888_v38 = vadd.f32 %v9216_v22, %v7601_v20  ;;  %v2503_v45 = vrot.slane %v7980_v37, 1  ;;  %v880_v47 = vadd.f32 %v9216_v22, %v879_v43 }
 0x225   : > { %5141 = vmatmul.mubr.bf16.gmra.mrb[40].mxu1 %v2501_v1  ;;  %v2204_v40 = vrot.slane %v2202_v9, 1  ;;  %v891_v50 = vadd.f32 %v9216_v22, %v7602_v48  ;;  %v883_v58 = vadd.f32 %v9216_v22, %v882_v51  ;;  %v2207_v60 = vshrl.u32 %v7987_v49, 16  ;;  %v7985_v21 = vld [vmem:[#allocation2 + $0x78] sm:$0xff]   ;;  %v1739_v22 = vld [vmem:[#allocation2 + $0xb4] sm:$0xf] }
 0x226   : > { %5148 = vmatprep.mubr.bf16.mxu1 %v7975_v31  ;;  %v2200_v44 = vor.u32 %v2199_v36, %v2195_v34  ;;  %v924_v46 = vmax.f32 %v888_v38, 0.0  ;;  %v922_v56 = vmax.f32 %v880_v47, 0.0  ;;  %v2209_v61 = vshll.u32 %v7987_v49, 16  ;;  %v7989_v0 = vld [vmem:[#allocation2 + $0x78] sm:$0xfe]   ;;  %v7993_v31 = vld [vmem:[#allocation2 + $0x90] sm:$0xff]  }
 0x227   : > { %v925_v57 = vmax.f32 %v891_v50, 0.0  ;;  %v2504_v63 = vsel %vm2474_vm11, %v2502_v41, %v2503_v45  ;;  %v923_v12 = vmax.f32 %v883_v58, 0.0  ;;  %v2214_v14 = vshll.u32 %v7988_v59, 16  ;;  %v7990_v25 = vld [vmem:[#allocation2 + $0x80] ss:$0 sps:$4 sm:$0x11]  }
 0x228   : > { %v2205_v52 = vsel %vm2073_vm10, %v2200_v44, %v2204_v40  ;;  %v6886_v55 = vpack.c.bf16 %v924_v46, %v924_v46  ;;  %v6884_v7 = vpack.c.bf16 %v922_v56, %v922_v56  ;;  %v2211_v13 = vrot.slane %v2209_v61, 1  ;;  %v1750_v29 = vld [vmem:[#allocation2 + $0xc8] sm:$0x1]  ;;  %v1743_v20 = vld [vmem:[#allocation2 + $0xbc] sm:$0x1]  ;;  %v7991_v45 = vld [vmem:[#allocation2 + $0x90] sm:$0xff]  }
 0x229   : > { %v6887_v10 = vpack.c.bf16 %v925_v57, %v925_v57  ;;  %v6885_v24 = vpack.c.bf16 %v923_v12, %v923_v12  ;;  %v2216_v30 = vrot.slane %v2214_v14, 1  ;;  %v2505_v35 = vrot.slane %v7989_v0, 1  ;;  %v7992_v46 = vld [vmem:[#allocation2 + $0x84] sm:$0xff]   ;;  %v8006_v0 = vld [vmem:[#allocation2 + $0x98] ss:$0 sps:$4 sm:$0x11]  }
 0x22a   : > { %v1576_v3 = vshrl.u32 %v6886_v55, 16  ;;  %v1579_v5 = vshll.u32 %v6886_v55, 16  ;;  %v1559_v18 = vshrl.u32 %v6884_v7, 16  ;;  %v1562_v19 = vshll.u32 %v6884_v7, 16  ;;  %v7995_v61 = vld [vmem:[#allocation2 + $0x84] sm:$0xfe]  }
 0x22b   : > { %4988 = vmatmul.mubr.bf16.gmra.mrb[68].mxu0 %v7976_v33  ;;  %v1584_v15 = vshrl.u32 %v6887_v10, 16  ;;  %v1587_v23 = vshll.u32 %v6887_v10, 16  ;;  %v2212_v26 = vor.u32 %v2211_v13, %v2207_v60  ;;  %v1567_v33 = vshrl.u32 %v6885_v24, 16  ;;  %v8003_v43 = vld [vmem:[#allocation2 + $0x9c] sm:$0xff]  }
 0x22c   : > { %4995 = vmatprep.mubr.bf16.mxu0 %v2205_v52  ;;  %v1578_v16 = vrot.slane %v1576_v3, 7  ;;  %v1561_v53 = vrot.slane %v1559_v18, 7  ;;  %v1570_v34 = vshll.u32 %v6885_v24, 16  ;;  %v2506_v41 = vrot.slane %v7990_v25, 1  ;;  %v7997_v12 = vld [vmem:[#allocation2 + $0x9c] sm:$0xff]  }
 0x22d   : > { %5149 = vmatmul.mubr.bf16.gmra.mrb[44].mxu1 %v2504_v63  ;;  %v1586_v32 = vrot.slane %v1584_v15, 7  ;;  %v2217_v36 = vsel %vm2073_vm10, %v2212_v26, %v2216_v30  ;;  %v1569_v40 = vrot.slane %v1567_v33, 7  ;;  %v2219_v47 = vshrl.u32 %v7993_v31, 16  ;;  %v7996_v63 = vld [vmem:[#allocation2 + $0x8c] ss:$0 sps:$4 sm:$0x11]  }
 0x22e   : > { %5156 = vmatprep.mubr.bf16.mxu1 %v7981_v54  ;;  %v1581_v27 = vor.u32 %v1579_v5, %v1578_v16  ;;  %v1582_v28 = vrot.slane %v1578_v16, 4  ;;  %v1564_v9 = vor.u32 %v1562_v19, %v1561_v53  ;;  %v1565_v17 = vrot.slane %v1561_v53, 4  ;;  %v7994_v54 = vld [vmem:[#allocation2 + $0x98] ss:$0 sps:$4 sm:$0x11]   ;;  %v8001_v16 = vld [vmem:[#allocation2 + $0x90] sm:$0xff]  }
 0x22f   : > { %v1589_v37 = vor.u32 %v1587_v23, %v1586_v32  ;;  %v1591_v38 = vrot.slane %v1586_v32, 4  ;;  %v2221_v48 = vshll.u32 %v7993_v31, 16  ;;  %v1572_v51 = vor.u32 %v1570_v34, %v1569_v40  ;;  %v8004_v13 = vld [vmem:[#allocation2 + $0xa4] ss:$0 sps:$4 sm:$0x11]   ;;  %v8009_v15 = vld [vmem:[#allocation2 + $0xa8] sm:$0xff]  }
 0x230   : > { %v1747_v1 = vsel %vm8981_vm8, %v1581_v27, %v1746_v8  ;;  %v1740_v44 = vsel %vm8981_vm8, %v1564_v9, %v1739_v22  ;;  %v1574_v52 = vrot.slane %v1569_v40, 4  ;;  %v2507_v55 = vsel %vm2474_vm11, %v2505_v35, %v2506_v41  ;;  %v8005_v18 = vld [vmem:[#allocation2 + $0x90] sm:$0xfe]   ;;  %v8007_v31 = vld [vmem:[#allocation2 + $0xa8] sm:$0xff]   ;;  %v8008_v32 = vld [vmem:[#allocation2 + $0x9c] sm:$0xff]  }
 0x231   : > { %1748 = vst [vmem:[#allocation2 + $0xc0] sm:$0xf] %v1747_v1  ;;  %1741 = vst [vmem:[#allocation2 + $0xb4] sm:$0xf] %v1740_v44  ;;  %v1590_v49 = vsel %vm8991_vm9, %v1582_v28, %v1589_v37  ;;  %v1751_v50 = vsel %vm8962_vm4, %v1591_v38, %v1750_v29  ;;  %v2223_v56 = vrot.slane %v2221_v48, 1  ;;  %v2231_v57 = vshrl.u32 %v8003_v43, 16 }
 0x232   : > { %1749 = vst [vmem:[#allocation2 + $0xc4] sm:$0xf] %v1590_v49  ;;  %1752 = vst [vmem:[#allocation2 + $0xc8] sm:$0x1] %v1751_v50  ;;  %v1573_v58 = vsel %vm8991_vm9, %v1565_v17, %v1572_v51  ;;  %v1744_v59 = vsel %vm8962_vm4, %v1574_v52, %v1743_v20  ;;  %v2226_v60 = vshll.u32 %v7994_v54, 16  ;;  %v2508_v7 = vrot.slane %v7995_v61, 1 }
 0x233   : > { %4996 = vmatmul.mubr.bf16.gmra.mrb[72].mxu0 %v7985_v21  ;;  %1742 = vst [vmem:[#allocation2 + $0xb8] sm:$0xf] %v1573_v58  ;;  %1745 = vst [vmem:[#allocation2 + $0xbc] sm:$0x1] %v1744_v59  ;;  %v2224_v3 = vor.u32 %v2223_v56, %v2219_v47  ;;  %v2509_v8 = vrot.slane %v7996_v63, 1  ;;  %v2233_v10 = vshll.u32 %v8003_v43, 16 }
 0x234   : > { %5003 = vmatprep.mubr.bf16.mxu0 %v2217_v36  ;;  %v2228_v5 = vrot.slane %v2226_v60, 1  ;;  %v2238_v21 = vshll.u32 %v8004_v13, 16  ;;  %v2243_v24 = vshrl.u32 %v8009_v15, 16  ;;  %v2245_v26 = vshll.u32 %v8009_v15, 16  ;;  %v8011_v1 = vld [vmem:[#allocation2 + $0x9c] sm:$0xfe]  }
 0x235   : > { %5157 = vmatmul.mubr.bf16.gmra.mrb[48].mxu1 %v2507_v55  ;;  %v2235_v14 = vrot.slane %v2233_v10, 1  ;;  %v2510_v22 = vsel %vm2474_vm11, %v2508_v7, %v2509_v8  ;;  %v2511_v27 = vrot.slane %v8005_v18, 1  ;;  %v8010_v28 = vld [vmem:[#allocation2 + $0xb0] ss:$0 sps:$4 sm:$0x11]   ;;  %v2512_v53 = vrot.slane %v8006_v0, 1 }
 0x236   : > { %5164 = vmatprep.mubr.bf16.mxu1 %v7991_v45  ;;  %v2229_v4 = vsel %vm2073_vm10, %v2224_v3, %v2228_v5  ;;  %v2240_v23 = vrot.slane %v2238_v21, 1  ;;  %v2247_v29 = vrot.slane %v2245_v26, 1  ;;  %v2250_v30 = vshll.u32 %v8010_v28, 16  ;;  %v8012_v34 = vld [vmem:[#allocation2 + $0xa4] ss:$0 sps:$4 sm:$0x11]  }
 0x237   : > { %v2236_v19 = vor.u32 %v2235_v14, %v2231_v57  ;;  %v2513_v17 = vsel %vm2474_vm11, %v2511_v27, %v2512_v53  ;;  %v2514_v43 = vrot.slane %v8011_v1, 1  ;;  %v2515_v44 = vrot.slane %v8012_v34, 1  ;;  %v8025_v45 = vld [vmem:[#allocation12 + $0x1a0] sm:$0xff]   ;;  %v8026_v49 = vld [vmem:[#allocation12 + $0x1e8] sm:$0xff]   ;;  %v8017_v50 = vld [vmem:[#allocation2 + $0xa8] sm:$0xff]   ;;  %v1025_v13 = vpop.f32.mrb[4].mxu1 }
 0x238   : > { %v2248_v33 = vor.u32 %v2247_v29, %v2243_v24  ;;  %v2252_v35 = vrot.slane %v2250_v30, 1  ;;  %v8021_v51 = vld [vmem:[#allocation2 + $0xa8] sm:$0xfe]   ;;  %7404 = vmatpush3.bf16.msra.mxu1 %v8025_v45  ;;  %v8027_v52 = vld [vmem:[#allocation12 + $0x1a8] sm:$0xff]   ;;  %v8035_v5 = vld [vmem:[#allocation2 + $0x18] sm:$0xff]   ;;  %v9265_v14 = vpop.f32.mrb[32].mxu0 }
 0x239   : > { %v2241_v25 = vsel %vm2073_vm10, %v2236_v19, %v2240_v23  ;;  %7405 = vmatprep.subr.bf16.mxu1 %v8026_v49  ;;  %v2516_v54 = vsel %vm2474_vm11, %v2514_v43, %v2515_v44  ;;  %v8022_v56 = vld [vmem:[#allocation2 + $0xb0] ss:$0 sps:$4 sm:$0x11]   ;;  %v8033_v57 = vld [vmem:[#allocation12 + $0x1f0] sm:$0xff]   ;;  %v2517_v63 = vrot.slane %v8021_v51, 1  ;;  %v3679_v0 = vshll.u32 %v8035_v5, 16 }
 0x23a   : > { %v8019_v9 = vld [vmem:[#allocation2 + $0xb4] sm:$0xff]   ;;  %v8020_v20 = vld [vmem:[#allocation2 + $0xbc] ss:$0 sps:$4 sm:$0x11]   ;;  %v2253_v38 = vsel %vm2073_vm10, %v2248_v33, %v2252_v35  ;;  %v8031_v59 = vld [vmem:[#allocation2 + $0xc] sm:$0xfe]  }
 0x23b   : > { %5004 = vmatmul.mubr.bf16.gmra.mrb[76].mxu0 %v7992_v46  ;;  %v2255_v36 = vshrl.u32 %v8019_v9, 16  ;;  %v2257_v37 = vshll.u32 %v8019_v9, 16  ;;  %v2262_v41 = vshll.u32 %v8020_v20, 16  ;;  %v8013_v46 = vld [vmem:[#allocation2 + $0xb4] sm:$0xff]   ;;  %v8034_v61 = vld [vmem:[#allocation12 + $0x1b0] sm:$0xff]   ;;  %v2518_v3 = vrot.slane %v8022_v56, 1 }
 0x23c   : > { %5011 = vmatprep.mubr.bf16.mxu0 %v2229_v4  ;;  %v8029_v58 = vld [vmem:[#allocation2 + $0xb4] sm:$0xfe]   ;;  %v8032_v60 = vld [vmem:[#allocation2 + $0x14] ss:$0 sps:$4 sm:$0x11]   ;;  %7406 = vmatpush3.bf16.msra.mxu1 %v8027_v52  ;;  %v3275_v10 = vrot.slane %v8031_v59, 1 }
 0x23d   : > { %5165 = vmatmul.mubr.bf16.gmra.mrb[52].mxu1 %v2510_v22  ;;  %v2259_v40 = vrot.slane %v2257_v37, 1  ;;  %v2264_v48 = vrot.slane %v2262_v41, 1  ;;  %7407 = vmatprep.subr.bf16.mxu1 %v8033_v57  ;;  %v8036_v7 = vld [vmem:[#allocation2 + $0x20] ss:$0 sps:$4 sm:$0x11]   ;;  %v2520_v8 = vrot.slane %v8029_v58, 1  ;;  %v2519_v23 = vsel %vm2474_vm11, %v2517_v63, %v2518_v3 }
 0x23e   : > { %5172 = vmatprep.mubr.bf16.mxu1 %v7997_v12  ;;  %v8037_v12 = vld [vmem:[#allocation12 + $0x1f8] sm:$0xff]   ;;  %v8039_v4 = vld [vmem:[#allocation12 + $0x200] sm:$0xff]   ;;  %v3276_v21 = vrot.slane %v8032_v60, 1  ;;  %v3677_v24 = vshrl.u32 %v8035_v5, 16  ;;  %v3681_v26 = vrot.slane %v3679_v0, 1  ;;  %v8045_v34 = vld [vmem:[#allocation2 + $0x24] sm:$0xff]  }
 0x23f   : > { %v2260_v47 = vor.u32 %v2259_v40, %v2255_v36  ;;  %v8028_v18 = vld [vmem:[#allocation2 + $0xb4] sm:$0xff]   ;;  %v8030_v19 = vld [vmem:[#allocation2 + $0xbc] ss:$0 sps:$4 sm:$0x11]   ;;  %v8040_v15 = vld [vmem:[#allocation2 + $0xc] sm:$0xff]   ;;  %7643 = vmatprep.subr.bf16.mxu0 %v8039_v4  ;;  %v3689_v43 = vshrl.u32 %v8045_v34, 16 }
 0x240   : > { %v8038_v22 = vld [vmem:[#allocation12 + $0x1b8] sm:$0xff]   ;;  %7408 = vmatpush3.bf16.msra.mxu1 %v8034_v61  ;;  %v2876_v28 = vshrl.u32 %v8040_v15, 16  ;;  %v2878_v53 = vshll.u32 %v8040_v15, 16  ;;  %v3277_v29 = vsel %vm2474_vm11, %v3275_v10, %v3276_v21  ;;  %v2521_v35 = vrot.slane %v8030_v19, 1  ;;  %v8049_v56 = vld [vmem:[#allocation2 + $0x24] sm:$0xfe]  }
 0x241   : > { %v2265_v55 = vsel %vm2073_vm10, %v2260_v47, %v2264_v48  ;;  %7409 = vmatprep.subr.bf16.mxu1 %v8037_v12  ;;  %v8041_v27 = vld [vmem:[#allocation2 + $0x14] ss:$0 sps:$4 sm:$0x11]   ;;  %v3682_v20 = vor.u32 %v3681_v26, %v3677_v24  ;;  %v8046_v41 = vld [vmem:[#allocation2 + $0x2c] ss:$0 sps:$4 sm:$0x11]  }
 0x242   : > { %v2883_v30 = vshll.u32 %v8041_v27, 16  ;;  %v2880_v33 = vrot.slane %v2878_v53, 1  ;;  %v2522_v45 = vsel %vm2474_vm11, %v2520_v8, %v2521_v35  ;;  %v8048_v47 = vld [vmem:[#allocation2 + $0x20] ss:$0 sps:$4 sm:$0x11]   ;;  %v8052_v58 = vld [vmem:[#allocation2 + $0x30] sm:$0xff]  }
 0x243   : > { %5012 = vmatmul.mubr.bf16.gmra.mrb[80].mxu0 %v8001_v16  ;;  %v8024_v16 = vld [vmem:[#allocation2 + $0xc0] sm:$0xff]   ;;  %v8050_v57 = vld [vmem:[#allocation2 + $0x2c] ss:$0 sps:$4 sm:$0x11]   ;;  %v8044_v60 = vld [vmem:[#allocation2 + $0x18] sm:$0xff]   ;;  %v3281_v3 = vrot.slane %v8049_v56, 1 }
 0x244   : > { %5019 = vmatprep.mubr.bf16.mxu0 %v2241_v25  ;;  %v3684_v25 = vshll.u32 %v8036_v7, 16  ;;  %7410 = vmatpush3.bf16.msra.mxu1 %v8038_v22  ;;  %v2885_v9 = vrot.slane %v2883_v30, 1  ;;  %v2881_v36 = vor.u32 %v2880_v33, %v2876_v28  ;;  %v8053_v5 = vld [vmem:[#allocation2 + $0x38] ss:$0 sps:$4 sm:$0x11]   ;;  %v3282_v7 = vrot.slane %v8050_v57, 1 }
 0x245   : > { %5173 = vmatmul.mubr.bf16.gmra.mrb[56].mxu1 %v2513_v17  ;;  %v8047_v17 = vld [vmem:[#allocation2 + $0x18] sm:$0xff]   ;;  %v3703_v8 = vshll.u32 %v8052_v58, 16  ;;  %v8054_v10 = vld [vmem:[#allocation12 + $0x208] sm:$0xff]   ;;  %v8056_v21 = vld [vmem:[#allocation2 + $0x2c] ss:$0 sps:$4 sm:$0x11]  }
 0x246   : > { %5180 = vmatprep.mubr.bf16.mxu1 %v8007_v31  ;;  %v8042_v31 = vld [vmem:[#allocation2 + $0x18] sm:$0xfe]   ;;  %v3686_v1 = vrot.slane %v3684_v25, 1  ;;  %v2890_v44 = vshll.u32 %v8047_v17, 16  ;;  %v2886_v49 = vsel %vm2073_vm10, %v2881_v36, %v2885_v9  ;;  %v8055_v12 = vld [vmem:[#allocation2 + $0x24] sm:$0xff]   ;;  %v3283_v24 = vsel %vm2474_vm11, %v3281_v3, %v3282_v7  ;;  %v8062_v9 = vld [vmem:[#allocation2 + $0x30] sm:$0xff]  }
 0x247   : > { %v3278_v37 = vrot.slane %v8042_v31, 1  ;;  %v3705_v19 = vrot.slane %v3703_v8, 1  ;;  %v2900_v15 = vshrl.u32 %v8055_v12, 16  ;;  %v2907_v25 = vshll.u32 %v8056_v21, 16  ;;  %v8057_v27 = vld [vmem:[#allocation2 + $0x30] sm:$0xfe]  }
 0x248   : > { %v3687_v48 = vsel %vm2073_vm10, %v3682_v20, %v3686_v1  ;;  %v2892_v51 = vrot.slane %v2890_v44, 1  ;;  %v8058_v53 = vld [vmem:[#allocation2 + $0x38] ss:$0 sps:$4 sm:$0x11]   ;;  %v3284_v30 = vrot.slane %v8057_v27, 1  ;;  %v8051_v31 = vld [vmem:[#allocation2 + $0x24] sm:$0xff]  }
 0x249   : > { %v8061_v1 = vld [vmem:[#allocation2 + $0x44] ss:$0 sps:$4 sm:$0x11]   ;;  %v8075_v27 = vld [vmem:[#allocation2 + $0x54] sm:$0xff]  }
 0x24a   : > { %v3720_v36 = vshll.u32 %v8061_v1, 16  ;;  %v8071_v8 = vld [vmem:[#allocation2 + $0x44] ss:$0 sps:$4 sm:$0x11]  }
 0x24b   : > { %5020 = vmatmul.mubr.bf16.gmra.mrb[84].mxu0 %v8008_v32  ;;  %v8043_v32 = vld [vmem:[#allocation2 + $0x20] ss:$0 sps:$4 sm:$0x11]   ;;  %v2931_v21 = vshll.u32 %v8071_v8, 16 }
 0x24c   : > { %5027 = vmatprep.mubr.bf16.mxu0 %v2253_v38  ;;  %v3691_v38 = vshll.u32 %v8045_v34, 16  ;;  %v3279_v40 = vrot.slane %v8043_v32, 1  ;;  %v3285_v34 = vrot.slane %v8058_v53, 1  ;;  %v8077_v53 = vld [vmem:[#allocation2 + $0x48] sm:$0xff]  }
 0x24d   : > { %5181 = vmatmul.mubr.bf16.gmra.mrb[60].mxu1 %v2516_v54  ;;  %v2888_v54 = vshrl.u32 %v8047_v17, 16 }
 0x24e   : > { %5188 = vmatprep.mubr.bf16.mxu1 %v8013_v46  ;;  %v3696_v46 = vshll.u32 %v8046_v41, 16  ;;  %v3280_v52 = vsel %vm2474_vm11, %v3278_v37, %v3279_v40  ;;  %v8063_v37 = vld [vmem:[#allocation2 + $0x38] ss:$0 sps:$4 sm:$0x11]   ;;  %v2914_v40 = vshll.u32 %v8062_v9, 16  ;;  %v3286_v44 = vsel %vm2474_vm11, %v3284_v30, %v3285_v34 }
 0x24f   : > { %v2893_v63 = vor.u32 %v2892_v51, %v2888_v54  ;;  %v3722_v51 = vrot.slane %v3720_v36, 1  ;;  %v8059_v54 = vld [vmem:[#allocation2 + $0x30] sm:$0xff]   ;;  %v3739_v30 = vshll.u32 %v8075_v27, 16  ;;  %v2938_v34 = vshll.u32 %v8077_v53, 16 }
 0x250   : > { %v3698_v59 = vrot.slane %v3696_v46, 1  ;;  %v2919_v46 = vshll.u32 %v8063_v37, 16 }
 0x251   : > { %v2940_v37 = vrot.slane %v2938_v34, 1 }
 0x253   : > { %5028 = vmatmul.mubr.bf16.gmra.mrb[88].mxu0 %v8017_v50  ;;  %v3693_v50 = vrot.slane %v3691_v38, 1  ;;  %v2912_v38 = vshrl.u32 %v8062_v9, 16  ;;  %v3741_v9 = vrot.slane %v3739_v30, 1 }
 0x254   : > { %5035 = vmatprep.mubr.bf16.mxu0 %v2265_v55  ;;  %v2895_v55 = vshll.u32 %v8048_v47, 16  ;;  %v8064_v47 = vld [vmem:[#allocation2 + $0x3c] sm:$0xfe]  }
 0x255   : > { %5189 = vmatmul.mubr.bf16.gmra.mrb[64].mxu1 %v2519_v23  ;;  %v3694_v61 = vor.u32 %v3693_v50, %v3689_v43  ;;  %v8060_v23 = vld [vmem:[#allocation2 + $0x3c] sm:$0xff]   ;;  %v8069_v50 = vld [vmem:[#allocation12 + $0x210] sm:$0xff]   ;;  %v3287_v57 = vrot.slane %v8064_v47, 1 }
 0x256   : > { %5196 = vmatprep.mubr.bf16.mxu1 %v8024_v16  ;;  %v2897_v13 = vrot.slane %v2895_v55, 1  ;;  %v3708_v16 = vshll.u32 %v8053_v5, 16  ;;  %v3715_v35 = vshll.u32 %v8060_v23, 16  ;;  %v3713_v17 = vshrl.u32 %v8060_v23, 16  ;;  %v8074_v47 = vld [vmem:[#allocation2 + $0x48] sm:$0xff]  }
 0x257   : > { %v3699_v0 = vsel %vm2073_vm10, %v3694_v61, %v3698_v59  ;;  %v8068_v59 = vld [vmem:[#allocation2 + $0x50] ss:$0 sps:$4 sm:$0x11]   ;;  %v8070_v61 = vld [vmem:[#allocation2 + $0x3c] sm:$0xff]  }
 0x258   : > { %v2898_v22 = vsel %vm2073_vm10, %v2893_v63, %v2897_v13  ;;  %v3710_v28 = vrot.slane %v3708_v16, 1  ;;  %v3717_v20 = vrot.slane %v3715_v35, 1  ;;  %v7641_v63 = vpop.f32.mrb[5].mxu1  ;;  %v3732_v7 = vshll.u32 %v8068_v59, 16 }
 0x259   : > { %v2924_v13 = vshrl.u32 %v8070_v61, 16  ;;  %v2926_v16 = vshll.u32 %v8070_v61, 16 }
 0x25a   : > { %v3718_v55 = vor.u32 %v3717_v20, %v3713_v17  ;;  %v2936_v17 = vshrl.u32 %v8077_v53, 16 }
 0x25b   : > { %5036 = vmatmul.mubr.bf16.gmra.mrb[92].mxu0 %v8028_v18  ;;  %v3701_v18 = vshrl.u32 %v8052_v58, 16 }
 0x25c   : > { %5237 = vmatprep.mubr.bf16.mxu0 %v3277_v29  ;;  %v2909_v29 = vrot.slane %v2907_v25, 1 }
 0x25d   : > { %5197 = vmatmul.mubr.bf16.gmra.mrb[68].mxu1 %v2522_v45  ;;  %v3706_v32 = vor.u32 %v3705_v19, %v3701_v18  ;;  %v2916_v45 = vrot.slane %v2914_v40, 1  ;;  %v3734_v19 = vrot.slane %v3732_v7, 1  ;;  %v8082_v40 = vld [vmem:[#allocation2 + $0x60] sm:$0xff]  }
 0x25e   : > { %5398 = vmatprep.mubr.bf16.mxu1 %v3687_v48  ;;  %v8067_v48 = vld [vmem:[#allocation2 + $0x48] sm:$0xff]   ;;  %v8087_v7 = vld [vmem:[#allocation2 + $0x60] sm:$0xfe]  }
 0x25f   : > { %v3711_v41 = vsel %vm2073_vm10, %v3706_v32, %v3710_v28  ;;  %v2917_v56 = vor.u32 %v2916_v45, %v2912_v38  ;;  %v3725_v3 = vshrl.u32 %v8067_v48, 16  ;;  %v8076_v28 = vld [vmem:[#allocation2 + $0x5c] ss:$0 sps:$4 sm:$0x11]  }
 0x260   : > { %v3744_v32 = vshll.u32 %v8076_v28, 16  ;;  %v8093_v28 = vld [vmem:[#allocation2 + $0x68] ss:$0 sps:$4 sm:$0x11]  }
 0x262   : > { %v3746_v36 = vrot.slane %v3744_v32, 1 }
 0x263   : > { %5238 = vmatmul.mubr.bf16.vlgmr.msra.gmra.mrb[96].mxu0 %v2886_v49  ;;  %v8065_v49 = vld [vmem:[#allocation2 + $0x44] ss:$0 sps:$4 sm:$0x11]  }
 0x264   : > { %7644 = vmatpush3.bf16.msra.mxu0 %v8039_v4  ;;  %5245 = vmatprep.mubr.bf16.mxu0 %v3280_v52  ;;  %v2902_v4 = vshll.u32 %v8055_v12, 16  ;;  %v2921_v52 = vrot.slane %v2919_v46, 1  ;;  %v3288_v58 = vrot.slane %v8065_v49, 1  ;;  %v3749_v46 = vshrl.u32 %v8082_v40, 16 }
 0x265   : > { %7645 = vmatprep.subr.bf16.mxu0 %v8054_v10  ;;  %5399 = vmatmul.mubr.bf16.vlgmr.msra.gmra.mrb[72].mxu1 %v8044_v60  ;;  %v3727_v60 = vshll.u32 %v8067_v48, 16  ;;  %v2941_v49 = vor.u32 %v2940_v37, %v2936_v17  ;;  %v8095_v17 = vld [vmem:[#allocation2 + $0x74] ss:$0 sps:$4 sm:$0x11]   ;;  %v8089_v37 = vld [vmem:[#allocation2 + $0x60] sm:$0xff]  }
 0x266   : > { %5406 = vmatprep.mubr.bf16.mxu1 %v3699_v0  ;;  %v2904_v26 = vrot.slane %v2902_v4, 1  ;;  %v2922_v12 = vsel %vm2073_vm10, %v2917_v56, %v2921_v52  ;;  %v3289_v18 = vsel %vm2474_vm11, %v3287_v57, %v3288_v58  ;;  %v8072_v4 = vld [vmem:[#allocation2 + $0x48] sm:$0xfe]   ;;  %v2928_v0 = vrot.slane %v2926_v16, 1  ;;  %v8085_v57 = vld [vmem:[#allocation2 + $0x54] sm:$0xff]  }
 0x267   : > { %v3729_v5 = vrot.slane %v3727_v60, 1  ;;  %v3290_v23 = vrot.slane %v8072_v4, 1  ;;  %v8083_v52 = vld [vmem:[#allocation2 + $0x68] ss:$0 sps:$4 sm:$0x11]   ;;  %v3296_v16 = vrot.slane %v8087_v7, 1 }
 0x268   : > { %7646 = vmatpush3.bf16.msra.mxu0 %v8054_v10  ;;  %v2905_v33 = vor.u32 %v2904_v26, %v2900_v15  ;;  %v3723_v10 = vsel %vm2073_vm10, %v3718_v55, %v3722_v51  ;;  %v2933_v15 = vrot.slane %v2931_v21, 1  ;;  %v2929_v26 = vor.u32 %v2928_v0, %v2924_v13  ;;  %v8086_v58 = vld [vmem:[#allocation2 + $0x5c] ss:$0 sps:$4 sm:$0x11]   ;;  %v8090_v0 = vld [vmem:[#allocation2 + $0x6c] sm:$0xff]  }
 0x269   : > { %7647 = vmatprep.subr.bf16.mxu0 %v8069_v50  ;;  %v3756_v56 = vshll.u32 %v8083_v52, 16  ;;  %v2955_v8 = vshll.u32 %v8086_v58, 16  ;;  %v8101_v52 = vld [vmem:[#allocation2 + $0x74] ss:$0 sps:$4 sm:$0x11]  }
 0x26a   : > { %v2910_v43 = vsel %vm2073_vm10, %v2905_v33, %v2909_v29  ;;  %v8066_v29 = vld [vmem:[#allocation2 + $0x3c] sm:$0xff]   ;;  %v8078_v33 = vld [vmem:[#allocation2 + $0x50] ss:$0 sps:$4 sm:$0x11]   ;;  %v2934_v1 = vsel %vm2073_vm10, %v2929_v26, %v2933_v15  ;;  %v3761_v26 = vshrl.u32 %v8090_v0, 16  ;;  %v2979_v58 = vshll.u32 %v8101_v52, 16 }
 0x26b   : > { %5246 = vmatmul.mubr.bf16.gmra.mrb[100].mxu0 %v2898_v22  ;;  %v8073_v22 = vld [vmem:[#allocation2 + $0x50] ss:$0 sps:$4 sm:$0x11]   ;;  %v2943_v38 = vshll.u32 %v8078_v33, 16  ;;  %v3758_v63 = vrot.slane %v3756_v56, 1  ;;  %v8092_v15 = vld [vmem:[#allocation2 + $0x60] sm:$0xff]  }
 0x26c   : > { %5253 = vmatprep.mubr.bf16.mxu0 %v3283_v24  ;;  %7648 = vmatpush3.bf16.msra.mxu0 %v8069_v50  ;;  %v3730_v24 = vor.u32 %v3729_v5, %v3725_v3  ;;  %v3291_v25 = vrot.slane %v8073_v22, 1  ;;  %v2948_v3 = vshrl.u32 %v8085_v57, 16  ;;  %v2950_v5 = vshll.u32 %v8085_v57, 16  ;;  %v8091_v22 = vld [vmem:[#allocation2 + $0x74] ss:$0 sps:$4 sm:$0x11]  }
 0x26d   : > { %5407 = vmatmul.mubr.bf16.gmra.mrb[76].mxu1 %v8051_v31  ;;  %v3737_v31 = vshrl.u32 %v8075_v27, 16  ;;  %v2945_v45 = vrot.slane %v2943_v38, 1  ;;  %v3768_v27 = vshll.u32 %v8091_v22, 16  ;;  %v2962_v30 = vshll.u32 %v8092_v15, 16 }
 0x26e   : > { %5414 = vmatprep.mubr.bf16.mxu1 %v3711_v41  ;;  %v3735_v35 = vsel %vm2073_vm10, %v3730_v24, %v3734_v19  ;;  %v3292_v20 = vsel %vm2474_vm11, %v3290_v23, %v3291_v25  ;;  %v8079_v41 = vld [vmem:[#allocation2 + $0x54] sm:$0xfe]   ;;  %v2952_v13 = vrot.slane %v2950_v5, 1  ;;  %v2957_v19 = vrot.slane %v2955_v8, 1  ;;  %v7076_v23 = vpop.f32.mrb[33].mxu0 }
 0x26f   : > { %v3742_v48 = vor.u32 %v3741_v9, %v3737_v31  ;;  %v3293_v50 = vrot.slane %v8079_v41, 1  ;;  %v2946_v60 = vsel %vm2073_vm10, %v2941_v49, %v2945_v45  ;;  %v3763_v25 = vshll.u32 %v8090_v0, 16  ;;  %v8094_v9 = vld [vmem:[#allocation2 + $0x6c] sm:$0xfe]  }
 0x270   : > { %v2953_v4 = vor.u32 %v2952_v13, %v2948_v3  ;;  %v9291_v31 = vadd.f32 %v7076_v23, %v9265_v14  ;;  %v3770_v34 = vrot.slane %v3768_v27, 1  ;;  %v3299_v41 = vrot.slane %v8094_v9, 1  ;;  %v8098_v14 = vld [vmem:[#allocation2 + $0x80] ss:$0 sps:$4 sm:$0x11]   ;;  %v8096_v3 = vld [vmem:[#allocation2 + $0x6c] sm:$0xff]  }
 0x271   : > { %v3747_v59 = vsel %vm2073_vm10, %v3742_v48, %v3746_v36  ;;  %v3765_v33 = vrot.slane %v3763_v25, 1  ;;  %v8097_v36 = vld [vmem:[#allocation2 + $0x78] sm:$0xff]   ;;  %v8100_v48 = vld [vmem:[#allocation2 + $0x6c] sm:$0xff]   ;;  %v2981_v7 = vrot.slane %v2979_v58, 1 }
 0x272   : > { %v2958_v53 = vsel %vm2073_vm10, %v2953_v4, %v2957_v19  ;;  %v3775_v45 = vshll.u32 %v8097_v36, 16  ;;  %v2972_v56 = vshrl.u32 %v8100_v48, 16  ;;  %v2974_v57 = vshll.u32 %v8100_v48, 16  ;;  %v8106_v19 = vld [vmem:[#allocation2 + $0x8c] ss:$0 sps:$4 sm:$0x11]  }
 0x273   : > { %5254 = vmatmul.mubr.bf16.gmra.mrb[104].mxu0 %v2910_v43  ;;  %v8080_v43 = vld [vmem:[#allocation2 + $0x5c] ss:$0 sps:$4 sm:$0x11]   ;;  %v3766_v38 = vor.u32 %v3765_v33, %v3761_v26  ;;  %v3792_v23 = vshll.u32 %v8106_v19, 16 }
 0x274   : > { %5261 = vmatprep.mubr.bf16.mxu0 %v3286_v44  ;;  %v8084_v44 = vld [vmem:[#allocation12 + $0x218] sm:$0xff]   ;;  %v3294_v51 = vrot.slane %v8080_v43, 1  ;;  %v3300_v43 = vrot.slane %v8095_v17, 1  ;;  %v8104_v33 = vld [vmem:[#allocation2 + $0x78] sm:$0xff]  }
 0x275   : > { %5415 = vmatmul.mubr.bf16.gmra.mrb[80].mxu1 %v8059_v54  ;;  %7649 = vmatprep.subr.bf16.mxu0 %v8084_v44  ;;  %v3751_v54 = vshll.u32 %v8082_v40, 16  ;;  %v3771_v49 = vsel %vm2073_vm10, %v3766_v38, %v3770_v34  ;;  %v3794_v27 = vrot.slane %v3792_v23, 1  ;;  %v8113_v17 = vld [vmem:[#allocation2 + $0x98] ss:$0 sps:$4 sm:$0x11]  }
 0x276   : > { %5422 = vmatprep.mubr.bf16.mxu1 %v3723_v10  ;;  %7650 = vmatpush3.bf16.msra.mxu0 %v8084_v44  ;;  %v3295_v61 = vsel %vm2474_vm11, %v3293_v50, %v3294_v51  ;;  %v8088_v10 = vld [vmem:[#allocation2 + $0x68] ss:$0 sps:$4 sm:$0x11]   ;;  %v3773_v44 = vshrl.u32 %v8097_v36, 16  ;;  %v3777_v51 = vrot.slane %v3775_v45, 1  ;;  %v8114_v36 = vld [vmem:[#allocation12 + $0x228] sm:$0xff]  }
 0x277   : > { %v3753_v55 = vrot.slane %v3751_v54, 1  ;;  %v3297_v21 = vrot.slane %v8088_v10, 1  ;;  %v3301_v54 = vsel %vm2474_vm11, %v3299_v41, %v3300_v43  ;;  %v3804_v41 = vshll.u32 %v8113_v17, 16  ;;  %v8123_v23 = vld [vmem:[#allocation2 + $0x98] ss:$0 sps:$4 sm:$0x11]  }
 0x278   : > { %v3778_v5 = vor.u32 %v3777_v51, %v3773_v44  ;;  %v8116_v44 = vld [vmem:[#allocation2 + $0x8c] ss:$0 sps:$4 sm:$0x11]  }
 0x279   : > { %v3298_v32 = vsel %vm2474_vm11, %v3296_v16, %v3297_v21  ;;  %v3806_v48 = vrot.slane %v3804_v41, 1  ;;  %v3003_v51 = vshll.u32 %v8116_v44, 16 }
 0x27b   : > { %5262 = vmatmul.mubr.bf16.gmra.mrb[108].mxu0 %v2922_v12  ;;  %v3754_v12 = vor.u32 %v3753_v55, %v3749_v46  ;;  %v8099_v46 = vld [vmem:[#allocation12 + $0x220] sm:$0xff]   ;;  %v3005_v58 = vrot.slane %v3003_v51, 1 }
 0x27c   : > { %5269 = vmatprep.mubr.bf16.mxu0 %v3289_v18  ;;  %v8081_v18 = vld [vmem:[#allocation2 + $0x54] sm:$0xff]   ;;  %7651 = vmatprep.subr.bf16.mxu0 %v8099_v46 }
 0x27d   : > { %5423 = vmatmul.mubr.bf16.gmra.mrb[84].mxu1 %v8066_v29  ;;  %v3759_v24 = vsel %vm2073_vm10, %v3754_v12, %v3758_v63  ;;  %v2960_v29 = vshrl.u32 %v8092_v15, 16  ;;  %7652 = vmatpush3.bf16.msra.mxu0 %v8099_v46  ;;  %v8105_v63 = vld [vmem:[#allocation2 + $0x84] sm:$0xff]   ;;  %v8107_v12 = vld [vmem:[#allocation2 + $0x78] sm:$0xff]  }
 0x27e   : > { %5430 = vmatprep.mubr.bf16.mxu1 %v3735_v35  ;;  %v2967_v35 = vshll.u32 %v8093_v28, 16  ;;  %v3785_v16 = vshrl.u32 %v8105_v63, 16  ;;  %v2984_v21 = vshrl.u32 %v8107_v12, 16  ;;  %v2986_v0 = vshll.u32 %v8107_v12, 16  ;;  %7653 = vmatprep.subr.bf16.mxu0 %v8114_v36 }
 0x280   : > { %v2988_v25 = vrot.slane %v2986_v0, 1 }
 0x281   : > { %7654 = vmatpush3.bf16.msra.mxu0 %v8114_v36  ;;  %v8125_v36 = vld [vmem:[#allocation2 + $0xa4] ss:$0 sps:$4 sm:$0x11]  }
 0x282   : > { %v2989_v34 = vor.u32 %v2988_v25, %v2984_v21 }
 0x283   : > { %5270 = vmatmul.mubr.bf16.gmra.mrb[112].mxu0 %v2934_v1  ;;  %v2964_v1 = vrot.slane %v2962_v30, 1  ;;  %v8110_v30 = vld [vmem:[#allocation2 + $0x8c] ss:$0 sps:$4 sm:$0x11]  }
 0x284   : > { %5277 = vmatprep.mubr.bf16.mxu0 %v3292_v20  ;;  %v2969_v20 = vrot.slane %v2967_v35, 1  ;;  %v3306_v9 = vrot.slane %v8110_v30, 1  ;;  %v3015_v30 = vshll.u32 %v8123_v23, 16 }
 0x285   : > { %5431 = vmatmul.mubr.bf16.gmra.mrb[88].mxu1 %v8074_v47  ;;  %v2965_v40 = vor.u32 %v2964_v1, %v2960_v29  ;;  %v3780_v47 = vshll.u32 %v8098_v14, 16 }
 0x286   : > { %5438 = vmatprep.mubr.bf16.mxu1 %v3747_v59  ;;  %v8102_v59 = vld [vmem:[#allocation2 + $0x78] sm:$0xfe]  }
 0x287   : > { %v2970_v50 = vsel %vm2073_vm10, %v2965_v40, %v2969_v20  ;;  %v3782_v55 = vrot.slane %v3780_v47, 1  ;;  %v3302_v8 = vrot.slane %v8102_v59, 1  ;;  %v9306_v59 = vld [vmem:[%s9795_s3] ss:$0 sm:$0xff] }
 0x289   : > { %v3783_v22 = vsel %vm2073_vm10, %v3778_v5, %v3782_v55  ;;  %v8118_v55 = vld [vmem:[#allocation2 + $0x98] ss:$0 sps:$4 sm:$0x11]   ;;  %v8121_v5 = vld [vmem:[#allocation2 + $0xa4] ss:$0 sps:$4 sm:$0x11]  }
 0x28a   : > { %v3816_v19 = vshll.u32 %v8121_v5, 16 }
 0x28b   : > { %5278 = vmatmul.mubr.bf16.gmra.mrb[116].mxu0 %v2946_v60  ;;  %v8103_v60 = vld [vmem:[#allocation2 + $0x80] ss:$0 sps:$4 sm:$0x11]  }
 0x28c   : > { %5285 = vmatprep.mubr.bf16.mxu0 %v3295_v61  ;;  %v2976_v61 = vrot.slane %v2974_v57, 1  ;;  %v3303_v10 = vrot.slane %v8103_v60, 1  ;;  %v8120_v60 = vld [vmem:[#allocation2 + $0x9c] sm:$0xff]  }
 0x28d   : > { %5439 = vmatmul.mubr.bf16.gmra.mrb[92].mxu1 %v8081_v18  ;;  %v3787_v18 = vshll.u32 %v8105_v63, 16  ;;  %v3309_v63 = vrot.slane %v8118_v55, 1 }
 0x28e   : > { %5446 = vmatprep.mubr.bf16.mxu1 %v3759_v24  ;;  %v2977_v13 = vor.u32 %v2976_v61, %v2972_v56  ;;  %v8108_v24 = vld [vmem:[#allocation2 + $0x80] ss:$0 sps:$4 sm:$0x11]   ;;  %v3304_v26 = vsel %vm2474_vm11, %v3302_v8, %v3303_v10  ;;  %v7078_v56 = vpop.f32.mrb[34].mxu0  ;;  %v3811_v8 = vshll.u32 %v8120_v60, 16 }
 0x28f   : > { %v3789_v4 = vrot.slane %v3787_v18, 1  ;;  %v2991_v28 = vshll.u32 %v8108_v24, 16  ;;  %v7079_v12 = vpop.f32.mrb[35].mxu0  ;;  %v3809_v18 = vshrl.u32 %v8120_v60, 16 }
 0x290   : > { %v2982_v15 = vsel %vm2073_vm10, %v2977_v13, %v2981_v7  ;;  %v8122_v13 = vld [vmem:[#allocation2 + $0x90] sm:$0xff]   ;;  %v7080_v21 = vadd.f32 %v7079_v12, %v7078_v56 }
 0x291   : > { %v3790_v29 = vor.u32 %v3789_v4, %v3785_v16  ;;  %v2993_v35 = vrot.slane %v2991_v28, 1  ;;  %v4918_v4 = vadd.f32 %v9291_v31, %v9306_v59  ;;  %v3008_v24 = vshrl.u32 %v8122_v13, 16  ;;  %v8127_v28 = vld [vmem:[#allocation2 + $0xa8] sm:$0xff]  }
 0x292   : > { %v4921_v31 = vadd.f32 %v7080_v21, %v9306_v59 }
 0x293   : > { %5286 = vmatmul.mubr.bf16.gmra.mrb[120].mxu0 %v2958_v53  ;;  %v8109_v53 = vld [vmem:[#allocation2 + $0x84] sm:$0xfe]   ;;  %v3795_v38 = vsel %vm2073_vm10, %v3790_v29, %v3794_v27  ;;  %v2994_v43 = vsel %vm2073_vm10, %v2989_v34, %v2993_v35  ;;  %v3010_v27 = vshll.u32 %v8122_v13, 16 }
 0x294   : > { %5293 = vmatprep.mubr.bf16.mxu0 %v3298_v32  ;;  %v8112_v32 = vld [vmem:[#allocation2 + $0x90] sm:$0xff]   ;;  %v3305_v1 = vrot.slane %v8109_v53, 1 }
 0x295   : > { %5447 = vmatmul.mubr.bf16.gmra.mrb[96].mxu1 %v8089_v37  ;;  %v3799_v20 = vshll.u32 %v8112_v32, 16  ;;  %v8115_v37 = vld [vmem:[#allocation2 + $0x84] sm:$0xff]   ;;  %v3797_v40 = vshrl.u32 %v8112_v32, 16  ;;  %v8119_v32 = vld [vmem:[#allocation2 + $0x90] sm:$0xff]   ;;  %v3012_v35 = vrot.slane %v3010_v27, 1 }
 0x296   : > { %5454 = vmatprep.mubr.bf16.mxu1 %v3771_v49  ;;  %v2996_v45 = vshrl.u32 %v8115_v37, 16  ;;  %v2998_v46 = vshll.u32 %v8115_v37, 16  ;;  %v3307_v47 = vsel %vm2474_vm11, %v3305_v1, %v3306_v9  ;;  %v1028_v49 = vpop.f32.mrb[6].mxu1  ;;  %v8124_v1 = vld [vmem:[#allocation2 + $0x9c] sm:$0xfe]   ;;  %v8137_v27 = vld [vmem:[#allocation2 + $0xa8] sm:$0xff]  }
 0x297   : > { %v3801_v14 = vrot.slane %v3799_v20, 1  ;;  %v7642_v10 = vpop.f32.mrb[7].mxu1  ;;  %v3017_v20 = vrot.slane %v3015_v30, 1  ;;  %v3013_v37 = vor.u32 %v3012_v35, %v3008_v24  ;;  %v8136_v30 = vld [vmem:[#allocation2 + $0xbc] ss:$0 sps:$4 sm:$0x11]  }
 0x299   : > { %v3802_v52 = vor.u32 %v3801_v14, %v3797_v40  ;;  %v3821_v40 = vshrl.u32 %v8127_v28, 16  ;;  %v8128_v14 = vld [vmem:[#allocation2 + $0xb0] ss:$0 sps:$4 sm:$0x11]  }
 0x29a   : > { %v3828_v49 = vshll.u32 %v8128_v14, 16 }
 0x29b   : > { %5294 = vmatmul.mubr.bf16.gmra.mrb[124].mxu0 %v2970_v50  ;;  %v3000_v50 = vrot.slane %v2998_v46, 1  ;;  %v3807_v7 = vsel %vm2073_vm10, %v3802_v52, %v3806_v48  ;;  %v3823_v46 = vshll.u32 %v8127_v28, 16  ;;  %v8131_v52 = vld [vmem:[#allocation2 + $0xa4] ss:$0 sps:$4 sm:$0x11]  }
 0x29c   : > { %5301 = vmatprep.mubr.bf16.mxu0 %v3301_v54  ;;  %v8117_v54 = vld [vmem:[#allocation2 + $0x90] sm:$0xfe]  }
 0x29d   : > { %5455 = vmatmul.mubr.bf16.gmra.mrb[100].mxu1 %v8096_v3  ;;  %v3001_v57 = vor.u32 %v3000_v50, %v2996_v45  ;;  %v3308_v61 = vrot.slane %v8117_v54, 1  ;;  %v8111_v3 = vld [vmem:[#allocation2 + $0x84] sm:$0xff]   ;;  %v3018_v45 = vsel %vm2073_vm10, %v3013_v37, %v3017_v20  ;;  %v8130_v50 = vld [vmem:[#allocation2 + $0x9c] sm:$0xff]   ;;  %v3825_v51 = vrot.slane %v3823_v46, 1 }
 0x29e   : > { %5462 = vmatprep.mubr.bf16.mxu1 %v3783_v22  ;;  %v3813_v22 = vrot.slane %v3811_v8, 1  ;;  %v3830_v54 = vrot.slane %v3828_v49, 1  ;;  %v3020_v55 = vshrl.u32 %v8130_v50, 16  ;;  %v3022_v56 = vshll.u32 %v8130_v50, 16  ;;  %v8134_v37 = vld [vmem:[#allocation2 + $0xa8] sm:$0xff]  }
 0x29f   : > { %v3006_v16 = vsel %vm2073_vm10, %v3001_v57, %v3005_v58  ;;  %v3310_v0 = vsel %vm2474_vm11, %v3308_v61, %v3309_v63  ;;  %v8126_v57 = vld [vmem:[#allocation2 + $0x9c] sm:$0xff]   ;;  %v3826_v58 = vor.u32 %v3825_v51, %v3821_v40  ;;  %v3027_v61 = vshll.u32 %v8131_v52, 16  ;;  %v8132_v63 = vld [vmem:[#allocation2 + $0xa8] sm:$0xfe]   ;;  %v8139_v52 = vld [vmem:[#allocation2 + $0xb4] sm:$0xfe]  }
 0x2a0   : > { %v8133_v8 = vld [vmem:[#allocation2 + $0xb0] ss:$0 sps:$4 sm:$0x11]   ;;  %v3034_v20 = vshll.u32 %v8137_v27, 16 }
 0x2a1   : > { %v3831_v23 = vsel %vm2073_vm10, %v3826_v58, %v3830_v54 }
 0x2a3   : > { %5302 = vmatmul.mubr.bf16.gmra.mrb[128].mxu0 %v2982_v15 }
 0x2a4   : > { %5309 = vmatprep.mubr.bf16.mxu0 %v3304_v26  ;;  %v3818_v26 = vrot.slane %v3816_v19, 1 }
 0x2a5   : > { %5463 = vmatmul.mubr.bf16.gmra.mrb[104].mxu1 %v8104_v33  ;;  %v3814_v33 = vor.u32 %v3813_v22, %v3809_v18  ;;  %v3314_v18 = vrot.slane %v8132_v63, 1  ;;  %v3315_v22 = vrot.slane %v8133_v8, 1 }
 0x2a6   : > { %5470 = vmatprep.mubr.bf16.mxu1 %v3795_v38  ;;  %v3311_v38 = vrot.slane %v8124_v1, 1  ;;  %v3840_v1 = vshll.u32 %v8136_v30, 16 }
 0x2a7   : > { %v3819_v44 = vsel %vm2073_vm10, %v3814_v33, %v3818_v26 }
 0x2ab   : > { %5310 = vmatmul.mubr.bf16.gmra.mrb[132].mxu0 %v2994_v43  ;;  %v3312_v43 = vrot.slane %v8125_v36, 1 }
 0x2ac   : > { %5317 = vmatprep.mubr.bf16.mxu0 %v3307_v47  ;;  %v8129_v47 = vld [vmem:[#allocation12 + $0x230] sm:$0xff]  }
 0x2ad   : > { %5471 = vmatmul.mubr.bf16.gmra.mrb[108].mxu1 %v8111_v3  ;;  %v3313_v48 = vsel %vm2474_vm11, %v3311_v38, %v3312_v43  ;;  %7655 = vmatprep.subr.bf16.mxu0 %v8129_v47  ;;  %v3842_v43 = vrot.slane %v3840_v1, 1 }
 0x2ae   : > { %5478 = vmatprep.mubr.bf16.mxu1 %v3807_v7  ;;  %7656 = vmatpush3.bf16.msra.mxu0 %v8129_v47  ;;  %v3024_v7 = vrot.slane %v3022_v56, 1  ;;  %v8142_v47 = vld [vmem:[#allocation2 + $0xc0] sm:$0xff]  }
 0x2b1   : > { %v7187_v15 = vpop.f32.mrb[8].mxu1 }
 0x2b2   : > { %v7188_v25 = vpop.f32.mrb[9].mxu1 }
 0x2b3   : > { %5318 = vmatmul.mubr.bf16.gmra.mrb[136].mxu0 %v3006_v16  ;;  %v7189_v53 = vadd.f32 %v7188_v25, %v7187_v15  ;;  %v7190_v29 = vpop.f32.mrb[10].mxu1  ;;  %v3029_v16 = vrot.slane %v3027_v61, 1  ;;  %v8135_v15 = vld [vmem:[#allocation2 + $0xb4] sm:$0xff]  }
 0x2b4   : > { %5325 = vmatprep.mubr.bf16.mxu0 %v3310_v0  ;;  %v7191_v34 = vpop.f32.mrb[11].mxu1  ;;  %v3025_v0 = vor.u32 %v3024_v7, %v3020_v55  ;;  %v3835_v35 = vshll.u32 %v8135_v15, 16  ;;  %v3317_v7 = vrot.slane %v8139_v52, 1 }
 0x2b5   : > { %v9314_v9 = vadd.f32 %v7189_v53, %v4918_v4  ;;  %v7192_v17 = vadd.f32 %v7191_v34, %v7190_v29  ;;  %5479 = vmatmul.mubr.bf16.gmra.mrb[112].mxu1 %v8119_v32  ;;  %v3316_v29 = vsel %vm2474_vm11, %v3314_v18, %v3315_v22  ;;  %v3833_v34 = vshrl.u32 %v8135_v15, 16 }
 0x2b6   : > { %5486 = vmatprep.mubr.bf16.mxu1 %v3819_v44  ;;  %v3030_v53 = vsel %vm2073_vm10, %v3025_v0, %v3029_v16  ;;  %v3837_v38 = vrot.slane %v3835_v35, 1  ;;  %v8144_v0 = vld [vmem:[#allocation12 + $0x238] sm:$0xff]  }
 0x2b7   : > { %v9316_v41 = vadd.f32 %v7192_v17, %v4921_v31  ;;  %v8138_v31 = vld [vmem:[#allocation2 + $0xb0] ss:$0 sps:$4 sm:$0x11]   ;;  %v3032_v17 = vshrl.u32 %v8137_v27, 16  ;;  %7657 = vmatprep.subr.bf16.mxu0 %v8144_v0 }
 0x2b8   : > { %v3039_v46 = vshll.u32 %v8138_v31, 16  ;;  %7658 = vmatpush3.bf16.msra.mxu0 %v8144_v0 }
 0x2ba   : > { %v3041_v58 = vrot.slane %v3039_v46, 1  ;;  %v8150_v46 = vld [vmem:[#allocation2 + $0xc0] sm:$0xff]  }
 0x2bb   : > { %5326 = vmatmul.mubr.bf16.gmra.mrb[140].mxu0 %v3018_v45  ;;  %v3036_v45 = vrot.slane %v3034_v20, 1 }
 0x2bc   : > { %5333 = vmatprep.mubr.bf16.mxu0 %v3313_v48  ;;  %v3838_v48 = vor.u32 %v3837_v38, %v3833_v34 }
 0x2bd   : > { %5487 = vmatmul.mubr.bf16.gmra.mrb[116].mxu1 %v8126_v57  ;;  %v3037_v57 = vor.u32 %v3036_v45, %v3032_v17  ;;  %v8147_v45 = vld [vmem:[#allocation2 + $0xc0] sm:$0xfe]  }
 0x2be   : > { %v7081_v60 = vpop.f32.mrb[36].mxu0  ;;  %5494 = vmatprep.mubr.bf16.mxu1 %v3831_v23  ;;  %v3843_v61 = vsel %vm2073_vm10, %v3838_v48, %v3842_v43 }
 0x2bf   : > { %v7082_v3 = vpop.f32.mrb[37].mxu0  ;;  %v7193_v5 = vpop.f32.mrb[12].mxu1 }
 0x2c0   : > { %v7083_v10 = vadd.f32 %v7082_v3, %v7081_v60  ;;  %v7084_v12 = vpop.f32.mrb[38].mxu0  ;;  %v7194_v13 = vpop.f32.mrb[13].mxu1  ;;  %v8140_v60 = vld [vmem:[#allocation2 + $0xbc] ss:$0 sps:$4 sm:$0x11]  }
 0x2c1   : > { %v7195_v19 = vadd.f32 %v7194_v13, %v7193_v5  ;;  %v7085_v21 = vpop.f32.mrb[39].mxu0  ;;  %v7196_v4 = vpop.f32.mrb[14].mxu1  ;;  %v3845_v13 = vshrl.u32 %v8142_v47, 16 }
 0x2c2   : > { %v4926_v24 = vadd.f32 %v7083_v10, %v9306_v59  ;;  %v7086_v26 = vadd.f32 %v7085_v21, %v7084_v12  ;;  %v7197_v25 = vpop.f32.mrb[15].mxu1  ;;  %v3042_v10 = vsel %vm2073_vm10, %v3037_v57, %v3041_v58  ;;  %v3318_v12 = vrot.slane %v8140_v60, 1 }
 0x2c3   : > { %v7198_v28 = vadd.f32 %v7197_v25, %v7196_v4  ;;  %5334 = vmatmul.mubr.bf16.gmra.mrb[144].mxu0 %v3030_v53  ;;  %v3847_v21 = vshll.u32 %v8142_v47, 16  ;;  %v8141_v25 = vld [vmem:[#allocation2 + $0xb4] sm:$0xff]   ;;  %v8146_v53 = vld [vmem:[#allocation2 + $0xbc] ss:$0 sps:$4 sm:$0x11]   ;;  %v3058_v60 = vshll.u32 %v8150_v46, 16 }
 0x2c4   : > { %v9325_v32 = vadd.f32 %v7195_v19, %v4926_v24  ;;  %v4929_v33 = vadd.f32 %v7086_v26, %v9306_v59  ;;  %5341 = vmatprep.mubr.bf16.mxu0 %v3316_v29  ;;  %v8143_v19 = vld [vmem:[#allocation2 + $0xc8] ss:$0 sps:$4 sm:$0x11]   ;;  %v3319_v4 = vsel %vm2474_vm11, %v3317_v7, %v3318_v12  ;;  %v8145_v26 = vld [vmem:[#allocation2 + $0xb4] sm:$0xff]   ;;  %v3051_v38 = vshll.u32 %v8146_v53, 16 }
 0x2c5   : > { %5495 = vmatmul.mubr.bf16.gmra.mrb[120].mxu1 %v8134_v37  ;;  %v3849_v15 = vrot.slane %v3847_v21, 1  ;;  %v3852_v23 = vshll.u32 %v8143_v19, 16  ;;  %v3044_v1 = vshrl.u32 %v8145_v26, 16  ;;  %v3046_v37 = vshll.u32 %v8145_v26, 16  ;;  %v8154_v53 = vld [vmem:[#allocation2 + $0x18] sm:$0xfe]  }
 0x2c6   : > { %v9328_v36 = vadd.f32 %v7198_v28, %v4929_v33  ;;  %v7087_v40 = vpop.f32.mrb[40].mxu0  ;;  %5502 = vmatprep.mubr.bf16.mxu1 %v3843_v61  ;;  %v3060_v12 = vrot.slane %v3058_v60, 1 }
 0x2c7   : > { %v7088_v14 = vpop.f32.mrb[41].mxu0  ;;  %v3850_v29 = vor.u32 %v3849_v15, %v3845_v13  ;;  %v3854_v30 = vrot.slane %v3852_v23, 1  ;;  %v3048_v48 = vrot.slane %v3046_v37, 1  ;;  %v1094_v13 = vld [vmem:[#allocation2 + $0xcc] sm:$0x1] }
 0x2c8   : > { %v7199_v44 = vpop.f32.mrb[16].mxu1  ;;  %v7089_v49 = vadd.f32 %v7088_v14, %v7087_v40  ;;  %v7090_v50 = vpop.f32.mrb[42].mxu0  ;;  %v1095_v0 = vsel %vm8962_vm4, 0, %v1094_v13 }
 0x2c9   : > { %v7200_v51 = vpop.f32.mrb[17].mxu1  ;;  %v7091_v55 = vpop.f32.mrb[43].mxu0  ;;  %v3855_v40 = vsel %vm2073_vm10, %v3850_v29, %v3854_v30  ;;  %v3049_v57 = vor.u32 %v3048_v48, %v3044_v1  ;;  %1096 = vst [vmem:[#allocation2 + $0xcc] sm:$0x1] %v1095_v0  ;;  %v4076_v1 = vrot.slane %v8154_v53, 1 }
 0x2ca   : > { %v7201_v54 = vadd.f32 %v7200_v51, %v7199_v44  ;;  %v7202_v56 = vpop.f32.mrb[18].mxu1  ;;  %v4934_v63 = vadd.f32 %v7089_v49, %v9306_v59  ;;  %v7092_v3 = vadd.f32 %v7091_v55, %v7090_v50  ;;  %v3053_v49 = vrot.slane %v3051_v38, 1  ;;  %v8148_v50 = vld [vmem:[#allocation2 + $0xc8] ss:$0 sps:$4 sm:$0x11]   ;;  %v8187_v51 = vld [vmem:[#allocation13] sm:$0xff]  }
 0x2cb   : > { %v7203_v5 = vpop.f32.mrb[19].mxu1  ;;  %5342 = vmatmul.mubr.bf16.gmra.mrb[148].mxu0 %v3042_v10  ;;  %v3320_v55 = vrot.slane %v8147_v45, 1  ;;  %v3321_v58 = vrot.slane %v8148_v50, 1  ;;  %7691 = vmatprep.subr.bf16.mxu1 %v8187_v51  ;;  %v8158_v38 = vld [vmem:[#allocation2 + $0x2c] ss:$0 sps:$4 sm:$0x11]  }
 0x2cc   : > { %v7204_v8 = vadd.f32 %v7203_v5, %v7202_v56  ;;  %v9333_v16 = vadd.f32 %v7201_v54, %v4934_v63  ;;  %v4937_v18 = vadd.f32 %v7092_v3, %v9306_v59  ;;  %5349 = vmatprep.mubr.bf16.mxu0 %v3319_v4  ;;  %v3056_v56 = vshrl.u32 %v8150_v46, 16  ;;  %v8149_v63 = vld [vmem:[#allocation2 + $0xc0] sm:$0xff]   ;;  %v8151_v5 = vld [vmem:[#allocation2 + $0xc8] ss:$0 sps:$4 sm:$0x11]   ;;  %7692 = vmatpush3.bf16.msra.mxu1 %v8187_v51 }
 0x2cd   : > { %5503 = vmatmul.mubr.bf16.gmra.mrb[124].mxu1 %v8141_v25  ;;  %v3054_v7 = vsel %vm2073_vm10, %v3049_v57, %v3053_v49  ;;  %v3063_v4 = vshll.u32 %v8151_v5, 16  ;;  %v8159_v45 = vld [vmem:[#allocation2 + $0x30] sm:$0xfe]   ;;  %v8188_v51 = vld [vmem:[#allocation13 + $0x8] sm:$0xff]  }
 0x2ce   : > { %v9337_v22 = vadd.f32 %v7204_v8, %v4937_v18  ;;  %v7093_v24 = vpop.f32.mrb[44].mxu0  ;;  %5510 = vmatprep.mubr.bf16.mxu1 %v3855_v40  ;;  %v3322_v8 = vsel %vm2474_vm11, %v3320_v55, %v3321_v58  ;;  %v1150_v18 = vld [vmem:[#allocation2 + $0xd4] sm:$0x1]  ;;  %v8160_v58 = vld [vmem:[#allocation2 + $0x38] ss:$0 sps:$4 sm:$0x11]   ;;  %7693 = vmatprep.subr.bf16.mxu1 %v8188_v51 }
 0x2cf   : > { %v7094_v27 = vpop.f32.mrb[45].mxu0  ;;  %v1151_v15 = vsel %vm8967_vm5, 0, %v1150_v18 }
 0x2d0   : > { %v7205_v28 = vpop.f32.mrb[20].mxu1  ;;  %v7095_v33 = vadd.f32 %v7094_v27, %v7093_v24  ;;  %v7096_v34 = vpop.f32.mrb[46].mxu0  ;;  %1152 = vst [vmem:[#allocation2 + $0xd4] sm:$0x1] %v1151_v15  ;;  %v1217_v46 = vld [vmem:[#allocation2 + $0xcc] sm:$0xf]  ;;  %7694 = vmatpush3.bf16.msra.mxu1 %v8188_v51 }
 0x2d1   : > { %v7206_v35 = vpop.f32.mrb[21].mxu1  ;;  %v7097_v17 = vpop.f32.mrb[47].mxu0 }
 0x2d2   : > { %v7207_v31 = vadd.f32 %v7206_v35, %v7205_v28  ;;  %v7208_v20 = vpop.f32.mrb[22].mxu1  ;;  %v4942_v43 = vadd.f32 %v7095_v33, %v9306_v59  ;;  %v7098_v14 = vadd.f32 %v7097_v17, %v7096_v34  ;;  %v3065_v28 = vrot.slane %v3063_v4, 1  ;;  %v8155_v34 = vld [vmem:[#allocation2 + $0x20] ss:$0 sps:$4 sm:$0x11]  }
 0x2d3   : > { %v7209_v44 = vpop.f32.mrb[23].mxu1  ;;  %5350 = vmatmul.mubr.bf16.gmra.mrb[152].mxu0 %v3054_v7  ;;  %v3061_v33 = vor.u32 %v3060_v12, %v3056_v56  ;;  %v4077_v37 = vrot.slane %v8155_v34, 1 }
 0x2d4   : > { %v7210_v47 = vadd.f32 %v7209_v44, %v7208_v20  ;;  %v9341_v52 = vadd.f32 %v7207_v31, %v4942_v43  ;;  %v4945_v54 = vadd.f32 %v7098_v14, %v9306_v59  ;;  %5357 = vmatprep.mubr.bf16.mxu0 %v3322_v8  ;;  %v8157_v31 = vld [vmem:[#allocation2 + $0x24] sm:$0xfe]   ;;  %v8161_v8 = vld [vmem:[#allocation2 + $0x3c] sm:$0xfe]  }
 0x2d5   : > { %5511 = vmatmul.mubr.bf16.gmra.mrb[128].mxu1 %v8149_v63  ;;  %v3066_v14 = vsel %vm2073_vm10, %v3061_v33, %v3065_v28  ;;  %v4078_v48 = vsel %vm2474_vm11, %v4076_v1, %v4077_v37  ;;  %v4079_v5 = vrot.slane %v8157_v31, 1 }
 0x2d6   : > { %v9344_v61 = vadd.f32 %v7210_v47, %v4945_v54  ;;  %v7099_v3 = vpop.f32.mrb[48].mxu0  ;;  %v1218_v54 = vsel %vm8981_vm8, %v8997_v6, %v1217_v46  ;;  %v4080_v6 = vrot.slane %v8158_v38, 1 }
 0x2d7   : > { %v7100_v10 = vpop.f32.mrb[49].mxu0  ;;  %v1221_v47 = vld [vmem:[#allocation2 + $0xd4] sm:$0x1]  ;;  %1219 = vst [vmem:[#allocation2 + $0xcc] sm:$0xf] %v1218_v54 }
 0x2d8   : > { %v7101_v19 = vadd.f32 %v7100_v10, %v7099_v3  ;;  %v7102_v21 = vpop.f32.mrb[50].mxu0  ;;  %v7211_v23 = vpop.f32.mrb[24].mxu1  ;;  %v1222_v55 = vsel %vm8962_vm4, %v1177_v11, %v1221_v47  ;;  %v4082_v11 = vrot.slane %v8159_v45, 1  ;;  %v4083_v10 = vrot.slane %v8160_v58, 1  ;;  %v8165_v47 = vld [vmem:[#allocation2 + $0x54] sm:$0xfe]  }
 0x2d9   : > { %v7103_v24 = vpop.f32.mrb[51].mxu0  ;;  %v7212_v25 = vpop.f32.mrb[25].mxu1  ;;  %1223 = vst [vmem:[#allocation2 + $0xd4] sm:$0x1] %v1222_v55  ;;  %v4081_v0 = vsel %vm2474_vm11, %v4079_v5, %v4080_v6 }
 0x2da   : > { %v4950_v26 = vadd.f32 %v7101_v19, %v9306_v59  ;;  %v7104_v27 = vadd.f32 %v7103_v24, %v7102_v21  ;;  %v7213_v29 = vadd.f32 %v7212_v25, %v7211_v23  ;;  %v7214_v30 = vpop.f32.mrb[26].mxu1  ;;  %v8162_v19 = vld [vmem:[#allocation2 + $0x44] ss:$0 sps:$4 sm:$0x11]   ;;  %v8163_v21 = vld [vmem:[#allocation2 + $0x48] sm:$0xfe]   ;;  %v4084_v24 = vsel %vm2474_vm11, %v4082_v11, %v4083_v10 }
 0x2db   : > { %v7215_v42 = vpop.f32.mrb[27].mxu1  ;;  %5358 = vmatmul.mubr.bf16.gmra.mrb[156].mxu0 %v3066_v14  ;;  %v4085_v23 = vrot.slane %v8161_v8, 1  ;;  %v4086_v33 = vrot.slane %v8162_v19, 1  ;;  %v4088_v31 = vrot.slane %v8163_v21, 1  ;;  %v4091_v11 = vrot.slane %v8165_v47, 1 }
 0x2dc   : > { %v4953_v35 = vadd.f32 %v7104_v27, %v9306_v59  ;;  %v9354_v17 = vadd.f32 %v7213_v29, %v4950_v26  ;;  %v7216_v20 = vadd.f32 %v7215_v42, %v7214_v30  ;;  %7659 = vmatprep.mubr.bf16.mxu0 %v4078_v48  ;;  %v8164_v27 = vld [vmem:[#allocation2 + $0x50] ss:$0 sps:$4 sm:$0x11]   ;;  %v8166_v48 = vld [vmem:[#allocation2 + $0x5c] ss:$0 sps:$4 sm:$0x11]  }
 0x2dd   : > { %v4089_v38 = vrot.slane %v8164_v27, 1  ;;  %v4087_v58 = vsel %vm2474_vm11, %v4085_v23, %v4086_v33 }
 0x2de   : > { %v7105_v40 = vpop.f32.mrb[52].mxu0  ;;  %v9356_v43 = vadd.f32 %v7216_v20, %v4953_v35  ;;  %v8152_v28 = vld [vmem:[#allocation2 + $0xcc] sm:$0xff]  }
 0x2df   : > { %v7106_v44 = vpop.f32.mrb[53].mxu0  ;;  %v3857_v34 = vshrl.u32 %v8152_v28, 16  ;;  %v3859_v35 = vshll.u32 %v8152_v28, 16  ;;  %v4090_v5 = vsel %vm2474_vm11, %v4088_v31, %v4089_v38 }
 0x2e0   : > { %v7107_v49 = vadd.f32 %v7106_v44, %v7105_v40  ;;  %v7108_v50 = vpop.f32.mrb[54].mxu0  ;;  %v7217_v56 = vpop.f32.mrb[28].mxu1  ;;  %v8153_v29 = vld [vmem:[#allocation2 + $0xd4] ss:$0 sps:$4 sm:$0x11]   ;;  %v8189_v40 = vld [vmem:[#allocation13 + $0x10] sm:$0xff]  }
 0x2e1   : > { %v7109_v57 = vpop.f32.mrb[55].mxu0  ;;  %v7218_v63 = vpop.f32.mrb[29].mxu1  ;;  %v3864_v20 = vshll.u32 %v8153_v29, 16  ;;  %v3861_v14 = vrot.slane %v3859_v35, 1  ;;  %7695 = vmatprep.subr.bf16.mxu1 %v8189_v40  ;;  %v8190_v35 = vld [vmem:[#allocation13 + $0x18] sm:$0xff]  }
 0x2e2   : > { %v4958_v60 = vadd.f32 %v7107_v49, %v9306_v59  ;;  %v7110_v3 = vadd.f32 %v7109_v57, %v7108_v50  ;;  %v7219_v7 = vadd.f32 %v7218_v63, %v7217_v56  ;;  %v7220_v62 = vpop.f32.mrb[30].mxu1  ;;  %v8156_v50 = vld [vmem:[#allocation2 + $0xcc] sm:$0xff]   ;;  %v8167_v63 = vld [vmem:[#allocation2 + $0x60] sm:$0xfe]   ;;  %7696 = vmatpush3.bf16.msra.mxu1 %v8189_v40 }
 0x2e3   : > { %v7221_v2 = vpop.f32.mrb[31].mxu1  ;;  %7660 = vmatmul.mubr.bf16.vlgmr.msra.gmra.mrb[160].mxu0 %v4081_v0  ;;  %v3866_v49 = vrot.slane %v3864_v20, 1  ;;  %v3862_v55 = vor.u32 %v3861_v14, %v3857_v34  ;;  %v4094_v21 = vrot.slane %v8167_v63, 1  ;;  %v8171_v34 = vld [vmem:[#allocation2 + $0x78] sm:$0xfe]   ;;  %7697 = vmatprep.subr.bf16.mxu1 %v8190_v35 }
 0x2e4   : > { %v4961_v39 = vadd.f32 %v7110_v3, %v9306_v59  ;;  %v9369_v12 = vadd.f32 %v7219_v7, %v4958_v60  ;;  %v7222_v13 = vadd.f32 %v7221_v2, %v7220_v62  ;;  %7663 = vmatprep.mubr.bf16.mxu0 %v4084_v24  ;;  %v8168_v3 = vld [vmem:[#allocation2 + $0x68] ss:$0 sps:$4 sm:$0x11]   ;;  %v8172_v20 = vld [vmem:[#allocation2 + $0x80] ss:$0 sps:$4 sm:$0x11]  }
 0x2e5   : > { %v3867_v6 = vsel %vm2073_vm10, %v3862_v55, %v3866_v49  ;;  %v4095_v0 = vrot.slane %v8168_v3, 1 }
 0x2e6   : > { %v7111_v18 = vpop.f32.mrb[56].mxu0  ;;  %v9371_v4 = vadd.f32 %v7222_v13, %v4961_v39  ;;  %5518 = vmatprep.mubr.bf16.mxu1 %v3867_v6  ;;  %7698 = vmatpush3.bf16.msra.mxu1 %v8190_v35 }
 0x2e7   : > { %v7112_v15 = vpop.f32.mrb[57].mxu0  ;;  %5519 = vmatmul.mubr.bf16.gmra.mrb[132].mxu1 %v8156_v50  ;;  %v8173_v50 = vld [vmem:[#allocation2 + $0x84] sm:$0xfe]  }
 0x2e8   : > { %v7113_v26 = vadd.f32 %v7112_v15, %v7111_v18  ;;  %v7114_v25 = vpop.f32.mrb[58].mxu0  ;;  %v7223_v1 = vpop.f32.mrb[32].mxu1  ;;  %v4092_v18 = vrot.slane %v8166_v48, 1  ;;  %v4101_v48 = vrot.slane %v8172_v20, 1 }
 0x2e9   : > { %v7115_v53 = vpop.f32.mrb[59].mxu0  ;;  %v7224_v37 = vpop.f32.mrb[33].mxu1 }
 0x2ea   : > { %v7116_v30 = vadd.f32 %v7115_v53, %v7114_v25  ;;  %v4966_v42 = vadd.f32 %v7113_v26, %v9306_v59  ;;  %v7225_v44 = vadd.f32 %v7224_v37, %v7223_v1  ;;  %v7226_v46 = vpop.f32.mrb[34].mxu1  ;;  %v8169_v26 = vld [vmem:[#allocation2 + $0x6c] sm:$0xfe]   ;;  %v8170_v25 = vld [vmem:[#allocation2 + $0x74] ss:$0 sps:$4 sm:$0x11]  }
 0x2eb   : > { %v7227_v51 = vpop.f32.mrb[35].mxu1  ;;  %7664 = vmatmul.mubr.bf16.gmra.mrb[164].mxu0 %v4087_v58  ;;  %v4097_v14 = vrot.slane %v8169_v26, 1  ;;  %v8174_v58 = vld [vmem:[#allocation2 + $0x8c] ss:$0 sps:$4 sm:$0x11]  }
 0x2ec   : > { %v4969_v45 = vadd.f32 %v7116_v30, %v9306_v59  ;;  %v9377_v56 = vadd.f32 %v7225_v44, %v4966_v42  ;;  %v7228_v57 = vadd.f32 %v7227_v51, %v7226_v46  ;;  %7667 = vmatprep.mubr.bf16.mxu0 %v4090_v5  ;;  %v4093_v30 = vsel %vm2474_vm11, %v4091_v11, %v4092_v18  ;;  %v8175_v5 = vld [vmem:[#allocation2 + $0x90] sm:$0xfe]   ;;  %v8176_v11 = vld [vmem:[#allocation2 + $0x98] ss:$0 sps:$4 sm:$0x11]  }
 0x2ed   : > { %v4096_v42 = vsel %vm2474_vm11, %v4094_v21, %v4095_v0  ;;  %v4098_v44 = vrot.slane %v8170_v25, 1  ;;  %v4104_v21 = vrot.slane %v8174_v58, 1  ;;  %v4106_v0 = vrot.slane %v8175_v5, 1  ;;  %v8178_v25 = vld [vmem:[#allocation2 + $0xa4] ss:$0 sps:$4 sm:$0x11]  }
 0x2ee   : > { %v7117_v54 = vpop.f32.mrb[60].mxu0  ;;  %v9382_v8 = vadd.f32 %v7228_v57, %v4969_v45  ;;  %v4100_v45 = vrot.slane %v8171_v34, 1  ;;  %v8179_v34 = vld [vmem:[#allocation2 + $0xa8] sm:$0xfe]  }
 0x2ef   : > { %v7118_v60 = vpop.f32.mrb[61].mxu0  ;;  %v4099_v63 = vsel %vm2474_vm11, %v4097_v14, %v4098_v44 }
 0x2f0   : > { %v7119_v7 = vadd.f32 %v7118_v60, %v7117_v54  ;;  %v7120_v62 = vpop.f32.mrb[62].mxu0  ;;  %v7229_v13 = vpop.f32.mrb[36].mxu1  ;;  %v4102_v6 = vsel %vm2474_vm11, %v4100_v45, %v4101_v48  ;;  %v8180_v45 = vld [vmem:[#allocation2 + $0xb0] ss:$0 sps:$4 sm:$0x11]  }
 0x2f1   : > { %v7121_v39 = vpop.f32.mrb[63].mxu0  ;;  %v7230_v19 = vpop.f32.mrb[37].mxu1 }
 0x2f2   : > { %v7122_v2 = vadd.f32 %v7121_v39, %v7120_v62  ;;  %v4974_v10 = vadd.f32 %v7119_v7, %v9306_v59  ;;  %v7231_v15 = vadd.f32 %v7230_v19, %v7229_v13  ;;  %v7232_v24 = vpop.f32.mrb[38].mxu1  ;;  %v4103_v19 = vrot.slane %v8173_v50, 1 }
 0x2f3   : > { %v7233_v27 = vpop.f32.mrb[39].mxu1  ;;  %7668 = vmatmul.mubr.bf16.gmra.mrb[168].mxu0 %v4093_v30  ;;  %v4112_v50 = vrot.slane %v8179_v34, 1 }
 0x2f4   : > { %v4977_v23 = vadd.f32 %v7122_v2, %v9306_v59  ;;  %v9386_v53 = vadd.f32 %v7231_v15, %v4974_v10  ;;  %v7234_v29 = vadd.f32 %v7233_v27, %v7232_v24  ;;  %7671 = vmatprep.mubr.bf16.mxu0 %v4096_v42  ;;  %v4107_v24 = vrot.slane %v8176_v11, 1  ;;  %v8183_v11 = vld [vmem:[#allocation2 + $0xc0] sm:$0xfe]  }
 0x2f5   : > { %v4105_v42 = vsel %vm2474_vm11, %v4103_v19, %v4104_v21 }
 0x2f6   : > { %v7123_v28 = vpop.f32.mrb[64].mxu0  ;;  %v9390_v37 = vadd.f32 %v7234_v29, %v4977_v23 }
 0x2f7   : > { %v7124_v33 = vpop.f32.mrb[65].mxu0 }
 0x2f8   : > { %v7125_v1 = vadd.f32 %v7124_v33, %v7123_v28  ;;  %v7126_v31 = vpop.f32.mrb[66].mxu0  ;;  %v7235_v47 = vpop.f32.mrb[40].mxu1  ;;  %v8177_v33 = vld [vmem:[#allocation2 + $0x9c] sm:$0xfe]  }
 0x2f9   : > { %v7127_v38 = vpop.f32.mrb[67].mxu0  ;;  %v7236_v49 = vpop.f32.mrb[41].mxu1  ;;  %v4109_v48 = vrot.slane %v8177_v33, 1 }
 0x2fa   : > { %v7128_v40 = vadd.f32 %v7127_v38, %v7126_v31  ;;  %v4982_v46 = vadd.f32 %v7125_v1, %v9306_v59  ;;  %v7237_v51 = vadd.f32 %v7236_v49, %v7235_v47  ;;  %v7238_v55 = vpop.f32.mrb[42].mxu1  ;;  %v8191_v31 = vld [vmem:[#allocation13 + $0x20] sm:$0xff]   ;;  %v4110_v49 = vrot.slane %v8178_v25, 1 }
 0x2fb   : > { %v7239_v60 = vpop.f32.mrb[43].mxu1  ;;  %7672 = vmatmul.mubr.bf16.gmra.mrb[172].mxu0 %v4099_v63  ;;  %7699 = vmatprep.subr.bf16.mxu1 %v8191_v31  ;;  %v8182_v63 = vld [vmem:[#allocation2 + $0xbc] ss:$0 sps:$4 sm:$0x11]  }
 0x2fc   : > { %v4985_v54 = vadd.f32 %v7128_v40, %v9306_v59  ;;  %v9395_v7 = vadd.f32 %v7237_v51, %v4982_v46  ;;  %v7240_v62 = vadd.f32 %v7239_v60, %v7238_v55  ;;  %7675 = vmatprep.mubr.bf16.mxu0 %v4102_v6  ;;  %v4108_v40 = vsel %vm2474_vm11, %v4106_v0, %v4107_v24  ;;  %v8184_v0 = vld [vmem:[#allocation2 + $0xc8] ss:$0 sps:$4 sm:$0x11]  }
 0x2fd   : > { %7700 = vmatpush3.bf16.msra.mxu1 %v8191_v31  ;;  %v4113_v51 = vrot.slane %v8180_v45, 1  ;;  %v4111_v6 = vsel %vm2474_vm11, %v4109_v48, %v4110_v49 }
 0x2fe   : > { %v7129_v57 = vpop.f32.mrb[68].mxu0  ;;  %v9398_v13 = vadd.f32 %v7240_v62, %v4985_v54  ;;  %v9411_v54 = vld [vmem:[%s9795_s3] ss:$0 sm:$0xff] }
 0x2ff   : > { %v7130_v3 = vpop.f32.mrb[69].mxu0 }
 0x300   : > { %v7131_v39 = vadd.f32 %v7130_v3, %v7129_v57  ;;  %v7132_v2 = vpop.f32.mrb[70].mxu0  ;;  %v7241_v23 = vpop.f32.mrb[44].mxu1 }
 0x301   : > { %v7133_v10 = vpop.f32.mrb[71].mxu0  ;;  %v7242_v26 = vpop.f32.mrb[45].mxu1 }
 0x302   : > { %v7134_v18 = vadd.f32 %v7133_v10, %v7132_v2  ;;  %v4990_v15 = vadd.f32 %v7131_v39, %v9306_v59  ;;  %v7243_v27 = vadd.f32 %v7242_v26, %v7241_v23  ;;  %v7244_v29 = vpop.f32.mrb[46].mxu1  ;;  %v8181_v2 = vld [vmem:[#allocation2 + $0xb4] sm:$0xfe]  }
 0x303   : > { %v7245_v35 = vpop.f32.mrb[47].mxu1  ;;  %7676 = vmatmul.mubr.bf16.gmra.mrb[176].mxu0 %v4105_v42  ;;  %v8186_v42 = vld [vmem:[#allocation2 + $0xd4] ss:$0 sps:$4 sm:$0x11]  }
 0x304   : > { %v4993_v28 = vadd.f32 %v7134_v18, %v9306_v59  ;;  %v9403_v20 = vadd.f32 %v7243_v27, %v4990_v15  ;;  %v7246_v38 = vadd.f32 %v7245_v35, %v7244_v29  ;;  %7679 = vmatprep.mubr.bf16.mxu0 %v4108_v40  ;;  %v4114_v18 = vsel %vm2474_vm11, %v4112_v50, %v4113_v51  ;;  %v8185_v35 = vld [vmem:[#allocation2 + $0xcc] sm:$0xfe]  }
 0x305   : > { %v4115_v27 = vrot.slane %v8181_v2, 1  ;;  %v4118_v29 = vrot.slane %v8183_v11, 1 }
 0x306   : > { %v7135_v30 = vpop.f32.mrb[72].mxu0  ;;  %v9406_v46 = vadd.f32 %v7246_v38, %v4993_v28  ;;  %v4116_v28 = vrot.slane %v8182_v63, 1 }
 0x307   : > { %v7136_v1 = vpop.f32.mrb[73].mxu0 }
 0x308   : > { %v7137_v14 = vadd.f32 %v7136_v1, %v7135_v30  ;;  %v7138_v44 = vpop.f32.mrb[74].mxu0  ;;  %v7247_v57 = vpop.f32.mrb[48].mxu1  ;;  %v4119_v30 = vrot.slane %v8184_v0, 1 }
 0x309   : > { %v7139_v59 = vpop.f32.mrb[75].mxu0  ;;  %v7248_v58 = vpop.f32.mrb[49].mxu1 }
 0x30a   : > { %v7140_v47 = vadd.f32 %v7139_v59, %v7138_v44  ;;  %v4998_v55 = vadd.f32 %v9411_v54, %v7137_v14  ;;  %v7249_v3 = vadd.f32 %v7248_v58, %v7247_v57  ;;  %v7250_v62 = vpop.f32.mrb[50].mxu1  ;;  %v4117_v44 = vsel %vm2474_vm11, %v4115_v27, %v4116_v28  ;;  %v8192_v59 = vld [vmem:[#allocation13 + $0x28] sm:$0xff]  }
 0x30b   : > { %v7251_v10 = vpop.f32.mrb[51].mxu1  ;;  %7680 = vmatmul.mubr.bf16.gmra.mrb[180].mxu0 %v4111_v6  ;;  %v4120_v48 = vsel %vm2474_vm11, %v4118_v29, %v4119_v30  ;;  %v4121_v58 = vrot.slane %v8185_v35, 1  ;;  %7701 = vmatprep.subr.bf16.mxu1 %v8192_v59 }
 0x30c   : > { %v5001_v5 = vadd.f32 %v9411_v54, %v7140_v47  ;;  %v9417_v15 = vadd.f32 %v7249_v3, %v4998_v55  ;;  %v7252_v23 = vadd.f32 %v7251_v10, %v7250_v62  ;;  %7683 = vmatprep.mubr.bf16.mxu0 %v4114_v18  ;;  %7702 = vmatpush3.bf16.msra.mxu1 %v8192_v59 }
 0x30e   : > { %v7141_v60 = vpop.f32.mrb[76].mxu0  ;;  %v9419_v25 = vadd.f32 %v7252_v23, %v5001_v5 }
 0x30f   : > { %v7142_v39 = vpop.f32.mrb[77].mxu0 }
 0x310   : > { %v7143_v19 = vadd.f32 %v7142_v39, %v7141_v60  ;;  %v7144_v21 = vpop.f32.mrb[78].mxu0  ;;  %v7253_v34 = vpop.f32.mrb[52].mxu1  ;;  %v4122_v60 = vrot.slane %v8186_v42, 1 }
 0x311   : > { %v7145_v24 = vpop.f32.mrb[79].mxu0  ;;  %v7254_v1 = vpop.f32.mrb[53].mxu1 }
 0x312   : > { %v7146_v26 = vadd.f32 %v7145_v24, %v7144_v21  ;;  %v5006_v33 = vadd.f32 %v9411_v54, %v7143_v19  ;;  %v7255_v38 = vadd.f32 %v7254_v1, %v7253_v34  ;;  %v7256_v14 = vpop.f32.mrb[54].mxu1  ;;  %v4123_v6 = vsel %vm2474_vm11, %v4121_v58, %v4122_v60 }
 0x313   : > { %v7257_v47 = vpop.f32.mrb[55].mxu1  ;;  %7684 = vmatmul.mubr.bf16.gmra.mrb[184].mxu0 %v4117_v44 }
 0x314   : > { %v5009_v40 = vadd.f32 %v9411_v54, %v7146_v26  ;;  %v9425_v51 = vadd.f32 %v7255_v38, %v5006_v33  ;;  %v7258_v55 = vadd.f32 %v7257_v47, %v7256_v14  ;;  %7687 = vmatprep.mubr.bf16.mxu0 %v4120_v48 }
 0x316   : > { %v7147_v31 = vpop.f32.mrb[80].mxu0  ;;  %v9427_v3 = vadd.f32 %v7258_v55, %v5009_v40  ;;  %v8193_v40 = vld [vmem:[#allocation13 + $0x30] sm:$0xff]  }
 0x317   : > { %v7148_v45 = vpop.f32.mrb[81].mxu0  ;;  %7703 = vmatprep.subr.bf16.mxu1 %v8193_v40 }
 0x318   : > { %v7149_v49 = vadd.f32 %v7148_v45, %v7147_v31  ;;  %v7150_v50 = vpop.f32.mrb[82].mxu0  ;;  %v7259_v62 = vpop.f32.mrb[56].mxu1  ;;  %7704 = vmatpush3.bf16.msra.mxu1 %v8193_v40 }
 0x319   : > { %v7151_v57 = vpop.f32.mrb[83].mxu0  ;;  %v7260_v39 = vpop.f32.mrb[57].mxu1 }
 0x31a   : > { %v7152_v63 = vadd.f32 %v7151_v57, %v7150_v50  ;;  %v5014_v5 = vadd.f32 %v9411_v54, %v7149_v49  ;;  %v7261_v11 = vadd.f32 %v7260_v39, %v7259_v62  ;;  %v7262_v18 = vpop.f32.mrb[58].mxu1 }
 0x31b   : > { %v7263_v21 = vpop.f32.mrb[59].mxu1  ;;  %7688 = vmatmul.mubr.bf16.gmra.mrb[188].mxu0 %v4123_v6 }
 0x31c   : > { %v5017_v10 = vadd.f32 %v9411_v54, %v7152_v63  ;;  %v9432_v24 = vadd.f32 %v7261_v11, %v5014_v5  ;;  %v7264_v26 = vadd.f32 %v7263_v21, %v7262_v18 }
 0x31e   : > { %v7153_v2 = vpop.f32.mrb[84].mxu0  ;;  %v9434_v29 = vadd.f32 %v7264_v26, %v5017_v10 }
 0x31f   : > { %v7154_v19 = vpop.f32.mrb[85].mxu0 }
 0x320   : > { %v7155_v0 = vadd.f32 %v7154_v19, %v7153_v2  ;;  %v7156_v23 = vpop.f32.mrb[86].mxu0  ;;  %v7265_v33 = vpop.f32.mrb[60].mxu1 }
 0x321   : > { %v7157_v27 = vpop.f32.mrb[87].mxu0  ;;  %v7266_v34 = vpop.f32.mrb[61].mxu1 }
 0x322   : > { %v7158_v28 = vadd.f32 %v7157_v27, %v7156_v23  ;;  %v5022_v30 = vadd.f32 %v9411_v54, %v7155_v0  ;;  %v7267_v42 = vadd.f32 %v7266_v34, %v7265_v33  ;;  %v7268_v31 = vpop.f32.mrb[62].mxu1 }
 0x323   : > { %v7269_v14 = vpop.f32.mrb[63].mxu1 }
 0x324   : > { %v5025_v1 = vadd.f32 %v9411_v54, %v7158_v28  ;;  %v9438_v59 = vadd.f32 %v7267_v42, %v5022_v30  ;;  %v7270_v47 = vadd.f32 %v7269_v14, %v7268_v31 }
 0x326   : > { %v7159_v35 = vpop.f32.mrb[88].mxu0  ;;  %v9440_v50 = vadd.f32 %v7270_v47, %v5025_v1 }
 0x327   : > { %v7160_v38 = vpop.f32.mrb[89].mxu0 }
 0x328   : > { %v7161_v44 = vadd.f32 %v7160_v38, %v7159_v35  ;;  %v7162_v45 = vpop.f32.mrb[90].mxu0  ;;  %v7271_v57 = vpop.f32.mrb[64].mxu1 }
 0x329   : > { %v7163_v48 = vpop.f32.mrb[91].mxu0  ;;  %v7272_v58 = vpop.f32.mrb[65].mxu1 }
 0x32a   : > { %v7164_v49 = vadd.f32 %v7163_v48, %v7162_v45  ;;  %v5030_v55 = vadd.f32 %v9411_v54, %v7161_v44  ;;  %v7273_v63 = vadd.f32 %v7272_v58, %v7271_v57  ;;  %v7274_v62 = vpop.f32.mrb[66].mxu1 }
 0x32b   : > { %v7275_v39 = vpop.f32.mrb[67].mxu1 }
 0x32c   : > { %v5033_v5 = vadd.f32 %v9411_v54, %v7164_v49  ;;  %v9444_v10 = vadd.f32 %v7273_v63, %v5030_v55  ;;  %v7276_v18 = vadd.f32 %v7275_v39, %v7274_v62 }
 0x32e   : > { %v7165_v60 = vpop.f32.mrb[92].mxu0  ;;  %v9446_v0 = vadd.f32 %v7276_v18, %v5033_v5 }
 0x32f   : > { %v7166_v6 = vpop.f32.mrb[93].mxu0 }
 0x330   : > { %v7167_v2 = vadd.f32 %v7166_v6, %v7165_v60  ;;  %v7168_v11 = vpop.f32.mrb[94].mxu0  ;;  %v7277_v26 = vpop.f32.mrb[68].mxu1 }
 0x331   : > { %v7169_v19 = vpop.f32.mrb[95].mxu0  ;;  %v7278_v27 = vpop.f32.mrb[69].mxu1 }
 0x332   : > { %v7170_v21 = vadd.f32 %v7169_v19, %v7168_v11  ;;  %v5038_v23 = vadd.f32 %v9411_v54, %v7167_v2  ;;  %v7279_v30 = vadd.f32 %v7278_v27, %v7277_v26  ;;  %v7280_v34 = vpop.f32.mrb[70].mxu1 }
 0x333   : > { %v7281_v42 = vpop.f32.mrb[71].mxu1 }
 0x334   : > { %v5041_v33 = vadd.f32 %v9411_v54, %v7170_v21  ;;  %v9450_v38 = vadd.f32 %v7279_v30, %v5038_v23  ;;  %v7282_v40 = vadd.f32 %v7281_v42, %v7280_v34 }
 0x336   : > { %v7299_v28 = vpop.f32.mrb[96].mxu0  ;;  %v9453_v47 = vadd.f32 %v7282_v40, %v5041_v33 }
 0x337   : > { %v7300_v35 = vpop.f32.mrb[97].mxu0 }
 0x338   : > { %v7301_v1 = vadd.f32 %v7300_v35, %v7299_v28  ;;  %v7302_v31 = vpop.f32.mrb[98].mxu0  ;;  %v7411_v49 = vpop.f32.mrb[72].mxu1 }
 0x339   : > { %v7303_v14 = vpop.f32.mrb[99].mxu0  ;;  %v7412_v55 = vpop.f32.mrb[73].mxu1 }
 0x33a   : > { %v5240_v44 = vadd.f32 %v7301_v1, %v9314_v9  ;;  %v7304_v45 = vadd.f32 %v7303_v14, %v7302_v31  ;;  %v7413_v54 = vadd.f32 %v7412_v55, %v7411_v49  ;;  %v7414_v58 = vpop.f32.mrb[74].mxu1 }
 0x33b   : > { %v7415_v63 = vpop.f32.mrb[75].mxu1 }
 0x33c   : > { %v5243_v48 = vadd.f32 %v7304_v45, %v9316_v41  ;;  %v7416_v6 = vadd.f32 %v7415_v63, %v7414_v58  ;;  %v8194_v41 = vld [vmem:[#allocation13 + $0x38] sm:$0xff]  }
 0x33d   : > { %7705 = vmatprep.subr.bf16.mxu1 %v8194_v41 }
 0x33e   : > { %v7305_v57 = vpop.f32.mrb[100].mxu0  ;;  %7706 = vmatpush3.bf16.msra.mxu1 %v8194_v41  ;;  %v9465_v40 = vadd.f32 %v7416_v6, %v5243_v48 }
 0x33f   : > { %v7306_v60 = vpop.f32.mrb[101].mxu0 }
 0x340   : > { %v7307_v5 = vadd.f32 %v7306_v60, %v7305_v57  ;;  %v7308_v62 = vpop.f32.mrb[102].mxu0  ;;  %v7417_v18 = vpop.f32.mrb[76].mxu1 }
 0x341   : > { %v7309_v39 = vpop.f32.mrb[103].mxu0  ;;  %v7418_v19 = vpop.f32.mrb[77].mxu1 }
 0x342   : > { %v5248_v2 = vadd.f32 %v7307_v5, %v9325_v32  ;;  %v7310_v11 = vadd.f32 %v7309_v39, %v7308_v62  ;;  %v7419_v23 = vadd.f32 %v7418_v19, %v7417_v18  ;;  %v7420_v26 = vpop.f32.mrb[78].mxu1 }
 0x343   : > { %v7421_v28 = vpop.f32.mrb[79].mxu1 }
 0x344   : > { %v5251_v9 = vadd.f32 %v7310_v11, %v9328_v36  ;;  %v7422_v34 = vadd.f32 %v7421_v28, %v7420_v26  ;;  %v9459_v1 = vadd.f32 %v7419_v23, %v5248_v2  ;;  %v9461_v36 = vadd.f32 %v7413_v54, %v5240_v44 }
 0x346   : > { %v7311_v21 = vpop.f32.mrb[104].mxu0  ;;  %v9463_v31 = vadd.f32 %v7422_v34, %v5251_v9 }
 0x347   : > { %v7312_v27 = vpop.f32.mrb[105].mxu0 }
 0x348   : > { %v7313_v30 = vadd.f32 %v7312_v27, %v7311_v21  ;;  %v7314_v33 = vpop.f32.mrb[106].mxu0  ;;  %v7423_v45 = vpop.f32.mrb[80].mxu1 }
 0x349   : > { %v7315_v35 = vpop.f32.mrb[107].mxu0  ;;  %v7424_v49 = vpop.f32.mrb[81].mxu1 }
 0x34a   : > { %v5256_v42 = vadd.f32 %v7313_v30, %v9333_v16  ;;  %v7316_v32 = vadd.f32 %v7315_v35, %v7314_v33  ;;  %v7425_v57 = vadd.f32 %v7424_v49, %v7423_v45  ;;  %v7426_v58 = vpop.f32.mrb[82].mxu1 }
 0x34b   : > { %v7427_v63 = vpop.f32.mrb[83].mxu1 }
 0x34c   : > { %v5259_v14 = vadd.f32 %v7316_v32, %v9337_v22  ;;  %v7428_v62 = vadd.f32 %v7427_v63, %v7426_v58  ;;  %v9468_v2 = vadd.f32 %v7425_v57, %v5256_v42 }
 0x34e   : > { %v7317_v55 = vpop.f32.mrb[108].mxu0  ;;  %v9471_v48 = vadd.f32 %v7428_v62, %v5259_v14 }
 0x34f   : > { %v7318_v60 = vpop.f32.mrb[109].mxu0 }
 0x350   : > { %v7319_v5 = vadd.f32 %v7318_v60, %v7317_v55  ;;  %v7320_v16 = vpop.f32.mrb[110].mxu0  ;;  %v7429_v6 = vpop.f32.mrb[84].mxu1 }
 0x351   : > { %v7321_v39 = vpop.f32.mrb[111].mxu0  ;;  %v7430_v11 = vpop.f32.mrb[85].mxu1 }
 0x352   : > { %v5264_v44 = vadd.f32 %v7319_v5, %v9341_v52  ;;  %v7322_v54 = vadd.f32 %v7321_v39, %v7320_v16  ;;  %v7431_v18 = vadd.f32 %v7430_v11, %v7429_v6  ;;  %v7432_v19 = vpop.f32.mrb[86].mxu1 }
 0x353   : > { %v7433_v41 = vpop.f32.mrb[87].mxu1 }
 0x354   : > { %v5267_v22 = vadd.f32 %v7322_v54, %v9344_v61  ;;  %v7434_v27 = vadd.f32 %v7433_v41, %v7432_v19  ;;  %v9474_v30 = vadd.f32 %v7431_v18, %v5264_v44 }
 0x356   : > { %v7323_v9 = vpop.f32.mrb[112].mxu0  ;;  %v9477_v34 = vadd.f32 %v7434_v27, %v5267_v22 }
 0x357   : > { %v7324_v21 = vpop.f32.mrb[113].mxu0 }
 0x358   : > { %v7325_v23 = vadd.f32 %v7324_v21, %v7323_v9  ;;  %v7326_v26 = vpop.f32.mrb[114].mxu0  ;;  %v7435_v35 = vpop.f32.mrb[88].mxu1 }
 0x359   : > { %v7327_v28 = vpop.f32.mrb[115].mxu0  ;;  %v7436_v42 = vpop.f32.mrb[89].mxu1 }
 0x35a   : > { %v5272_v52 = vadd.f32 %v7325_v23, %v9354_v17  ;;  %v7328_v33 = vadd.f32 %v7327_v28, %v7326_v26  ;;  %v7437_v14 = vadd.f32 %v7436_v42, %v7435_v35  ;;  %v7438_v45 = vpop.f32.mrb[90].mxu1 }
 0x35b   : > { %v7439_v55 = vpop.f32.mrb[91].mxu1 }
 0x35c   : > { %v5275_v61 = vadd.f32 %v7328_v33, %v9356_v43  ;;  %v7440_v60 = vadd.f32 %v7439_v55, %v7438_v45  ;;  %v9480_v5 = vadd.f32 %v7437_v14, %v5272_v52 }
 0x35e   : > { %v7329_v32 = vpop.f32.mrb[116].mxu0  ;;  %v9483_v62 = vadd.f32 %v7440_v60, %v5275_v61 }
 0x35f   : > { %v7330_v49 = vpop.f32.mrb[117].mxu0 }
 0x360   : > { %v7331_v57 = vadd.f32 %v7330_v49, %v7329_v32  ;;  %v7332_v58 = vpop.f32.mrb[118].mxu0  ;;  %v7441_v39 = vpop.f32.mrb[92].mxu1 }
 0x361   : > { %v7333_v63 = vpop.f32.mrb[119].mxu0  ;;  %v7442_v44 = vpop.f32.mrb[93].mxu1 }
 0x362   : > { %v5280_v17 = vadd.f32 %v7331_v57, %v9369_v12  ;;  %v7334_v16 = vadd.f32 %v7333_v63, %v7332_v58  ;;  %v7443_v22 = vadd.f32 %v7442_v44, %v7441_v39  ;;  %v7444_v6 = vpop.f32.mrb[94].mxu1 }
 0x363   : > { %v7445_v9 = vpop.f32.mrb[95].mxu1 }
 0x364   : > { %v5283_v43 = vadd.f32 %v7334_v16, %v9371_v4  ;;  %v7446_v21 = vadd.f32 %v7445_v9, %v7444_v6  ;;  %v9486_v23 = vadd.f32 %v7443_v22, %v5280_v17 }
 0x366   : > { %v7335_v54 = vpop.f32.mrb[120].mxu0  ;;  %v9489_v27 = vadd.f32 %v7446_v21, %v5283_v43 }
 0x367   : > { %v7336_v11 = vpop.f32.mrb[121].mxu0 }
 0x368   : > { %v7337_v18 = vadd.f32 %v7336_v11, %v7335_v54  ;;  %v7338_v19 = vpop.f32.mrb[122].mxu0  ;;  %v7447_v28 = vpop.f32.mrb[96].mxu1 }
 0x369   : > { %v7339_v41 = vpop.f32.mrb[123].mxu0  ;;  %v7448_v52 = vpop.f32.mrb[97].mxu1 }
 0x36a   : > { %v5288_v12 = vadd.f32 %v7337_v18, %v9377_v56  ;;  %v7340_v26 = vadd.f32 %v7339_v41, %v7338_v19  ;;  %v7449_v61 = vadd.f32 %v7448_v52, %v7447_v28  ;;  %v7450_v35 = vpop.f32.mrb[98].mxu1 }
 0x36b   : > { %v7451_v32 = vpop.f32.mrb[99].mxu1 }
 0x36c   : > { %v5291_v4 = vadd.f32 %v7340_v26, %v9382_v8  ;;  %v7452_v49 = vadd.f32 %v7451_v32, %v7450_v35  ;;  %v9492_v57 = vadd.f32 %v7449_v61, %v5288_v12 }
 0x36e   : > { %v7341_v33 = vpop.f32.mrb[124].mxu0  ;;  %v9495_v60 = vadd.f32 %v7452_v49, %v5291_v4 }
 0x36f   : > { %v7342_v42 = vpop.f32.mrb[125].mxu0 }
 0x370   : > { %v7343_v14 = vadd.f32 %v7342_v42, %v7341_v33  ;;  %v7344_v45 = vpop.f32.mrb[126].mxu0  ;;  %v7453_v63 = vpop.f32.mrb[100].mxu1 }
 0x371   : > { %v7345_v55 = vpop.f32.mrb[127].mxu0  ;;  %v7454_v17 = vpop.f32.mrb[101].mxu1 }
 0x372   : > { %v5296_v56 = vadd.f32 %v7343_v14, %v9386_v53  ;;  %v7346_v58 = vadd.f32 %v7345_v55, %v7344_v45  ;;  %v7455_v43 = vadd.f32 %v7454_v17, %v7453_v63  ;;  %v7456_v39 = vpop.f32.mrb[102].mxu1 }
 0x373   : > { %v7457_v54 = vpop.f32.mrb[103].mxu1 }
 0x374   : > { %v5299_v8 = vadd.f32 %v7346_v58, %v9390_v37  ;;  %v7458_v11 = vadd.f32 %v7457_v54, %v7456_v39  ;;  %v9498_v18 = vadd.f32 %v7455_v43, %v5296_v56 }
 0x376   : > { %v7347_v16 = vpop.f32.mrb[128].mxu0  ;;  %v9501_v21 = vadd.f32 %v7458_v11, %v5299_v8 }
 0x377   : > { %v7348_v44 = vpop.f32.mrb[129].mxu0 }
 0x378   : > { %v7349_v22 = vadd.f32 %v7348_v44, %v7347_v16  ;;  %v7350_v6 = vpop.f32.mrb[130].mxu0  ;;  %v7459_v41 = vpop.f32.mrb[104].mxu1 }
 0x379   : > { %v7351_v9 = vpop.f32.mrb[131].mxu0  ;;  %v7460_v12 = vpop.f32.mrb[105].mxu1 }
 0x37a   : > { %v5304_v53 = vadd.f32 %v7349_v22, %v9395_v7  ;;  %v7352_v19 = vadd.f32 %v7351_v9, %v7350_v6  ;;  %v7461_v4 = vadd.f32 %v7460_v12, %v7459_v41  ;;  %v7462_v28 = vpop.f32.mrb[106].mxu1 }
 0x37b   : > { %v7463_v33 = vpop.f32.mrb[107].mxu1 }
 0x37c   : > { %v5307_v37 = vadd.f32 %v7352_v19, %v9398_v13  ;;  %v7464_v42 = vadd.f32 %v7463_v33, %v7462_v28  ;;  %v9504_v14 = vadd.f32 %v7461_v4, %v5304_v53 }
 0x37e   : > { %v7353_v26 = vpop.f32.mrb[132].mxu0  ;;  %v9507_v49 = vadd.f32 %v7464_v42, %v5307_v37 }
 0x37f   : > { %v7354_v52 = vpop.f32.mrb[133].mxu0 }
 0x380   : > { %v7355_v61 = vadd.f32 %v7354_v52, %v7353_v26  ;;  %v7356_v35 = vpop.f32.mrb[134].mxu0  ;;  %v7465_v55 = vpop.f32.mrb[108].mxu1 }
 0x381   : > { %v7357_v32 = vpop.f32.mrb[135].mxu0  ;;  %v7466_v56 = vpop.f32.mrb[109].mxu1 }
 0x382   : > { %v5312_v7 = vadd.f32 %v7355_v61, %v9403_v20  ;;  %v7358_v45 = vadd.f32 %v7357_v32, %v7356_v35  ;;  %v7467_v8 = vadd.f32 %v7466_v56, %v7465_v55  ;;  %v7468_v63 = vpop.f32.mrb[110].mxu1 }
 0x383   : > { %v7469_v16 = vpop.f32.mrb[111].mxu1 }
 0x384   : > { %v5315_v13 = vadd.f32 %v7358_v45, %v9406_v46  ;;  %v7470_v44 = vadd.f32 %v7469_v16, %v7468_v63  ;;  %v9510_v22 = vadd.f32 %v7467_v8, %v5312_v7 }
 0x386   : > { %v7359_v58 = vpop.f32.mrb[136].mxu0  ;;  %v9513_v11 = vadd.f32 %v7470_v44, %v5315_v13 }
 0x387   : > { %v7360_v17 = vpop.f32.mrb[137].mxu0 }
 0x388   : > { %v7361_v43 = vadd.f32 %v7360_v17, %v7359_v58  ;;  %v7362_v39 = vpop.f32.mrb[138].mxu0  ;;  %v7471_v9 = vpop.f32.mrb[112].mxu1 }
 0x389   : > { %v7363_v54 = vpop.f32.mrb[139].mxu0  ;;  %v7472_v53 = vpop.f32.mrb[113].mxu1 }
 0x38a   : > { %v5320_v20 = vadd.f32 %v7361_v43, %v9417_v15  ;;  %v7364_v6 = vadd.f32 %v7363_v54, %v7362_v39  ;;  %v7473_v37 = vadd.f32 %v7472_v53, %v7471_v9  ;;  %v7474_v41 = vpop.f32.mrb[114].mxu1 }
 0x38b   : > { %v7475_v26 = vpop.f32.mrb[115].mxu1 }
 0x38c   : > { %v5323_v46 = vadd.f32 %v7364_v6, %v9419_v25  ;;  %v7476_v52 = vadd.f32 %v7475_v26, %v7474_v41  ;;  %v9516_v61 = vadd.f32 %v7473_v37, %v5320_v20 }
 0x38e   : > { %v7365_v19 = vpop.f32.mrb[140].mxu0  ;;  %v9519_v42 = vadd.f32 %v7476_v52, %v5323_v46 }
 0x38f   : > { %v7366_v12 = vpop.f32.mrb[141].mxu0 }
 0x390   : > { %v7367_v4 = vadd.f32 %v7366_v12, %v7365_v19  ;;  %v7368_v28 = vpop.f32.mrb[142].mxu0  ;;  %v7477_v32 = vpop.f32.mrb[116].mxu1 }
 0x391   : > { %v7369_v33 = vpop.f32.mrb[143].mxu0  ;;  %v7478_v7 = vpop.f32.mrb[117].mxu1 }
 0x392   : > { %v5328_v15 = vadd.f32 %v7367_v4, %v9425_v51  ;;  %v7370_v35 = vadd.f32 %v7369_v33, %v7368_v28  ;;  %v7479_v45 = vadd.f32 %v7478_v7, %v7477_v32  ;;  %v7480_v13 = vpop.f32.mrb[118].mxu1 }
 0x393   : > { %v7481_v56 = vpop.f32.mrb[119].mxu1 }
 0x394   : > { %v5331_v25 = vadd.f32 %v7370_v35, %v9427_v3  ;;  %v7482_v8 = vadd.f32 %v7481_v56, %v7480_v13  ;;  %v9522_v16 = vadd.f32 %v7479_v45, %v5328_v15 }
 0x396   : > { %v7371_v55 = vpop.f32.mrb[144].mxu0  ;;  %v9525_v44 = vadd.f32 %v7482_v8, %v5331_v25 }
 0x397   : > { %v7372_v58 = vpop.f32.mrb[145].mxu0 }
 0x398   : > { %v7373_v63 = vadd.f32 %v7372_v58, %v7371_v55  ;;  %v7374_v17 = vpop.f32.mrb[146].mxu0  ;;  %v7483_v54 = vpop.f32.mrb[120].mxu1 }
 0x399   : > { %v7375_v43 = vpop.f32.mrb[147].mxu0  ;;  %v7484_v20 = vpop.f32.mrb[121].mxu1 }
 0x39a   : > { %v5336_v51 = vadd.f32 %v7373_v63, %v9432_v24  ;;  %v7376_v39 = vadd.f32 %v7375_v43, %v7374_v17  ;;  %v7485_v6 = vadd.f32 %v7484_v20, %v7483_v54  ;;  %v7486_v46 = vpop.f32.mrb[122].mxu1 }
 0x39b   : > { %v7487_v53 = vpop.f32.mrb[123].mxu1 }
 0x39c   : > { %v5339_v3 = vadd.f32 %v7376_v39, %v9434_v29  ;;  %v7488_v37 = vadd.f32 %v7487_v53, %v7486_v46  ;;  %v9528_v26 = vadd.f32 %v7485_v6, %v5336_v51 }
 0x39e   : > { %v7377_v9 = vpop.f32.mrb[148].mxu0  ;;  %v9531_v52 = vadd.f32 %v7488_v37, %v5339_v3 }
 0x39f   : > { %v7378_v19 = vpop.f32.mrb[149].mxu0 }
 0x3a0   : > { %v7379_v41 = vadd.f32 %v7378_v19, %v7377_v9  ;;  %v7380_v12 = vpop.f32.mrb[150].mxu0  ;;  %v7489_v33 = vpop.f32.mrb[124].mxu1 }
 0x3a1   : > { %v7381_v4 = vpop.f32.mrb[151].mxu0  ;;  %v7490_v15 = vpop.f32.mrb[125].mxu1 }
 0x3a2   : > { %v5344_v24 = vadd.f32 %v7379_v41, %v9438_v59  ;;  %v7382_v28 = vadd.f32 %v7381_v4, %v7380_v12  ;;  %v7491_v35 = vadd.f32 %v7490_v15, %v7489_v33  ;;  %v7492_v25 = vpop.f32.mrb[126].mxu1 }
 0x3a3   : > { %v7493_v32 = vpop.f32.mrb[127].mxu1 }
 0x3a4   : > { %v5347_v29 = vadd.f32 %v7382_v28, %v9440_v50  ;;  %v7494_v7 = vadd.f32 %v7493_v32, %v7492_v25  ;;  %v9534_v45 = vadd.f32 %v7491_v35, %v5344_v24 }
 0x3a6   : > { %v7383_v13 = vpop.f32.mrb[152].mxu0  ;;  %v9536_v55 = vadd.f32 %v7494_v7, %v5347_v29 }
 0x3a7   : > { %v7384_v56 = vpop.f32.mrb[153].mxu0 }
 0x3a8   : > { %v7385_v58 = vadd.f32 %v7384_v56, %v7383_v13  ;;  %v7495_v8 = vpop.f32.mrb[128].mxu1  ;;  %v7386_v59 = vpop.f32.mrb[154].mxu0 }
 0x3a9   : > { %v7496_v63 = vpop.f32.mrb[129].mxu1  ;;  %v7387_v17 = vpop.f32.mrb[155].mxu0 }
 0x3aa   : > { %v5352_v43 = vadd.f32 %v7385_v58, %v9444_v10  ;;  %v7497_v51 = vadd.f32 %v7496_v63, %v7495_v8  ;;  %v7388_v50 = vadd.f32 %v7387_v17, %v7386_v59  ;;  %v7498_v39 = vpop.f32.mrb[130].mxu1 }
 0x3ab   : > { %v7499_v54 = vpop.f32.mrb[131].mxu1 }
 0x3ac   : > { %v5355_v3 = vadd.f32 %v7388_v50, %v9446_v0  ;;  %v7500_v20 = vadd.f32 %v7499_v54, %v7498_v39  ;;  %v9540_v6 = vadd.f32 %v7497_v51, %v5352_v43 }
 0x3ae   : > { %v7389_v46 = vpop.f32.mrb[156].mxu0  ;;  %v9542_v9 = vadd.f32 %v7500_v20, %v5355_v3 }
 0x3af   : > { %v7390_v53 = vpop.f32.mrb[157].mxu0 }
 0x3b0   : > { %v7391_v19 = vadd.f32 %v7390_v53, %v7389_v46  ;;  %v7392_v37 = vpop.f32.mrb[158].mxu0 }
 0x3b1   : > { %v7393_v41 = vpop.f32.mrb[159].mxu0 }
 0x3b2   : > { %v5360_v12 = vadd.f32 %v7391_v19, %v9450_v38  ;;  %v7394_v4 = vadd.f32 %v7393_v41, %v7392_v37 }
 0x3b4   : > { %v5363_v10 = vadd.f32 %v7394_v4, %v9453_v47 }
 0x3b6   : > { %v7661_v24 = vpop.f32.mrb[160].mxu0 }
 0x3b7   : > { %v5570_v28 = vadd.f32 %v7661_v24, %v9459_v1  ;;  %v5561_v33 = vpop.f32.mrb[161].mxu0 }
 0x3b8   : > { %v5562_v0 = vadd.f32 %v5561_v33, %v9461_v36  ;;  %v7662_v29 = vpop.f32.mrb[162].mxu0 }
 0x3b9   : > { %v5573_v15 = vadd.f32 %v7662_v29, %v9463_v31  ;;  %v5564_v35 = vpop.f32.mrb[163].mxu0  ;;  %v5690_v32 = vmax.f32 %v5570_v28, 0.0 }
 0x3ba   : > { %v5565_v25 = vadd.f32 %v5564_v35, %v9465_v40  ;;  %v5688_v13 = vmax.f32 %v5562_v0, 0.0  ;;  %v7501_v36 = vpop.f32.mrb[132].mxu1 }
 0x3bb   : > { %v5691_v7 = vmax.f32 %v5573_v15, 0.0  ;;  %v7502_v40 = vpop.f32.mrb[133].mxu1 }
 0x3bc   : > { %v5689_v56 = vmax.f32 %v5565_v25, 0.0  ;;  %v7503_v51 = vadd.f32 %v7502_v40, %v7501_v36  ;;  %v7504_v50 = vpop.f32.mrb[134].mxu1 }
 0x3bd   : > { %v5721_v38 = vpack.c.bf16 %v5691_v7, %v5690_v32  ;;  %v7505_v3 = vpop.f32.mrb[135].mxu1 }
 0x3be   : > { %v5720_v58 = vpack.c.bf16 %v5689_v56, %v5688_v13  ;;  %v7665_v8 = vpop.f32.mrb[164].mxu0  ;;  %v7506_v46 = vadd.f32 %v7505_v3, %v7504_v50 }
 0x3bf   : > { %v5586_v47 = vadd.f32 %v7665_v8, %v9474_v30  ;;  %v5577_v59 = vpop.f32.mrb[165].mxu0 }
 0x3c0   : > { %v5578_v1 = vadd.f32 %v5577_v59, %v9468_v2  ;;  %v7666_v63 = vpop.f32.mrb[166].mxu0  ;;  %7707 = vmatprep.mubr.bf16.mxu1 %v5720_v58  ;;  %v9554_v2 = vadd.f32 %v7503_v51, %v5360_v12  ;;  %v9557_v4 = vadd.f32 %v7506_v46, %v5363_v10 }
 0x3c1   : > { %v5589_v31 = vadd.f32 %v7666_v63, %v9477_v34  ;;  %v5580_v17 = vpop.f32.mrb[167].mxu0  ;;  %7708 = vmatmul.mubr.bf16.vlgmr.msra.gmra.mrb[136].mxu1 %v5721_v38  ;;  %v5694_v39 = vmax.f32 %v5586_v47, 0.0 }
 0x3c2   : > { %v5581_v43 = vadd.f32 %v5580_v17, %v9471_v48  ;;  %v5692_v20 = vmax.f32 %v5578_v1, 0.0 }
 0x3c3   : > { %v5695_v54 = vmax.f32 %v5589_v31, 0.0 }
 0x3c4   : > { %v5693_v30 = vmax.f32 %v5581_v43, 0.0 }
 0x3c5   : > { %v5723_v53 = vpack.c.bf16 %v5695_v54, %v5694_v39 }
 0x3c6   : > { %v5722_v19 = vpack.c.bf16 %v5693_v30, %v5692_v20  ;;  %v7669_v37 = vpop.f32.mrb[168].mxu0 }
 0x3c7   : > { %v5602_v34 = vadd.f32 %v7669_v37, %v9486_v23  ;;  %v5593_v41 = vpop.f32.mrb[169].mxu0 }
 0x3c8   : > { %v5594_v48 = vadd.f32 %v5593_v41, %v9480_v5  ;;  %v7670_v24 = vpop.f32.mrb[170].mxu0  ;;  %7711 = vmatprep.mubr.bf16.mxu1 %v5722_v19 }
 0x3c9   : > { %v5605_v28 = vadd.f32 %v7670_v24, %v9489_v27  ;;  %v5596_v33 = vpop.f32.mrb[171].mxu0  ;;  %7712 = vmatmul.mubr.bf16.gmra.mrb[140].mxu1 %v5723_v53  ;;  %v5698_v29 = vmax.f32 %v5602_v34, 0.0 }
 0x3ca   : > { %v5597_v0 = vadd.f32 %v5596_v33, %v9483_v62  ;;  %v5696_v15 = vmax.f32 %v5594_v48, 0.0 }
 0x3cb   : > { %v5699_v12 = vmax.f32 %v5605_v28, 0.0 }
 0x3cc   : > { %v5697_v35 = vmax.f32 %v5597_v0, 0.0 }
 0x3cd   : > { %v5725_v25 = vpack.c.bf16 %v5699_v12, %v5698_v29 }
 0x3ce   : > { %v5724_v32 = vpack.c.bf16 %v5697_v35, %v5696_v15  ;;  %v7673_v23 = vpop.f32.mrb[172].mxu0 }
 0x3cf   : > { %v5618_v10 = vadd.f32 %v7673_v23, %v9498_v18  ;;  %v5609_v7 = vpop.f32.mrb[173].mxu0 }
 0x3d0   : > { %v5610_v5 = vadd.f32 %v5609_v7, %v9492_v57  ;;  %v7674_v13 = vpop.f32.mrb[174].mxu0  ;;  %7715 = vmatprep.mubr.bf16.mxu1 %v5724_v32 }
 0x3d1   : > { %v5621_v27 = vadd.f32 %v7674_v13, %v9501_v21  ;;  %v5612_v56 = vpop.f32.mrb[175].mxu0  ;;  %7716 = vmatmul.mubr.bf16.gmra.mrb[144].mxu1 %v5725_v25  ;;  %v5702_v38 = vmax.f32 %v5618_v10, 0.0 }
 0x3d2   : > { %v5613_v62 = vadd.f32 %v5612_v56, %v9495_v60  ;;  %v5700_v8 = vmax.f32 %v5610_v5, 0.0 }
 0x3d3   : > { %v5703_v58 = vmax.f32 %v5621_v27, 0.0 }
 0x3d4   : > { %v5701_v47 = vmax.f32 %v5613_v62, 0.0 }
 0x3d5   : > { %v5727_v59 = vpack.c.bf16 %v5703_v58, %v5702_v38 }
 0x3d6   : > { %v5726_v1 = vpack.c.bf16 %v5701_v47, %v5700_v8  ;;  %v7677_v63 = vpop.f32.mrb[176].mxu0 }
 0x3d7   : > { %v5634_v18 = vadd.f32 %v7677_v63, %v9510_v22  ;;  %v5625_v36 = vpop.f32.mrb[177].mxu0 }
 0x3d8   : > { %v5626_v57 = vadd.f32 %v5625_v36, %v9504_v14  ;;  %v7678_v31 = vpop.f32.mrb[178].mxu0  ;;  %7719 = vmatprep.mubr.bf16.mxu1 %v5726_v1 }
 0x3d9   : > { %v5637_v21 = vadd.f32 %v7678_v31, %v9513_v11  ;;  %v5628_v17 = vpop.f32.mrb[179].mxu0  ;;  %7720 = vmatmul.mubr.bf16.gmra.mrb[148].mxu1 %v5727_v59  ;;  %v5706_v40 = vmax.f32 %v5634_v18, 0.0 }
 0x3da   : > { %v5629_v60 = vadd.f32 %v5628_v17, %v9507_v49  ;;  %v5704_v51 = vmax.f32 %v5626_v57, 0.0 }
 0x3db   : > { %v5707_v43 = vmax.f32 %v5637_v21, 0.0 }
 0x3dc   : > { %v5705_v50 = vmax.f32 %v5629_v60, 0.0 }
 0x3dd   : > { %v5729_v39 = vpack.c.bf16 %v5707_v43, %v5706_v40 }
 0x3de   : > { %v5728_v54 = vpack.c.bf16 %v5705_v50, %v5704_v51  ;;  %v7681_v3 = vpop.f32.mrb[180].mxu0 }
 0x3df   : > { %v5650_v22 = vadd.f32 %v7681_v3, %v9522_v16  ;;  %v5641_v20 = vpop.f32.mrb[181].mxu0 }
 0x3e0   : > { %v5642_v14 = vadd.f32 %v5641_v20, %v9516_v61  ;;  %v7682_v30 = vpop.f32.mrb[182].mxu0  ;;  %7723 = vmatprep.mubr.bf16.mxu1 %v5728_v54  ;;  %v8215_v54 = vld [vmem:[%s8869_s19 + $0x18] sm:$0xff]  }
 0x3e1   : > { %v5653_v11 = vadd.f32 %v7682_v30, %v9525_v44  ;;  %v5644_v46 = vpop.f32.mrb[183].mxu0  ;;  %7724 = vmatmul.mubr.bf16.gmra.mrb[152].mxu1 %v5729_v39  ;;  %v5710_v53 = vmax.f32 %v5650_v22, 0.0  ;;  %v5974_v3 = vunpack.c.l.bf16 %v8215_v54  ;;  %v8216_v30 = vld [vmem:[%s8869_s19 + $0x10] sm:$0xff]  }
 0x3e2   : > { %v5645_v49 = vadd.f32 %v5644_v46, %v9519_v42  ;;  %v5708_v37 = vmax.f32 %v5642_v14, 0.0 }
 0x3e3   : > { %v5711_v19 = vmax.f32 %v5653_v11, 0.0  ;;  %v5972_v11 = vunpack.c.l.bf16 %v8216_v30 }
 0x3e4   : > { %v5709_v34 = vmax.f32 %v5645_v49, 0.0 }
 0x3e5   : > { %v5731_v41 = vpack.c.bf16 %v5711_v19, %v5710_v53  ;;  %v5975_v19 = vunpack.c.h.bf16 %v8215_v54 }
 0x3e6   : > { %v5730_v48 = vpack.c.bf16 %v5709_v34, %v5708_v37  ;;  %v7685_v24 = vpop.f32.mrb[184].mxu0 }
 0x3e7   : > { %v5666_v16 = vadd.f32 %v7685_v24, %v9534_v45  ;;  %v5657_v28 = vpop.f32.mrb[185].mxu0 }
 0x3e8   : > { %v5658_v61 = vadd.f32 %v5657_v28, %v9528_v26  ;;  %v7686_v33 = vpop.f32.mrb[186].mxu0  ;;  %7727 = vmatprep.mubr.bf16.mxu1 %v5730_v48  ;;  %v5973_v48 = vunpack.c.h.bf16 %v8216_v30 }
 0x3e9   : > { %v5669_v44 = vadd.f32 %v7686_v33, %v9536_v55  ;;  %v5660_v0 = vpop.f32.mrb[187].mxu0  ;;  %7728 = vmatmul.mubr.bf16.gmra.mrb[156].mxu1 %v5731_v41  ;;  %v5714_v29 = vmax.f32 %v5666_v16, 0.0 }
 0x3ea   : > { %v5661_v42 = vadd.f32 %v5660_v0, %v9531_v52  ;;  %v5712_v15 = vmax.f32 %v5658_v61, 0.0 }
 0x3eb   : > { %v5715_v12 = vmax.f32 %v5669_v44, 0.0 }
 0x3ec   : > { %v5713_v35 = vmax.f32 %v5661_v42, 0.0 }
 0x3ed   : > { %v5733_v25 = vpack.c.bf16 %v5715_v12, %v5714_v29  ;;  %v8217_v12 = vld [vmem:[%s8869_s19 + $0x28] sm:$0xff]  }
 0x3ee   : > { %v5732_v32 = vpack.c.bf16 %v5713_v35, %v5712_v15  ;;  %v7689_v23 = vpop.f32.mrb[188].mxu0  ;;  %v5978_v15 = vunpack.c.l.bf16 %v8217_v12 }
 0x3ef   : > { %v5682_v45 = vadd.f32 %v7689_v23, %v9554_v2  ;;  %v5673_v10 = vpop.f32.mrb[189].mxu0  ;;  %v8213_v2 = vld [vmem:[%s8869_s19 + $0x8] sm:$0xff]   ;;  %v8218_v23 = vld [vmem:[%s8869_s19 + $0x20] sm:$0xff]  }
 0x3f0   : > { %v5674_v26 = vadd.f32 %v5673_v10, %v9540_v6  ;;  %v7690_v7 = vpop.f32.mrb[190].mxu0  ;;  %7731 = vmatprep.mubr.bf16.mxu1 %v5732_v32  ;;  %v9585_v6 = vld [vmem:[%s9796_s20] ss:$0 sm:$0xff]  ;;  %v5970_v8 = vunpack.c.l.bf16 %v8213_v2  ;;  %v5971_v63 = vunpack.c.h.bf16 %v8213_v2 }
 0x3f1   : > { %v5685_v55 = vadd.f32 %v7690_v7, %v9557_v4  ;;  %v5676_v5 = vpop.f32.mrb[191].mxu0  ;;  %7732 = vmatmul.mubr.bf16.gmra.mrb[160].mxu1 %v5733_v25  ;;  %v5718_v13 = vmax.f32 %v5682_v45, 0.0  ;;  %v8214_v4 = vld [vmem:[%s8869_s19] sm:$0xff]   ;;  %v5976_v45 = vunpack.c.l.bf16 %v8218_v23 }
 0x3f2   : > { %v5677_v52 = vadd.f32 %v5676_v5, %v9542_v9  ;;  %v5716_v56 = vmax.f32 %v5674_v26, 0.0  ;;  %v5968_v47 = vunpack.c.l.bf16 %v8214_v4  ;;  %v5969_v18 = vunpack.c.h.bf16 %v8214_v4 }
 0x3f3   : > { %v5719_v27 = vmax.f32 %v5685_v55, 0.0  ;;  %v5979_v55 = vunpack.c.h.bf16 %v8217_v12 }
 0x3f4   : > { %v5717_v62 = vmax.f32 %v5677_v52, 0.0 }
 0x3f5   : > { %v5735_v38 = vpack.c.bf16 %v5719_v27, %v5718_v13  ;;  %v5977_v27 = vunpack.c.h.bf16 %v8218_v23 }
 0x3f6   : > { %v5734_v58 = vpack.c.bf16 %v5717_v62, %v5716_v56 }
 0x3f8   : > { %7735 = vmatprep.mubr.bf16.mxu1 %v5734_v58 }
 0x3f9   : > { %7736 = vmatmul.mubr.bf16.gmra.mrb[164].mxu1 %v5735_v38 }
 0x494   : > { %v7709_v59 = vpop.f32.mrb[136].mxu1 }
 0x495   : > { %v5850_v9 = vadd.f32 %v7709_v59, %v9585_v6  ;;  %v5841_v1 = vpop.f32.mrb[137].mxu1 }
 0x496   : > { %v5842_v36 = vadd.f32 %v9585_v6, %v5841_v1  ;;  %v7710_v57 = vpop.f32.mrb[138].mxu1 }
 0x497   : > { %v6002_v31 = vadd.f32 %v5970_v8, %v5850_v9  ;;  %v5853_v21 = vadd.f32 %v7710_v57, %v9585_v6  ;;  %v5844_v17 = vpop.f32.mrb[139].mxu1  ;;  %v8219_v9 = vld [vmem:[%s8869_s19 + $0x38] sm:$0xff]   ;;  %v8220_v57 = vld [vmem:[%s8869_s19 + $0x30] sm:$0xff]  }
 0x498   : > { %v6000_v60 = vadd.f32 %v5968_v47, %v5842_v36  ;;  %v5845_v40 = vadd.f32 %v9585_v6, %v5844_v17  ;;  %v5982_v1 = vunpack.c.l.bf16 %v8219_v9 }
 0x499   : > { %v6003_v43 = vadd.f32 %v5971_v63, %v5853_v21  ;;  %v6034_v50 = vmax.f32 %v6002_v31, 0.0  ;;  %v5980_v31 = vunpack.c.l.bf16 %v8220_v57 }
 0x49a   : > { %v6001_v51 = vadd.f32 %v5969_v18, %v5845_v40  ;;  %v6032_v22 = vmax.f32 %v6000_v60, 0.0  ;;  %v5983_v40 = vunpack.c.h.bf16 %v8219_v9 }
 0x49b   : > { %v6035_v39 = vmax.f32 %v6003_v43, 0.0 }
 0x49c   : > { %v6033_v20 = vmax.f32 %v6001_v51, 0.0  ;;  %v7713_v14 = vpop.f32.mrb[140].mxu1 }
 0x49d   : > { %v6929_v46 = vpack.c.bf16 %v6035_v39, %v6034_v50  ;;  %v5866_v49 = vadd.f32 %v7713_v14, %v9585_v6  ;;  %v5857_v53 = vpop.f32.mrb[141].mxu1  ;;  %v5981_v39 = vunpack.c.h.bf16 %v8220_v57 }
 0x49e   : > { %v6924_v37 = vpack.c.bf16 %v6033_v20, %v6032_v22  ;;  %v5858_v34 = vadd.f32 %v9585_v6, %v5857_v53  ;;  %v7714_v41 = vpop.f32.mrb[142].mxu1  ;;  %v8221_v53 = vld [vmem:[%s8869_s19 + $0x48] sm:$0xff]  }
 0x49f   : > { %7002 = vst [vmem:[%s9599_s16 + $0x8] sm:$0xff] %v6929_v46   ;;  %v6006_v24 = vadd.f32 %v5974_v3, %v5866_v49  ;;  %v5869_v16 = vadd.f32 %v7714_v41, %v9585_v6  ;;  %v5860_v28 = vpop.f32.mrb[143].mxu1 }
 0x4a0   : > { %6925 = vst [vmem:[%s9599_s16] sm:$0xff] %v6924_v37   ;;  %v6004_v61 = vadd.f32 %v5972_v11, %v5858_v34  ;;  %v5861_v33 = vadd.f32 %v9585_v6, %v5860_v28 }
 0x4a1   : > { %v6007_v44 = vadd.f32 %v5975_v19, %v5869_v16  ;;  %v6038_v42 = vmax.f32 %v6006_v24, 0.0  ;;  %v5986_v19 = vunpack.c.l.bf16 %v8221_v53 }
 0x4a2   : > { %v6005_v0 = vadd.f32 %v5973_v48, %v5861_v33  ;;  %v6036_v35 = vmax.f32 %v6004_v61, 0.0  ;;  %v8222_v48 = vld [vmem:[%s8869_s19 + $0x40] sm:$0xff]   ;;  %v5987_v33 = vunpack.c.h.bf16 %v8221_v53 }
 0x4a3   : > { %v6039_v29 = vmax.f32 %v6007_v44, 0.0  ;;  %v5984_v24 = vunpack.c.l.bf16 %v8222_v48 }
 0x4a4   : > { %v6037_v25 = vmax.f32 %v6005_v0, 0.0  ;;  %v7717_v32 = vpop.f32.mrb[144].mxu1 }
 0x4a5   : > { %v6939_v10 = vpack.c.bf16 %v6039_v29, %v6038_v42  ;;  %v5882_v26 = vadd.f32 %v7717_v32, %v9585_v6  ;;  %v5873_v7 = vpop.f32.mrb[145].mxu1  ;;  %v5985_v29 = vunpack.c.h.bf16 %v8222_v48 }
 0x4a6   : > { %v6934_v5 = vpack.c.bf16 %v6037_v25, %v6036_v35  ;;  %v5874_v52 = vadd.f32 %v9585_v6, %v5873_v7  ;;  %v7718_v13 = vpop.f32.mrb[146].mxu1  ;;  %v8223_v7 = vld [vmem:[%s8869_s19 + $0x58] sm:$0xff]  }
 0x4a7   : > { %7004 = vst [vmem:[%s9599_s16 + $0x18] sm:$0xff] %v6939_v10   ;;  %v6010_v56 = vadd.f32 %v5978_v15, %v5882_v26  ;;  %v5885_v62 = vadd.f32 %v7718_v13, %v9585_v6  ;;  %v5876_v38 = vpop.f32.mrb[147].mxu1 }
 0x4a8   : > { %7003 = vst [vmem:[%s9599_s16 + $0x10] sm:$0xff] %v6934_v5   ;;  %v6008_v58 = vadd.f32 %v5976_v45, %v5874_v52  ;;  %v5877_v2 = vadd.f32 %v9585_v6, %v5876_v38 }
 0x4a9   : > { %v6011_v8 = vadd.f32 %v5979_v55, %v5885_v62  ;;  %v6042_v47 = vmax.f32 %v6010_v56, 0.0  ;;  %v5990_v55 = vunpack.c.l.bf16 %v8223_v7 }
 0x4aa   : > { %v6009_v4 = vadd.f32 %v5977_v27, %v5877_v2  ;;  %v6040_v63 = vmax.f32 %v6008_v58, 0.0  ;;  %v8224_v27 = vld [vmem:[%s8869_s19 + $0x50] sm:$0xff]   ;;  %v5991_v2 = vunpack.c.h.bf16 %v8223_v7 }
 0x4ab   : > { %v6043_v59 = vmax.f32 %v6011_v8, 0.0  ;;  %v5988_v56 = vunpack.c.l.bf16 %v8224_v27 }
 0x4ac   : > { %v6041_v18 = vmax.f32 %v6009_v4, 0.0  ;;  %v7721_v36 = vpop.f32.mrb[148].mxu1 }
 0x4ad   : > { %v6949_v21 = vpack.c.bf16 %v6043_v59, %v6042_v47  ;;  %v5898_v17 = vadd.f32 %v7721_v36, %v9585_v6  ;;  %v5889_v60 = vpop.f32.mrb[149].mxu1  ;;  %v5989_v59 = vunpack.c.h.bf16 %v8224_v27 }
 0x4ae   : > { %v6944_v43 = vpack.c.bf16 %v6041_v18, %v6040_v63  ;;  %v5890_v51 = vadd.f32 %v9585_v6, %v5889_v60  ;;  %v7722_v50 = vpop.f32.mrb[150].mxu1  ;;  %v8225_v60 = vld [vmem:[%s8869_s19 + $0x68] sm:$0xff]  }
 0x4af   : > { %7006 = vst [vmem:[%s9599_s16 + $0x28] sm:$0xff] %v6949_v21   ;;  %v6014_v54 = vadd.f32 %v5982_v1, %v5898_v17  ;;  %v5901_v3 = vadd.f32 %v7722_v50, %v9585_v6  ;;  %v5892_v22 = vpop.f32.mrb[151].mxu1 }
 0x4b0   : > { %7005 = vst [vmem:[%s9599_s16 + $0x20] sm:$0xff] %v6944_v43   ;;  %v6012_v20 = vadd.f32 %v5980_v31, %v5890_v51  ;;  %v5893_v14 = vadd.f32 %v9585_v6, %v5892_v22 }
 0x4b1   : > { %v6015_v30 = vadd.f32 %v5983_v40, %v5901_v3  ;;  %v6046_v46 = vmax.f32 %v6014_v54, 0.0  ;;  %v5994_v40 = vunpack.c.l.bf16 %v8225_v60 }
 0x4b2   : > { %v6013_v11 = vadd.f32 %v5981_v39, %v5893_v14  ;;  %v6044_v37 = vmax.f32 %v6012_v20, 0.0  ;;  %v8226_v39 = vld [vmem:[%s8869_s19 + $0x60] sm:$0xff]   ;;  %v5995_v14 = vunpack.c.h.bf16 %v8225_v60 }
 0x4b3   : > { %v6047_v49 = vmax.f32 %v6015_v30, 0.0  ;;  %v5992_v54 = vunpack.c.l.bf16 %v8226_v39 }
 0x4b4   : > { %v6045_v34 = vmax.f32 %v6013_v11, 0.0  ;;  %v7725_v41 = vpop.f32.mrb[152].mxu1 }
 0x4b5   : > { %v6959_v16 = vpack.c.bf16 %v6047_v49, %v6046_v46  ;;  %v5914_v28 = vadd.f32 %v7725_v41, %v9585_v6  ;;  %v5905_v61 = vpop.f32.mrb[153].mxu1  ;;  %v5993_v49 = vunpack.c.h.bf16 %v8226_v39 }
 0x4b6   : > { %v6954_v44 = vpack.c.bf16 %v6045_v34, %v6044_v37  ;;  %v5906_v0 = vadd.f32 %v9585_v6, %v5905_v61  ;;  %v7726_v42 = vpop.f32.mrb[154].mxu1  ;;  %v8227_v61 = vld [vmem:[%s8869_s19 + $0x78] sm:$0xff]  }
 0x4b7   : > { %7008 = vst [vmem:[%s9599_s16 + $0x38] sm:$0xff] %v6959_v16   ;;  %v6018_v12 = vadd.f32 %v5986_v19, %v5914_v28  ;;  %v5917_v15 = vadd.f32 %v7726_v42, %v9585_v6  ;;  %v5908_v35 = vpop.f32.mrb[155].mxu1 }
 0x4b8   : > { %7007 = vst [vmem:[%s9599_s16 + $0x30] sm:$0xff] %v6954_v44   ;;  %v6016_v25 = vadd.f32 %v5984_v24, %v5906_v0  ;;  %v5909_v32 = vadd.f32 %v9585_v6, %v5908_v35 }
 0x4b9   : > { %v6019_v23 = vadd.f32 %v5987_v33, %v5917_v15  ;;  %v6050_v10 = vmax.f32 %v6018_v12, 0.0  ;;  %v5998_v33 = vunpack.c.l.bf16 %v8227_v61 }
 0x4ba   : > { %v6017_v45 = vadd.f32 %v5985_v29, %v5909_v32  ;;  %v6048_v5 = vmax.f32 %v6016_v25, 0.0  ;;  %v8228_v29 = vld [vmem:[%s8869_s19 + $0x70] sm:$0xff]   ;;  %v5999_v32 = vunpack.c.h.bf16 %v8227_v61 }
 0x4bb   : > { %v6051_v26 = vmax.f32 %v6019_v23, 0.0  ;;  %v5996_v12 = vunpack.c.l.bf16 %v8228_v29 }
 0x4bc   : > { %v6049_v52 = vmax.f32 %v6017_v45, 0.0  ;;  %v7729_v13 = vpop.f32.mrb[156].mxu1 }
 0x4bd   : > { %v6969_v62 = vpack.c.bf16 %v6051_v26, %v6050_v10  ;;  %v5930_v38 = vadd.f32 %v7729_v13, %v9585_v6  ;;  %v5921_v58 = vpop.f32.mrb[157].mxu1  ;;  %v5997_v26 = vunpack.c.h.bf16 %v8228_v29 }
 0x4be   : > { %v6964_v8 = vpack.c.bf16 %v6049_v52, %v6048_v5  ;;  %v5922_v4 = vadd.f32 %v9585_v6, %v5921_v58  ;;  %v7730_v47 = vpop.f32.mrb[158].mxu1 }
 0x4bf   : > { %7010 = vst [vmem:[%s9599_s16 + $0x48] sm:$0xff] %v6969_v62   ;;  %v6022_v9 = vadd.f32 %v5990_v55, %v5930_v38  ;;  %v5933_v1 = vadd.f32 %v7730_v47, %v9585_v6  ;;  %v5924_v63 = vpop.f32.mrb[159].mxu1 }
 0x4c0   : > { %7009 = vst [vmem:[%s9599_s16 + $0x40] sm:$0xff] %v6964_v8   ;;  %v6020_v18 = vadd.f32 %v5988_v56, %v5922_v4  ;;  %v5925_v36 = vadd.f32 %v9585_v6, %v5924_v63 }
 0x4c1   : > { %v6023_v57 = vadd.f32 %v5991_v2, %v5933_v1  ;;  %v6054_v21 = vmax.f32 %v6022_v9, 0.0 }
 0x4c2   : > { %v6021_v31 = vadd.f32 %v5989_v59, %v5925_v36  ;;  %v6052_v43 = vmax.f32 %v6020_v18, 0.0 }
 0x4c3   : > { %v6055_v17 = vmax.f32 %v6023_v57, 0.0 }
 0x4c4   : > { %v6053_v51 = vmax.f32 %v6021_v31, 0.0  ;;  %v7733_v50 = vpop.f32.mrb[160].mxu1 }
 0x4c5   : > { %v6979_v3 = vpack.c.bf16 %v6055_v17, %v6054_v21  ;;  %v5946_v22 = vadd.f32 %v7733_v50, %v9585_v6  ;;  %v5937_v20 = vpop.f32.mrb[161].mxu1 }
 0x4c6   : > { %v6974_v30 = vpack.c.bf16 %v6053_v51, %v6052_v43  ;;  %v5938_v11 = vadd.f32 %v9585_v6, %v5937_v20  ;;  %v7734_v46 = vpop.f32.mrb[162].mxu1 }
 0x4c7   : > { %7012 = vst [vmem:[%s9599_s16 + $0x58] sm:$0xff] %v6979_v3   ;;  %v6026_v53 = vadd.f32 %v5994_v40, %v5946_v22  ;;  %v5949_v19 = vadd.f32 %v7734_v46, %v9585_v6  ;;  %v5940_v37 = vpop.f32.mrb[163].mxu1 }
 0x4c8   : > { %7011 = vst [vmem:[%s9599_s16 + $0x50] sm:$0xff] %v6974_v30   ;;  %v6024_v34 = vadd.f32 %v5992_v54, %v5938_v11  ;;  %v5941_v41 = vadd.f32 %v9585_v6, %v5940_v37 }
 0x4c9   : > { %v6027_v48 = vadd.f32 %v5995_v14, %v5949_v19  ;;  %v6058_v16 = vmax.f32 %v6026_v53, 0.0 }
 0x4ca   : > { %v6025_v24 = vadd.f32 %v5993_v49, %v5941_v41  ;;  %v6056_v44 = vmax.f32 %v6024_v34, 0.0 }
 0x4cb   : > { %v6059_v28 = vmax.f32 %v6027_v48, 0.0 }
 0x4cc   : > { %v6057_v0 = vmax.f32 %v6025_v24, 0.0  ;;  %v7737_v42 = vpop.f32.mrb[164].mxu1 }
 0x4cd   : > { %v6989_v15 = vpack.c.bf16 %v6059_v28, %v6058_v16  ;;  %v5962_v35 = vadd.f32 %v7737_v42, %v9585_v6  ;;  %v5953_v25 = vpop.f32.mrb[165].mxu1 }
 0x4ce   : > { %v6984_v23 = vpack.c.bf16 %v6057_v0, %v6056_v44  ;;  %v5954_v45 = vadd.f32 %v9585_v6, %v5953_v25  ;;  %v7738_v10 = vpop.f32.mrb[166].mxu1 }
 0x4cf   : > { %7014 = vst [vmem:[%s9599_s16 + $0x68] sm:$0xff] %v6989_v15   ;;  %v6030_v7 = vadd.f32 %v5998_v33, %v5962_v35  ;;  %v5965_v55 = vadd.f32 %v7738_v10, %v9585_v6  ;;  %v5956_v5 = vpop.f32.mrb[167].mxu1 }
 0x4d0   : > { %7013 = vst [vmem:[%s9599_s16 + $0x60] sm:$0xff] %v6984_v23   ;;  %v6028_v52 = vadd.f32 %v5996_v12, %v5954_v45  ;;  %v5957_v13 = vadd.f32 %v9585_v6, %v5956_v5 }
 0x4d1   : > { %v6031_v27 = vadd.f32 %v5999_v32, %v5965_v55  ;;  %v6062_v62 = vmax.f32 %v6030_v7, 0.0 }
 0x4d2   : > { %v6029_v56 = vadd.f32 %v5997_v26, %v5957_v13  ;;  %v6060_v58 = vmax.f32 %v6028_v52, 0.0 }
 0x4d3   : > { %v6063_v38 = vmax.f32 %v6031_v27, 0.0 }
 0x4d4   : > { %v6061_v2 = vmax.f32 %v6029_v56, 0.0 }
 0x4d5   : > { %v6999_v8 = vpack.c.bf16 %v6063_v38, %v6062_v62 }
 0x4d6   : > { %v6994_v6 = vpack.c.bf16 %v6061_v2, %v6060_v58 }
 0x4d7   : > { %7016 = vst [vmem:[%s9599_s16 + $0x78] sm:$0xff] %v6999_v8  }
 0x4d8   : > { %7015 = vst [vmem:[%s9599_s16 + $0x70] sm:$0xff] %v6994_v6  }
 0x4d9   : > { %8416 = shalt.err (!%p8413_p6)
}
 0x4da   : > { %s8417_s24 = scalar_lea.hbm %s9658_s14, 2048  ;;  %s8421_s22 = scalar_lea.hbm %s9800_s21, 4096 }
 0x4db   : > { %p8418_p7 = scmp.ne.s32.totalorder %s9658_s14, %s8417_s24  ;;  %p8422_p4 = scmp.lt.u32.totalorder %s9658_s14, %s9800_s21 }
 0x4dc   : > { %p8423_p12 = scmp.lt.u32.totalorder %s8421_s22, %s8417_s24  ;;  %p8425_p11 = scmp.lt.u32.totalorder %s8417_s24, %s9658_s14 }
 0x4dd   : > { %p8419_p9 = pnand %p8418_p7, %p9801_p10 }
 0x4de   : > { %p8424_p2 = por %p8423_p12, %p8422_p4 }
 0x4df   : > { %p8420_p0 = pneg %p8419_p9 }
 0x4e0   : > { %p8426_p1 = por %p8425_p11, %p8424_p2 }
 0x4e2   : > { %p8427_p8 = pnand %p8426_p1, %p8420_p0 }
 0x4e4   : > { %8430 = shalt.err (!%p8427_p8)
}
 0x4e5   : > { %s8511_s6 = smov 64   ;;  %s8512_s20 = smov 4  }
 0x4e6   : > { %7757 = dma.vmem_to_hbm [thread:$0]  (%p9801_p10), %s9660_s30, 2048, %s9658_s14, %s6225_s29, %s8511_s6, %s8511_s6, %s8512_s20  }
 0x4e7 PF: > { %s9802_s16 = sld [smem:[#allocation21_spill]]  ;;  %s9803_s12 = sld [smem:[#allocation27_spill]] }
 0x4e8   : > { %s9804_s17 = sld [smem:[#allocation25_spill]] }
 0x4ed   : > { %s6256_s8 = sand.u32 1, %s9802_s16   ;;  %p9805_p13 = scmp.ne.s32.totalorder %s9803_s12, 0 }
 0x4ee   : > { %p9806_p5 = scmp.ge.s32.totalorder %s9804_s17, 2  ;;  %s6257_s19 = scalar_lea.sflag [#allocation6], %s6256_s8 }
 0x4f0   : > { %p7780_p3 = pnand %p9806_p5, %p9805_p13 }
 0x4f2   : > { %8472 = dma.done.wait (!%p7780_p3), %s6257_s19, 2048  }
 0x4f3   : > { %8474 = vsyncadd (!%p7780_p3), %s6257_s19, 4294965248  ;;  %s30_s14 = sadd.s32 1, %s9804_s17   ;;  %s9807_s13 = sld [smem:[#allocation22_spill]] }
 0x4f4   : > { %p27_p6 = scmp.ge.s32.totalorder %s30_s14, 4   ;;  %s9808_s11 = sld [smem:[#allocation29_spill]] }
 0x4f5   : > { %s9809_s12 = sld [smem:[#allocation24_spill]]  ;;  %s9810_s28 = sld [smem:[#allocation28_spill]] }
 0x4f6   : > { %s9811_s30 = smov %s8481_s10  ;;  %29 = sbr.rel (!%p27_p6) target bundleno = 16 (0x10), region = 140 }
 0x4f9   : > { %s9812_s10 = smov %s9807_s13 }
 0x4fb   : > { %s9813_s13 = smov %s9810_s28 }
 0x4fd   :  { %6262 = vsyncpa [#allocation5], 1 }
 0x4fe   :  { %6264 = vsyncpa [#allocation5 + $0x1], 1 }
 0x4ff   :  { %6265 = vsyncpa [#allocation8], 1 }
 0x500   :  { %6267 = vsyncpa [#allocation8 + $0x1], 1 }
 0x501   :  { %6268 = vsyncpa [#allocation11], 1 }
 0x502   :  { %6269 = vsyncpa [#allocation14], 1 }
 0x503   :  { %6270 = vsyncpa [#allocation6], 1 }
 0x504   :  { %6272 = vsyncpa [#allocation6 + $0x1], 1 }

</bundles_post_ra>
